<compile_context>
chip_gen: v6e
topology: v6e:2x2x1
jax: 0.10.0
libtpu: 0.0.40
codegen_flags: <defaults>
</compile_context>

<pallas_src>
import jax
import jax.numpy as jnp
from jax.experimental import pallas as pl
from jax.experimental.pallas import tpu as pltpu

# Small synthetic problem sizes (what the module's forward implies).
NUM_NODES = 16     # args.num_nodes
NFEAT = 16         # args.nfeat
NHID = 32          # args.nhid
NOUT = 32          # args.nout
NUM_FACTORS = 2    # len(args.spatial_dilated_factors)

NUM_GRAPHS = 16    # batch of independent forward calls (e.g. time steps)


def _spatial_dilated_kernel(pre1_ref, w2_ref, b2_ref, q_ref, rt_ref, adj_ref, out_ref):
    # pre1_ref : (F, TBN, NHID) bf16   host-hoisted  tile(feat @ W_lin^T @ w1_f + bias, TILE_B)
    # w2_ref   : (F, NHID, NOUT) bf16
    # b2_ref   : (F, 1, NOUT)    f32
    # q_ref    : (NOUT, NHID)    bf16
    # rt_ref   : (1, NHID)       f32
    # adj_ref  : (F, TBN, TBN)   bf16   block-diag deg-normalized adjacency for this tile
    f32 = jnp.float32
    bf16 = jnp.bfloat16

    a0 = adj_ref[0]
    a1 = adj_ref[1]
    q = q_ref[...]
    rt = rt_ref[...]

    # TODO(synk): HGCNConv/HGATConv internals are not defined in the source module; they are
    # approximated as dense deg-normalized GCN layers (ReLU after the first aggregation).
    def one_factor(a, f):
        # layer 1: (pre-activation hoisted to host) -> aggregate -> ReLU
        m = jnp.dot(a, pre1_ref[f], preferred_element_type=f32)               # (TBN, NHID) f32
        h1 = jnp.maximum(m, 0.0)
        # layer 2: linear -> aggregate
        p2 = jnp.dot(h1.astype(bf16), w2_ref[f],
                     preferred_element_type=f32) + b2_ref[f]                  # (TBN, NOUT) f32
        h2 = jnp.dot(a, p2.astype(bf16), preferred_element_type=f32)          # (TBN, NOUT) f32
        # attention logit for this factor: s = tanh(h2 @ Q) @ r
        t = jnp.tanh(jnp.dot(h2.astype(bf16), q, preferred_element_type=f32))  # (TBN, NHID) f32
        s = jnp.sum(t * rt, axis=1, keepdims=True)                            # (TBN, 1) f32
        return h2, s

    h2_0, s0 = one_factor(a0, 0)
    h2_1, s1 = one_factor(a1, 1)

    # softmax over the 2 factors == sigmoid(s0 - s1); fold the 1/F mean into the mixing weight.
    # reciprocal rides the EUP approx path instead of a multi-op VALU divide.
    d = s0 - s1
    w0 = (1.0 / NUM_FACTORS) * pl.reciprocal(1.0 + jnp.exp(-d), approx=True)
    out_ref[...] = w0 * h2_0 + ((1.0 / NUM_FACTORS) - w0) * h2_1
    # to_hyper(x, c_out) is identity for the Euclidean manifold.


def pick_tile_b(num_graphs):
    """v7x has 2 TensorCores/chip -> keep >=2 'parallel' grid steps; v5e/v6e -> single step."""
    kind = ""
    try:
        kind = jax.devices()[0].device_kind.lower()
    except Exception:
        pass
    if "v7" in kind:
        tile_b = max(num_graphs // 2, 1)
    else:
        tile_b = num_graphs
    while num_graphs % tile_b != 0:
        tile_b -= 1
    return tile_b


def spatial_dilated_conv(pre1_t, w2, b2, q, rt, adj_bd, *, tile_b):
    num_tiles, nf, tbn, _ = adj_bd.shape
    assert nf == NUM_FACTORS and tbn == tile_b * NUM_NODES

    def const_spec(arr):
        nd = arr.ndim
        return pl.BlockSpec(arr.shape, lambda i, _nd=nd: (0,) * _nd)

    return pl.pallas_call(
        _spatial_dilated_kernel,
        out_shape=jax.ShapeDtypeStruct((num_tiles * tbn, NOUT), jnp.float32),
        grid=(num_tiles,),
        in_specs=[
            const_spec(pre1_t), const_spec(w2), const_spec(b2),
            const_spec(q), const_spec(rt),
            pl.BlockSpec((None, NUM_FACTORS, tbn, tbn), lambda i: (i, 0, 0, 0)),
        ],
        out_specs=pl.BlockSpec((tbn, NOUT), lambda i: (i, 0)),
        compiler_params=pltpu.CompilerParams(
            dimension_semantics=("parallel",),
        ),
    )(pre1_t, w2, b2, q, rt, adj_bd)


# ---------- plain-JAX glue: deterministic params, dense normalized adjacency, reference ----------

def glorot(key, shape):
    limit = jnp.sqrt(6.0 / (shape[0] + shape[1]))
    return jax.random.uniform(key, shape, jnp.float32, -limit, limit)


def build_norm_adj(edge_index, n):
    a = jnp.zeros((n, n), jnp.float32)
    a = a.at[edge_index[0], edge_index[1]].set(1.0)
    a = a.at[edge_index[1], edge_index[0]].set(1.0)   # symmetrize
    a = jnp.minimum(a + jnp.eye(n, dtype=jnp.float32), 1.0)
    dinv = 1.0 / jnp.sqrt(jnp.sum(a, axis=1))
    return a * dinv[:, None] * dinv[None, :]


def reference_forward(feat, w_lin_t, b_lin, adj_bfnn, w1, b1, w2, b2, Q, r):
    """Plain-JAX f32 reference of the same (approximated) forward, one graph at a time."""
    x = feat @ w_lin_t + b_lin
    outs = []
    for b in range(adj_bfnn.shape[0]):
        hs, ss = [], []
        for f in range(NUM_FACTORS):
            a = adj_bfnn[b, f]
            h = a @ (x @ w1[f] + b1[f])
            h = jnp.maximum(h, 0.0)
            h = a @ (h @ w2[f] + b2[f])
            hs.append(h)
            ss.append((jnp.tanh(h @ Q) @ r)[:, 0])
        att = jax.nn.softmax(jnp.stack(ss), axis=0)[..., None]     # (F, N, 1)
        outs.append(jnp.mean(att * jnp.stack(hs), axis=0))         # (N, NOUT)
    return jnp.concatenate(outs, axis=0)


if __name__ == "__main__":
    key = jax.random.PRNGKey(0)
    keys = jax.random.split(key, 16)

    # ---- module parameters (glorot, matching reset_parameter) ----
    feat = glorot(keys[0], (NUM_NODES, NFEAT))                       # self.feat
    w_lin = glorot(keys[1], (NHID, NFEAT))                           # nn.Linear weight (out, in)
    w_lin_t = w_lin.T
    b_lin = 0.1 * jax.random.normal(keys[2], (1, NHID), jnp.float32)
    Q = glorot(keys[3], (NOUT, NHID))                                # self.Q
    r = glorot(keys[4], (NHID, 1))                                   # self.r
    w1 = jnp.stack([glorot(keys[5 + f], (NHID, NHID)) for f in range(NUM_FACTORS)])
    b1 = 0.1 * jax.random.normal(keys[7], (NUM_FACTORS, 1, NHID), jnp.float32)
    w2 = jnp.stack([glorot(keys[8 + f], (NHID, NOUT)) for f in range(NUM_FACTORS)])
    b2 = 0.1 * jax.random.normal(keys[10], (NUM_FACTORS, 1, NOUT), jnp.float32)

    # ---- batch of graphs (independent forward calls): random edge lists -> normalized adj ----
    ekeys = jax.random.split(keys[11], NUM_GRAPHS * NUM_FACTORS * 2)
    adjs, idx = [], 0
    for b in range(NUM_GRAPHS):
        per_f = []
        for f in range(NUM_FACTORS):
            src = jax.random.randint(ekeys[idx], (40,), 0, NUM_NODES); idx += 1
            dst = jax.random.randint(ekeys[idx], (40,), 0, NUM_NODES); idx += 1
            per_f.append(build_norm_adj(jnp.stack([src, dst]), NUM_NODES))
        adjs.append(jnp.stack(per_f))
    adj_bfnn = jnp.stack(adjs)                                       # (B, F, N, N) f32

    # ---- generation-aware tile size ----
    tile_b = pick_tile_b(NUM_GRAPHS)
    num_tiles = NUM_GRAPHS // tile_b
    tbn = tile_b * NUM_NODES

    # ---- host-side hoist: graph-independent first-layer pre-activation, per factor ----
    x_lin = feat @ w_lin_t + b_lin                                           # (N, NHID)
    pre1 = jnp.stack([x_lin @ w1[f] + b1[f] for f in range(NUM_FACTORS)])    # (F, N, NHID)
    pre1_t = jnp.tile(pre1, (1, tile_b, 1)).astype(jnp.bfloat16)             # (F, TBN, NHID)

    # ---- host-side weight prep (bf16 MXU operands, f32 biases) ----
    w2_bf = w2.astype(jnp.bfloat16)                                          # (F, NHID, NOUT)
    q_bf = Q.astype(jnp.bfloat16)                                            # (NOUT, NHID)
    rt = r.T                                                                 # (1, NHID) f32

    # ---- host-side adjacency prep: block-diagonal over each batch tile, bf16 ----
    a5 = adj_bfnn.reshape(num_tiles, tile_b, NUM_FACTORS, NUM_NODES, NUM_NODES)
    eye_tb = jnp.eye(tile_b, dtype=jnp.float32)
    adj_bd = jnp.einsum('pq,tqfij->tfpiqj', eye_tb, a5).reshape(
        num_tiles, NUM_FACTORS, tbn, tbn).astype(jnp.bfloat16)               # (tiles, F, TBN, TBN)

    out = spatial_dilated_conv(pre1_t, w2_bf, b2, q_bf, rt, adj_bd, tile_b=tile_b)
    out = jax.block_until_ready(out)
    assert out.shape == (NUM_GRAPHS * NUM_NODES, NOUT) and out.dtype == jnp.float32

    with jax.default_matmul_precision("highest"):
        ref = reference_forward(feat, w_lin_t, b_lin, adj_bfnn, w1, b1, w2, b2, Q, r)
    max_err = float(jnp.max(jnp.abs(out - ref)))
    # bf16 MXU operands with f32 accumulation: ~3 decimal digits of mantissa headroom at these
    # activation magnitudes (|out| ~ 0.1-0.3), so 2e-2 abs tolerance is comfortable.
    assert max_err < 2e-2, f"kernel/reference mismatch: max abs err = {max_err}"
    print("KERNEL_OK")
</pallas_src>

<mosaic_0001>
module attributes {stable_mosaic.version = 11 : i64} {
  func.func @_spatial_dilated_kernel(%arg0: i32, %arg1: memref<2x256x32xbf16, #tpu.memory_space<vmem>>, %arg2: memref<2x32x32xbf16, #tpu.memory_space<vmem>>, %arg3: memref<2x1x32xf32, #tpu.memory_space<vmem>>, %arg4: memref<32x32xbf16, #tpu.memory_space<vmem>>, %arg5: memref<1x32xf32, #tpu.memory_space<vmem>>, %arg6: memref<1x2x256x256xbf16, #tpu.memory_space<vmem>>, %arg7: memref<256x32xf32, #tpu.memory_space<vmem>>) attributes {dimension_semantics = [#tpu.dimension_semantics<parallel>], iteration_bounds = array<i64: 1>, scalar_prefetch = 0 : i64, scratch_operands = 0 : i64, tpu.core_type = #tpu.core_type<tc>, window_params = [{pipeline_mode = #tpu.pipeline_mode<synchronous>, transform_indices = @transform_0, window_bounds = array<i64: 2, 256, 32>}, {pipeline_mode = #tpu.pipeline_mode<synchronous>, transform_indices = @transform_1, window_bounds = array<i64: 2, 32, 32>}, {pipeline_mode = #tpu.pipeline_mode<synchronous>, transform_indices = @transform_2, window_bounds = array<i64: 2, 1, 32>}, {pipeline_mode = #tpu.pipeline_mode<synchronous>, transform_indices = @transform_3, window_bounds = array<i64: 32, 32>}, {pipeline_mode = #tpu.pipeline_mode<synchronous>, transform_indices = @transform_4, window_bounds = array<i64: 1, 32>}, {transform_indices = @transform_5, window_bounds = array<i64: 1, 2, 256, 256>}, {transform_indices = @transform_6, window_bounds = array<i64: 256, 32>}]} {
    %c0 = arith.constant 0 : index
    %c0_0 = arith.constant 0 : index
    %c0_1 = arith.constant 0 : index
    %c0_2 = arith.constant 0 : index
    %0 = vector.load %arg6[%c0, %c0_0, %c0_1, %c0_2] : memref<1x2x256x256xbf16, #tpu.memory_space<vmem>>, vector<1x1x256x256xbf16>
    %1 = vector.shape_cast %0 : vector<1x1x256x256xbf16> to vector<256x256xbf16>
    %c0_3 = arith.constant 0 : index
    %c1 = arith.constant 1 : index
    %c0_4 = arith.constant 0 : index
    %c0_5 = arith.constant 0 : index
    %2 = vector.load %arg6[%c0_3, %c1, %c0_4, %c0_5] : memref<1x2x256x256xbf16, #tpu.memory_space<vmem>>, vector<1x1x256x256xbf16>
    %3 = vector.shape_cast %2 : vector<1x1x256x256xbf16> to vector<256x256xbf16>
    %c0_6 = arith.constant 0 : index
    %c0_7 = arith.constant 0 : index
    %4 = vector.load %arg4[%c0_6, %c0_7] : memref<32x32xbf16, #tpu.memory_space<vmem>>, vector<32x32xbf16>
    %c0_8 = arith.constant 0 : index
    %c0_9 = arith.constant 0 : index
    %5 = vector.load %arg5[%c0_8, %c0_9] : memref<1x32xf32, #tpu.memory_space<vmem>>, vector<1x32xf32>
    %c0_10 = arith.constant 0 : index
    %c0_11 = arith.constant 0 : index
    %c0_12 = arith.constant 0 : index
    %6 = vector.load %arg1[%c0_10, %c0_11, %c0_12] : memref<2x256x32xbf16, #tpu.memory_space<vmem>>, vector<1x256x32xbf16>
    %7 = vector.shape_cast %6 : vector<1x256x32xbf16> to vector<256x32xbf16>
    %cst = arith.constant dense<0.000000e+00> : vector<256x32xf32>
    %8 = tpu.matmul %1, %7, %cst {dimension_numbers = #tpu.dot_dimension_numbers<[1], [0], [0], [1], [0, 0, 1, 1], [], []>} : vector<256x256xbf16>, vector<256x32xbf16>, vector<256x32xf32> -> vector<256x32xf32>
    %cst_13 = arith.constant 0.000000e+00 : f32
    %9 = vector.broadcast %cst_13 : f32 to vector<256x32xf32>
    %10 = arith.maximumf %8, %9 : vector<256x32xf32>
    %11 = arith.truncf %10 : vector<256x32xf32> to vector<256x32xbf16>
    %c0_14 = arith.constant 0 : index
    %c0_15 = arith.constant 0 : index
    %c0_16 = arith.constant 0 : index
    %12 = vector.load %arg2[%c0_14, %c0_15, %c0_16] : memref<2x32x32xbf16, #tpu.memory_space<vmem>>, vector<1x32x32xbf16>
    %13 = vector.shape_cast %12 : vector<1x32x32xbf16> to vector<32x32xbf16>
    %cst_17 = arith.constant dense<0.000000e+00> : vector<256x32xf32>
    %14 = tpu.matmul %11, %13, %cst_17 {dimension_numbers = #tpu.dot_dimension_numbers<[1], [0], [0], [1], [0, 0, 1, 1], [], []>} : vector<256x32xbf16>, vector<32x32xbf16>, vector<256x32xf32> -> vector<256x32xf32>
    %c0_18 = arith.constant 0 : index
    %c0_19 = arith.constant 0 : index
    %c0_20 = arith.constant 0 : index
    %15 = vector.load %arg3[%c0_18, %c0_19, %c0_20] : memref<2x1x32xf32, #tpu.memory_space<vmem>>, vector<1x1x32xf32>
    %16 = vector.shape_cast %15 : vector<1x1x32xf32> to vector<1x32xf32>
    %17 = vector.broadcast %16 : vector<1x32xf32> to vector<256x32xf32>
    %18 = arith.addf %14, %17 : vector<256x32xf32>
    %19 = arith.truncf %18 : vector<256x32xf32> to vector<256x32xbf16>
    %cst_21 = arith.constant dense<0.000000e+00> : vector<256x32xf32>
    %20 = tpu.matmul %1, %19, %cst_21 {dimension_numbers = #tpu.dot_dimension_numbers<[1], [0], [0], [1], [0, 0, 1, 1], [], []>} : vector<256x256xbf16>, vector<256x32xbf16>, vector<256x32xf32> -> vector<256x32xf32>
    %21 = arith.truncf %20 : vector<256x32xf32> to vector<256x32xbf16>
    %cst_22 = arith.constant dense<0.000000e+00> : vector<256x32xf32>
    %22 = tpu.matmul %21, %4, %cst_22 {dimension_numbers = #tpu.dot_dimension_numbers<[1], [0], [0], [1], [0, 0, 1, 1], [], []>} : vector<256x32xbf16>, vector<32x32xbf16>, vector<256x32xf32> -> vector<256x32xf32>
    %23 = math.tanh %22 : vector<256x32xf32>
    %24 = vector.broadcast %5 : vector<1x32xf32> to vector<256x32xf32>
    %25 = arith.mulf %23, %24 : vector<256x32xf32>
    %cst_23 = arith.constant dense<0.000000e+00> : vector<256xf32>
    %26 = vector.multi_reduction <add>, %25, %cst_23 [1] : vector<256x32xf32> to vector<256xf32>
    %27 = vector.shape_cast %26 : vector<256xf32> to vector<256x1xf32>
    %c1_24 = arith.constant 1 : index
    %c0_25 = arith.constant 0 : index
    %c0_26 = arith.constant 0 : index
    %28 = vector.load %arg1[%c1_24, %c0_25, %c0_26] : memref<2x256x32xbf16, #tpu.memory_space<vmem>>, vector<1x256x32xbf16>
    %29 = vector.shape_cast %28 : vector<1x256x32xbf16> to vector<256x32xbf16>
    %cst_27 = arith.constant dense<0.000000e+00> : vector<256x32xf32>
    %30 = tpu.matmul %3, %29, %cst_27 {dimension_numbers = #tpu.dot_dimension_numbers<[1], [0], [0], [1], [0, 0, 1, 1], [], []>} : vector<256x256xbf16>, vector<256x32xbf16>, vector<256x32xf32> -> vector<256x32xf32>
    %cst_28 = arith.constant 0.000000e+00 : f32
    %31 = vector.broadcast %cst_28 : f32 to vector<256x32xf32>
    %32 = arith.maximumf %30, %31 : vector<256x32xf32>
    %33 = arith.truncf %32 : vector<256x32xf32> to vector<256x32xbf16>
    %c1_29 = arith.constant 1 : index
    %c0_30 = arith.constant 0 : index
    %c0_31 = arith.constant 0 : index
    %34 = vector.load %arg2[%c1_29, %c0_30, %c0_31] : memref<2x32x32xbf16, #tpu.memory_space<vmem>>, vector<1x32x32xbf16>
    %35 = vector.shape_cast %34 : vector<1x32x32xbf16> to vector<32x32xbf16>
    %cst_32 = arith.constant dense<0.000000e+00> : vector<256x32xf32>
    %36 = tpu.matmul %33, %35, %cst_32 {dimension_numbers = #tpu.dot_dimension_numbers<[1], [0], [0], [1], [0, 0, 1, 1], [], []>} : vector<256x32xbf16>, vector<32x32xbf16>, vector<256x32xf32> -> vector<256x32xf32>
    %c1_33 = arith.constant 1 : index
    %c0_34 = arith.constant 0 : index
    %c0_35 = arith.constant 0 : index
    %37 = vector.load %arg3[%c1_33, %c0_34, %c0_35] : memref<2x1x32xf32, #tpu.memory_space<vmem>>, vector<1x1x32xf32>
    %38 = vector.shape_cast %37 : vector<1x1x32xf32> to vector<1x32xf32>
    %39 = vector.broadcast %38 : vector<1x32xf32> to vector<256x32xf32>
    %40 = arith.addf %36, %39 : vector<256x32xf32>
    %41 = arith.truncf %40 : vector<256x32xf32> to vector<256x32xbf16>
    %cst_36 = arith.constant dense<0.000000e+00> : vector<256x32xf32>
    %42 = tpu.matmul %3, %41, %cst_36 {dimension_numbers = #tpu.dot_dimension_numbers<[1], [0], [0], [1], [0, 0, 1, 1], [], []>} : vector<256x256xbf16>, vector<256x32xbf16>, vector<256x32xf32> -> vector<256x32xf32>
    %43 = arith.truncf %42 : vector<256x32xf32> to vector<256x32xbf16>
    %cst_37 = arith.constant dense<0.000000e+00> : vector<256x32xf32>
    %44 = tpu.matmul %43, %4, %cst_37 {dimension_numbers = #tpu.dot_dimension_numbers<[1], [0], [0], [1], [0, 0, 1, 1], [], []>} : vector<256x32xbf16>, vector<32x32xbf16>, vector<256x32xf32> -> vector<256x32xf32>
    %45 = math.tanh %44 : vector<256x32xf32>
    %46 = vector.broadcast %5 : vector<1x32xf32> to vector<256x32xf32>
    %47 = arith.mulf %45, %46 : vector<256x32xf32>
    %cst_38 = arith.constant dense<0.000000e+00> : vector<256xf32>
    %48 = vector.multi_reduction <add>, %47, %cst_38 [1] : vector<256x32xf32> to vector<256xf32>
    %49 = vector.shape_cast %48 : vector<256xf32> to vector<256x1xf32>
    %50 = arith.subf %27, %49 : vector<256x1xf32>
    %cst_39 = arith.constant 0.000000e+00 : f32
    %51 = vector.broadcast %cst_39 : f32 to vector<256x1xf32>
    %52 = arith.subf %51, %50 : vector<256x1xf32>
    %53 = math.exp %52 : vector<256x1xf32>
    %cst_40 = arith.constant 1.000000e+00 : f32
    %54 = vector.broadcast %cst_40 : f32 to vector<256x1xf32>
    %55 = arith.addf %54, %53 : vector<256x1xf32>
    %56 = tpu.reciprocal %55 {approx = true} : vector<256x1xf32> -> vector<256x1xf32>
    %cst_41 = arith.constant 5.000000e-01 : f32
    %57 = vector.broadcast %cst_41 : f32 to vector<256x1xf32>
    %58 = arith.mulf %57, %56 : vector<256x1xf32>
    %59 = vector.broadcast %58 : vector<256x1xf32> to vector<256x32xf32>
    %60 = arith.mulf %59, %20 : vector<256x32xf32>
    %cst_42 = arith.constant 5.000000e-01 : f32
    %61 = vector.broadcast %cst_42 : f32 to vector<256x1xf32>
    %62 = arith.subf %61, %58 : vector<256x1xf32>
    %63 = vector.broadcast %62 : vector<256x1xf32> to vector<256x32xf32>
    %64 = arith.mulf %63, %42 : vector<256x32xf32>
    %65 = arith.addf %60, %64 : vector<256x32xf32>
    %c0_43 = arith.constant 0 : index
    %c0_44 = arith.constant 0 : index
    %66 = vector.load %arg7[%c0_43, %c0_44] : memref<256x32xf32, #tpu.memory_space<vmem>>, vector<256x32xf32>
    tpu.vector_store %arg7[%c0_43, %c0_44], %65 {strides = array<i32>} : memref<256x32xf32, #tpu.memory_space<vmem>>, vector<256x32xf32>,
    return
  }
  func.func @transform_0(%arg0: i32) -> (i32, i32, i32) {
    %c0_i32 = arith.constant 0 : i32
    %c0_i32_0 = arith.constant 0 : i32
    %c0_i32_1 = arith.constant 0 : i32
    %c0_i32_2 = arith.constant 0 : i32
    return %c0_i32, %c0_i32_0, %c0_i32_1 : i32, i32, i32
  }
  func.func @transform_1(%arg0: i32) -> (i32, i32, i32) {
    %c0_i32 = arith.constant 0 : i32
    %c0_i32_0 = arith.constant 0 : i32
    %c0_i32_1 = arith.constant 0 : i32
    %c0_i32_2 = arith.constant 0 : i32
    return %c0_i32, %c0_i32_0, %c0_i32_1 : i32, i32, i32
  }
  func.func @transform_2(%arg0: i32) -> (i32, i32, i32) {
    %c0_i32 = arith.constant 0 : i32
    %c0_i32_0 = arith.constant 0 : i32
    %c0_i32_1 = arith.constant 0 : i32
    %c0_i32_2 = arith.constant 0 : i32
    return %c0_i32, %c0_i32_0, %c0_i32_1 : i32, i32, i32
  }
  func.func @transform_3(%arg0: i32) -> (i32, i32) {
    %c0_i32 = arith.constant 0 : i32
    %c0_i32_0 = arith.constant 0 : i32
    %c0_i32_1 = arith.constant 0 : i32
    return %c0_i32, %c0_i32_0 : i32, i32
  }
  func.func @transform_4(%arg0: i32) -> (i32, i32) {
    %c0_i32 = arith.constant 0 : i32
    %c0_i32_0 = arith.constant 0 : i32
    %c0_i32_1 = arith.constant 0 : i32
    return %c0_i32, %c0_i32_0 : i32, i32
  }
  func.func @transform_5(%arg0: i32) -> (i32, i32, i32, i32) {
    %c0_i32 = arith.constant 0 : i32
    %c0_i32_0 = arith.constant 0 : i32
    %c0_i32_1 = arith.constant 0 : i32
    %c0_i32_2 = arith.constant 0 : i32
    return %arg0, %c0_i32, %c0_i32_0, %c0_i32_1 : i32, i32, i32, i32
  }
  func.func @transform_6(%arg0: i32) -> (i32, i32) {
    %c0_i32 = arith.constant 0 : i32
    %c0_i32_0 = arith.constant 0 : i32
    return %arg0, %c0_i32 : i32, i32
  }
}

</mosaic_0001>

<bundles_post_ra>
// kernel: tpu_custom_call.1
= control target key start
LH: loop header
LB: loop body
LE: loop exit
PB: predicated region body
PF: predicated region fallthrough
CT: control target
= control target key end

     0   :  { %11 = vsyncpa [#allocation3], 0  ;;  %s4422_s21 = smov [#allocation2]   ;;  %s5543_s0 = inlined_call_operand.vmem [shape: bf16[2,256,32], index: 0, kind: input, shape index: {}]   ;;  %s5544_s1 = inlined_call_operand.vmem [shape: bf16[2,32,32], index: 1, kind: input, shape index: {}]   ;;  %s5545_s2 = inlined_call_operand.vmem [shape: f32[2,1,32], index: 2, kind: input, shape index: {}]   ;;  %s5546_s3 = inlined_call_operand.vmem [shape: bf16[32,32], index: 3, kind: input, shape index: {}]   ;;  %s5547_s4 = inlined_call_operand.vmem [shape: f32[1,32], index: 4, kind: input, shape index: {}]   ;;  %s5548_s5 = inlined_call_operand.hbm [shape: bf16[1,2,256,256], index: 5, kind: input, shape index: {}]   ;;  %s5549_s6 = inlined_call_operand.vmem [shape: f32[256,32], index: 6, kind: output, shape index: {}]  }
   0x1   :  { %s27_s22 = sshll.u32 %s4422_s21, 4  ;;  %s28_s22 = int_to_ptr.vmem [resolvable:$true] %s27_s22 }
   0x2   :  { %s4408_s23 = scalar_lea.vmem %s28_s22, 8192  ;;  %p4413_p1 = scmp.lt.s32.totalorder %s28_s22, %s28_s22 }
   0x3   :  { %p4409_p0 = scmp.ne.s32.totalorder %s28_s22, %s4408_s23  ;;  %p4414_p2 = scmp.lt.s32.totalorder %s4408_s23, %s4408_s23 }
   0x5   :  { %p4415_p3 = por %p4414_p2, %p4413_p1 }
   0x7   :  { %p4416_p4 = pnand %p4415_p3, %p4409_p0 }
   0x9   :  { %4419 = shalt.err (!%p4416_p4)
}
   0xa   :  { %s4423_s24 = smov 128   ;;  %s4424_s25 = smov 8  }
   0xb   :  { %33 = dma.hbm_to_vmem [thread:$0]  %s5548_s5, 8192, %s28_s22, [#allocation3], %s4423_s24, %s4423_s24, %s4424_s25  }
   0xc   :  { %4420 = dma.done.wait [#allocation3], 8192  }
   0xd   :  { %4421 = vsyncadd [#allocation3], 4294959104  ;;  %v3978_v0 = vld [vmem:[%s5543_s0 + $0x78] sm:$0xff]   ;;  %v3980_v2 = vld [vmem:[%s5543_s0 + $0x70] sm:$0xff]   ;;  %vm628_vm0 = vcmask 261120  }
   0xe   :  { %v3979_v1 = vld [vmem:[%s5543_s0 + $0x38] sm:$0xff]   ;;  %3307 = vmatprep.subr.bf16.mxu0 %v3978_v0  ;;  %v3981_v3 = vld [vmem:[%s5543_s0 + $0x30] sm:$0xff]   ;;  %v3982_v4 = vld [vmem:[%s5543_s0 + $0x68] sm:$0xff]  }
   0xf   :  { %3308 = vmatpush3.bf16.msra.mxu0 %v3979_v1  ;;  %v3983_v5 = vld [vmem:[%s5543_s0 + $0x28] sm:$0xff]   ;;  %v3984_v6 = vld [vmem:[%s5543_s0 + $0x60] sm:$0xff]   ;;  %v3986_v8 = vld [vmem:[%s5543_s0 + $0x58] sm:$0xff]  }
  0x10   :  { %3309 = vmatprep.subr.bf16.mxu0 %v3980_v2  ;;  %v3985_v7 = vld [vmem:[%s5543_s0 + $0x20] sm:$0xff]   ;;  %v3987_v9 = vld [vmem:[%s5543_s0 + $0x18] sm:$0xff]   ;;  %v3988_v10 = vld [vmem:[%s5543_s0 + $0x50] sm:$0xff]  }
  0x11   :  { %v4496_v11 = vld [vmem:[#allocation2 + $0x4] ss:$8 sps:$4 sm:$0xff]   ;;  %v3989_v12 = vld [vmem:[%s5543_s0 + $0x10] sm:$0xff]   ;;  %v4514_v17 = vld [vmem:[#allocation2] ss:$8 sps:$4 sm:$0xff]  }
  0x12   :  { %428 = vmatprep.mubr.bf16.mxu0 %v4496_v11  ;;  %v3990_v13 = vld [vmem:[%s5543_s0 + $0x48] sm:$0xff]   ;;  %v3992_v15 = vld [vmem:[%s5543_s0 + $0x40] sm:$0xff]   ;;  %v4516_v18 = vld [vmem:[#allocation2 + $0x14] ss:$8 sps:$4 sm:$0xff]  }
  0x13   :  { %3310 = vmatpush3.bf16.msra.mxu0 %v3981_v3  ;;  %v3991_v14 = vld [vmem:[%s5543_s0 + $0x8] sm:$0xff]   ;;  %v3993_v16 = vld [vmem:[%s5543_s0] sm:$0xff]   ;;  %v4520_v19 = vld [vmem:[#allocation2 + $0x10] ss:$8 sps:$4 sm:$0xff]  }
  0x14   :  { %3311 = vmatprep.subr.bf16.mxu0 %v3982_v4  ;;  %v4522_v20 = vld [vmem:[#allocation2 + $0x24] ss:$8 sps:$4 sm:$0xff]   ;;  %v4526_v21 = vld [vmem:[#allocation2 + $0x20] ss:$8 sps:$4 sm:$0xff]   ;;  %v4528_v22 = vld [vmem:[#allocation2 + $0x34] ss:$8 sps:$4 sm:$0xff]  }
  0x15   :  { %v4532_v23 = vld [vmem:[#allocation2 + $0x30] ss:$8 sps:$4 sm:$0xff]   ;;  %v4534_v24 = vld [vmem:[#allocation2 + $0x44] ss:$8 sps:$4 sm:$0xff]   ;;  %v4538_v25 = vld [vmem:[#allocation2 + $0x40] ss:$8 sps:$4 sm:$0xff]  }
  0x16   :  { %v4540_v26 = vld [vmem:[#allocation2 + $0x54] ss:$8 sps:$4 sm:$0xff]   ;;  %v4544_v27 = vld [vmem:[#allocation2 + $0x50] ss:$8 sps:$4 sm:$0xff]   ;;  %v4546_v28 = vld [vmem:[#allocation2 + $0x64] ss:$8 sps:$4 sm:$0xff]  }
  0x17   :  { %3312 = vmatpush3.bf16.msra.mxu0 %v3983_v5  ;;  %v4550_v29 = vld [vmem:[#allocation2 + $0x60] ss:$8 sps:$4 sm:$0xff]   ;;  %v4552_v30 = vld [vmem:[#allocation2 + $0x74] ss:$8 sps:$4 sm:$0xff]   ;;  %v4556_v31 = vld [vmem:[#allocation2 + $0x70] ss:$8 sps:$4 sm:$0xff]  }
  0x18   :  { %3313 = vmatprep.subr.bf16.mxu0 %v3984_v6  ;;  %v4558_v32 = vld [vmem:[#allocation2 + $0x84] ss:$8 sps:$4 sm:$0xff]   ;;  %v4562_v33 = vld [vmem:[#allocation2 + $0x80] ss:$8 sps:$4 sm:$0xff]   ;;  %v4564_v34 = vld [vmem:[#allocation2 + $0x94] ss:$8 sps:$4 sm:$0xff]  }
  0x19   :  { %v4568_v35 = vld [vmem:[#allocation2 + $0x90] ss:$8 sps:$4 sm:$0xff]   ;;  %v4570_v36 = vld [vmem:[#allocation2 + $0xa4] ss:$8 sps:$4 sm:$0xff]   ;;  %v4577_v38 = vld [vmem:[#allocation2 + $0xa0] ss:$8 sps:$4 sm:$0xff]  }
  0x1a   :  { %v4042_v37 = vld [vmem:[%s5544_s1 + $0x8] sm:$0xff]   ;;  %5600 = vst [vmem:[#allocation5_spill] sm:$0xff] %v4577_v38  ;;  %v4579_v39 = vld [vmem:[#allocation2 + $0xb4] ss:$8 sps:$4 sm:$0xff]   ;;  %v4043_v40 = vld [vmem:[%s5544_s1] sm:$0xff]  }
  0x1b   :  { %3314 = vmatpush3.bf16.msra.mxu0 %v3985_v7  ;;  %5601 = vst [vmem:[#allocation6_spill] sm:$0xff] %v4579_v39  ;;  %3827 = vmatprep.subr.bf16.mxu1 %v4042_v37  ;;  %v4586_v41 = vld [vmem:[#allocation2 + $0xb0] ss:$8 sps:$4 sm:$0xff]   ;;  %v4588_v42 = vld [vmem:[#allocation2 + $0xc4] ss:$8 sps:$4 sm:$0xff]  }
  0x1c   :  { %3315 = vmatprep.subr.bf16.mxu0 %v3986_v8  ;;  %3828 = vmatpush3.bf16.msra.mxu1 %v4042_v37  ;;  %5602 = vst [vmem:[#allocation7_spill] sm:$0xff] %v4586_v41  ;;  %5603 = vst [vmem:[#allocation8_spill] sm:$0xff] %v4588_v42  ;;  %v4592_v43 = vld [vmem:[#allocation2 + $0xc0] ss:$8 sps:$4 sm:$0xff]   ;;  %v4594_v44 = vld [vmem:[#allocation2 + $0xd4] ss:$8 sps:$4 sm:$0xff]  }
  0x1d   :  { %3829 = vmatprep.subr.bf16.mxu1 %v4043_v40  ;;  %5604 = vst [vmem:[#allocation9_spill] sm:$0xff] %v4592_v43  ;;  %5605 = vst [vmem:[#allocation10_spill] sm:$0xff] %v4594_v44  ;;  %v4598_v45 = vld [vmem:[#allocation2 + $0xd0] ss:$8 sps:$4 sm:$0xff]   ;;  %v4600_v46 = vld [vmem:[#allocation2 + $0xe4] ss:$8 sps:$4 sm:$0xff]  }
  0x1e   :  { %5606 = vst [vmem:[#allocation11_spill] sm:$0xff] %v4598_v45  ;;  %5607 = vst [vmem:[#allocation12_spill] sm:$0xff] %v4600_v46  ;;  %v4604_v47 = vld [vmem:[#allocation2 + $0xe0] ss:$8 sps:$4 sm:$0xff]   ;;  %v4606_v48 = vld [vmem:[#allocation2 + $0xf4] ss:$8 sps:$4 sm:$0xff]  }
  0x1f   :  { %3316 = vmatpush3.bf16.msra.mxu0 %v3987_v9  ;;  %5608 = vst [vmem:[#allocation13_spill] sm:$0xff] %v4604_v47  ;;  %5609 = vst [vmem:[#allocation14_spill] sm:$0xff] %v4606_v48  ;;  %v4610_v49 = vld [vmem:[#allocation2 + $0xf0] ss:$8 sps:$4 sm:$0xff]  }
  0x20   :  { %3317 = vmatprep.subr.bf16.mxu0 %v3988_v10  ;;  %3830 = vmatpush3.bf16.msra.mxu1 %v4043_v40  ;;  %5610 = vst [vmem:[#allocation15_spill] sm:$0xff] %v4610_v49 }
  0x23   :  { %3318 = vmatpush3.bf16.msra.mxu0 %v3989_v12 }
  0x24   :  { %3319 = vmatprep.subr.bf16.mxu0 %v3990_v13 }
  0x27   :  { %3320 = vmatpush3.bf16.msra.mxu0 %v3991_v14 }
  0x28   :  { %3321 = vmatprep.subr.bf16.mxu0 %v3992_v15 }
  0x2b   :  { %3322 = vmatpush3.bf16.msra.mxu0 %v3993_v16 }
  0x2e   :  { %429 = vmatmul.mubr.bf16.vlgmr.msra.gmra.mxu0 %v4514_v17 }
  0x2f   :  { %436 = vmatprep.mubr.bf16.mxu0 %v4516_v18 }
  0x36   :  { %437 = vmatmul.mubr.bf16.gmra.mxu0 %v4520_v19 }
  0x37   :  { %444 = vmatprep.mubr.bf16.mxu0 %v4522_v20 }
  0x3e   :  { %445 = vmatmul.mubr.bf16.gmra.mxu0 %v4526_v21 }
  0x3f   :  { %452 = vmatprep.mubr.bf16.mxu0 %v4528_v22 }
  0x46   :  { %453 = vmatmul.mubr.bf16.gmra.mxu0 %v4532_v23 }
  0x47   :  { %460 = vmatprep.mubr.bf16.mxu0 %v4534_v24 }
  0x4e   :  { %461 = vmatmul.mubr.bf16.gmra.mxu0 %v4538_v25 }
  0x4f   :  { %468 = vmatprep.mubr.bf16.mxu0 %v4540_v26 }
  0x56   :  { %469 = vmatmul.mubr.bf16.gmra.mxu0 %v4544_v27 }
  0x57   :  { %476 = vmatprep.mubr.bf16.mxu0 %v4546_v28 }
  0x5e   :  { %477 = vmatmul.mubr.bf16.gmra.mxu0 %v4550_v29 }
  0x5f   :  { %484 = vmatprep.mubr.bf16.mxu0 %v4552_v30 }
  0x66   :  { %485 = vmatmul.mubr.bf16.gmra.mxu0 %v4556_v31 }
  0x67   :  { %492 = vmatprep.mubr.bf16.mxu0 %v4558_v32 }
  0x6e   :  { %493 = vmatmul.mubr.bf16.gmra.mxu0 %v4562_v33 }
  0x6f   :  { %500 = vmatprep.mubr.bf16.mxu0 %v4564_v34 }
  0x76   :  { %501 = vmatmul.mubr.bf16.gmra.mxu0 %v4568_v35 }
  0x77   :  { %508 = vmatprep.mubr.bf16.mxu0 %v4570_v36 }
  0x7e   :  { %509 = vmatmul.mubr.bf16.gmra.mxu0 %v4577_v38 }
  0x7f   :  { %516 = vmatprep.mubr.bf16.mxu0 %v4579_v39 }
  0x86   :  { %517 = vmatmul.mubr.bf16.gmra.mxu0 %v4586_v41 }
  0x87   :  { %524 = vmatprep.mubr.bf16.mxu0 %v4588_v42 }
  0x8e   :  { %525 = vmatmul.mubr.bf16.gmra.mxu0 %v4592_v43 }
  0x8f   :  { %532 = vmatprep.mubr.bf16.mxu0 %v4594_v44 }
  0x96   :  { %533 = vmatmul.mubr.bf16.gmra.mxu0 %v4598_v45 }
  0x97   :  { %540 = vmatprep.mubr.bf16.mxu0 %v4600_v46 }
  0x9e   :  { %541 = vmatmul.mubr.bf16.gmra.mxu0 %v4604_v47 }
  0x9f   :  { %548 = vmatprep.mubr.bf16.mxu0 %v4606_v48 }
  0xa6   :  { %549 = vmatmul.mubr.bf16.gmra.mxu0 %v4610_v49 }
  0xee   :  { %v3323_v50 = vpop.f32.mrf.mxu0 }
  0xf0   :  { %v3324_v51 = vpop.f32.mrf.mxu0 }
  0xf1   :  { %v3325_v53 = vadd.f32 %v3324_v51, %v3323_v50 }
  0xf2   :  { %v3326_v52 = vpop.f32.mrf.mxu0 }
  0xf3   :  { %v557_v57 = vmax.f32 %v3325_v53, 0.0 }
  0xf4   :  { %v3327_v54 = vpop.f32.mrf.mxu0 }
  0xf5   :  { %v3328_v55 = vadd.f32 %v3327_v54, %v3326_v52 }
  0xf6   :  { %v3329_v56 = vpop.f32.mrf.mxu0 }
  0xf7   :  { %v558_v58 = vmax.f32 %v3328_v55, 0.0 }
  0xf8   :  { %v3330_v59 = vpop.f32.mrf.mxu0 }
  0xf9   :  { %v589_v60 = vpack.c.bf16 %v558_v58, %v557_v57  ;;  %v3331_v62 = vadd.f32 %v3330_v59, %v3329_v56 }
  0xfa   :  { %v3332_v61 = vpop.f32.mrf.mxu0 }
  0xfb   :  { %3831 = vmatprep.mubr.msk.bf16.mxu1 %vm628_vm0, %v589_v60  ;;  %v559_v2 = vmax.f32 %v3331_v62, 0.0 }
  0xfc   :  { %v3333_v63 = vpop.f32.mrf.mxu0 }
  0xfd   :  { %v3334_v0 = vadd.f32 %v3333_v63, %v3332_v61 }
  0xfe   :  { %v3335_v1 = vpop.f32.mrf.mxu0 }
  0xff   :  { %v560_v3 = vmax.f32 %v3334_v0, 0.0 }
 0x100   :  { %v3336_v4 = vpop.f32.mrf.mxu0 }
 0x101   :  { %v590_v5 = vpack.c.bf16 %v560_v3, %v559_v2  ;;  %v3337_v7 = vadd.f32 %v3336_v4, %v3335_v1 }
 0x102   :  { %v3338_v6 = vpop.f32.mrf.mxu0 }
 0x103   :  { %3832 = vmatmul.mubr.msk.bf16.vlgmr.msra.gmra.mxu1 %vm628_vm0, %v590_v5  ;;  %v561_v12 = vmax.f32 %v3337_v7, 0.0 }
 0x104   :  { %v3339_v8 = vpop.f32.mrf.mxu0 }
 0x105   :  { %v3340_v9 = vadd.f32 %v3339_v8, %v3338_v6 }
 0x106   :  { %v3341_v10 = vpop.f32.mrf.mxu0 }
 0x107   :  { %v562_v13 = vmax.f32 %v3340_v9, 0.0 }
 0x108   :  { %v3342_v14 = vpop.f32.mrf.mxu0 }
 0x109   :  { %v591_v15 = vpack.c.bf16 %v562_v13, %v561_v12  ;;  %v3343_v37 = vadd.f32 %v3342_v14, %v3341_v10 }
 0x10a   :  { %v3344_v16 = vpop.f32.mrf.mxu0 }
 0x10b   :  { %3835 = vmatprep.mubr.msk.bf16.mxu1 %vm628_vm0, %v591_v15  ;;  %v563_v52 = vmax.f32 %v3343_v37, 0.0 }
 0x10c   :  { %v3345_v40 = vpop.f32.mrf.mxu0 }
 0x10d   :  { %v3346_v50 = vadd.f32 %v3345_v40, %v3344_v16 }
 0x10e   :  { %v3347_v51 = vpop.f32.mrf.mxu0 }
 0x10f   :  { %v564_v53 = vmax.f32 %v3346_v50, 0.0 }
 0x110   :  { %v3348_v54 = vpop.f32.mrf.mxu0 }
 0x111   :  { %v592_v55 = vpack.c.bf16 %v564_v53, %v563_v52  ;;  %v3349_v57 = vadd.f32 %v3348_v54, %v3347_v51 }
 0x112   :  { %v3350_v56 = vpop.f32.mrf.mxu0 }
 0x113   :  { %3836 = vmatmul.mubr.msk.bf16.gmra.mxu1 %vm628_vm0, %v592_v55  ;;  %v565_v61 = vmax.f32 %v3349_v57, 0.0 }
 0x114   :  { %v3351_v58 = vpop.f32.mrf.mxu0 }
 0x115   :  { %v3352_v59 = vadd.f32 %v3351_v58, %v3350_v56 }
 0x116   :  { %v3353_v60 = vpop.f32.mrf.mxu0 }
 0x117   :  { %v566_v62 = vmax.f32 %v3352_v59, 0.0 }
 0x118   :  { %v3354_v63 = vpop.f32.mrf.mxu0 }
 0x119   :  { %v593_v0 = vpack.c.bf16 %v566_v62, %v565_v61  ;;  %v3355_v2 = vadd.f32 %v3354_v63, %v3353_v60 }
 0x11a   :  { %v3356_v1 = vpop.f32.mrf.mxu0 }
 0x11b   :  { %3839 = vmatprep.mubr.msk.bf16.mxu1 %vm628_vm0, %v593_v0  ;;  %v567_v6 = vmax.f32 %v3355_v2, 0.0 }
 0x11c   :  { %v3357_v3 = vpop.f32.mrf.mxu0 }
 0x11d   :  { %v3358_v4 = vadd.f32 %v3357_v3, %v3356_v1 }
 0x11e   :  { %v3359_v5 = vpop.f32.mrf.mxu0 }
 0x11f   :  { %v568_v7 = vmax.f32 %v3358_v4, 0.0 }
 0x120   :  { %v3360_v8 = vpop.f32.mrf.mxu0 }
 0x121   :  { %v594_v9 = vpack.c.bf16 %v568_v7, %v567_v6  ;;  %v3361_v12 = vadd.f32 %v3360_v8, %v3359_v5 }
 0x122   :  { %v3362_v10 = vpop.f32.mrf.mxu0 }
 0x123   :  { %3840 = vmatmul.mubr.msk.bf16.gmra.mxu1 %vm628_vm0, %v594_v9  ;;  %v569_v16 = vmax.f32 %v3361_v12, 0.0 }
 0x124   :  { %v3363_v13 = vpop.f32.mrf.mxu0 }
 0x125   :  { %v3364_v14 = vadd.f32 %v3363_v13, %v3362_v10 }
 0x126   :  { %v3365_v15 = vpop.f32.mrf.mxu0 }
 0x127   :  { %v570_v37 = vmax.f32 %v3364_v14, 0.0 }
 0x128   :  { %v3366_v40 = vpop.f32.mrf.mxu0 }
 0x129   :  { %v595_v50 = vpack.c.bf16 %v570_v37, %v569_v16  ;;  %v3367_v52 = vadd.f32 %v3366_v40, %v3365_v15 }
 0x12a   :  { %v3368_v51 = vpop.f32.mrf.mxu0 }
 0x12b   :  { %3843 = vmatprep.mubr.msk.bf16.mxu1 %vm628_vm0, %v595_v50  ;;  %v571_v56 = vmax.f32 %v3367_v52, 0.0 }
 0x12c   :  { %v3369_v53 = vpop.f32.mrf.mxu0 }
 0x12d   :  { %v3370_v54 = vadd.f32 %v3369_v53, %v3368_v51 }
 0x12e   :  { %v3371_v55 = vpop.f32.mrf.mxu0 }
 0x12f   :  { %v572_v57 = vmax.f32 %v3370_v54, 0.0 }
 0x130   :  { %v3372_v58 = vpop.f32.mrf.mxu0 }
 0x131   :  { %v596_v59 = vpack.c.bf16 %v572_v57, %v571_v56  ;;  %v3373_v61 = vadd.f32 %v3372_v58, %v3371_v55 }
 0x132   :  { %v3374_v60 = vpop.f32.mrf.mxu0 }
 0x133   :  { %3844 = vmatmul.mubr.msk.bf16.gmra.mxu1 %vm628_vm0, %v596_v59  ;;  %v573_v1 = vmax.f32 %v3373_v61, 0.0 }
 0x134   :  { %v3375_v62 = vpop.f32.mrf.mxu0 }
 0x135   :  { %v3376_v63 = vadd.f32 %v3375_v62, %v3374_v60 }
 0x136   :  { %v3377_v0 = vpop.f32.mrf.mxu0 }
 0x137   :  { %v574_v2 = vmax.f32 %v3376_v63, 0.0 }
 0x138   :  { %v3378_v3 = vpop.f32.mrf.mxu0 }
 0x139   :  { %v597_v4 = vpack.c.bf16 %v574_v2, %v573_v1  ;;  %v3379_v6 = vadd.f32 %v3378_v3, %v3377_v0 }
 0x13a   :  { %v3380_v5 = vpop.f32.mrf.mxu0 }
 0x13b   :  { %3847 = vmatprep.mubr.msk.bf16.mxu1 %vm628_vm0, %v597_v4  ;;  %v575_v10 = vmax.f32 %v3379_v6, 0.0 }
 0x13c   :  { %v3381_v7 = vpop.f32.mrf.mxu0 }
 0x13d   :  { %v3382_v8 = vadd.f32 %v3381_v7, %v3380_v5 }
 0x13e   :  { %v3383_v9 = vpop.f32.mrf.mxu0 }
 0x13f   :  { %v576_v12 = vmax.f32 %v3382_v8, 0.0 }
 0x140   :  { %v3384_v13 = vpop.f32.mrf.mxu0 }
 0x141   :  { %v598_v14 = vpack.c.bf16 %v576_v12, %v575_v10  ;;  %v3385_v16 = vadd.f32 %v3384_v13, %v3383_v9 }
 0x142   :  { %v3386_v15 = vpop.f32.mrf.mxu0 }
 0x143   :  { %3848 = vmatmul.mubr.msk.bf16.gmra.mxu1 %vm628_vm0, %v598_v14  ;;  %v577_v51 = vmax.f32 %v3385_v16, 0.0 }
 0x144   :  { %v3387_v37 = vpop.f32.mrf.mxu0 }
 0x145   :  { %v3388_v40 = vadd.f32 %v3387_v37, %v3386_v15 }
 0x146   :  { %v3389_v50 = vpop.f32.mrf.mxu0 }
 0x147   :  { %v578_v52 = vmax.f32 %v3388_v40, 0.0 }
 0x148   :  { %v3390_v53 = vpop.f32.mrf.mxu0 }
 0x149   :  { %v599_v54 = vpack.c.bf16 %v578_v52, %v577_v51  ;;  %v3391_v56 = vadd.f32 %v3390_v53, %v3389_v50 }
 0x14a   :  { %v3392_v55 = vpop.f32.mrf.mxu0 }
 0x14b   :  { %3851 = vmatprep.mubr.msk.bf16.mxu1 %vm628_vm0, %v599_v54  ;;  %v579_v60 = vmax.f32 %v3391_v56, 0.0 }
 0x14c   :  { %v3393_v57 = vpop.f32.mrf.mxu0 }
 0x14d   :  { %v3394_v58 = vadd.f32 %v3393_v57, %v3392_v55 }
 0x14e   :  { %v3395_v59 = vpop.f32.mrf.mxu0 }
 0x14f   :  { %v580_v61 = vmax.f32 %v3394_v58, 0.0 }
 0x150   :  { %v3396_v62 = vpop.f32.mrf.mxu0 }
 0x151   :  { %v600_v63 = vpack.c.bf16 %v580_v61, %v579_v60  ;;  %v3397_v1 = vadd.f32 %v3396_v62, %v3395_v59 }
 0x152   :  { %v3398_v0 = vpop.f32.mrf.mxu0 }
 0x153   :  { %3852 = vmatmul.mubr.msk.bf16.gmra.mxu1 %vm628_vm0, %v600_v63  ;;  %v581_v5 = vmax.f32 %v3397_v1, 0.0 }
 0x154   :  { %v3399_v2 = vpop.f32.mrf.mxu0 }
 0x155   :  { %v3400_v3 = vadd.f32 %v3399_v2, %v3398_v0 }
 0x156   :  { %v3401_v4 = vpop.f32.mrf.mxu0 }
 0x157   :  { %v582_v6 = vmax.f32 %v3400_v3, 0.0  ;;  %v4633_v3 = vld [vmem:[%s5545_s2] ss:$0 sm:$0xff] }
 0x158   :  { %v3402_v7 = vpop.f32.mrf.mxu0 }
 0x159   :  { %v601_v8 = vpack.c.bf16 %v582_v6, %v581_v5  ;;  %v3403_v10 = vadd.f32 %v3402_v7, %v3401_v4 }
 0x15a   :  { %v3404_v9 = vpop.f32.mrf.mxu0 }
 0x15b   :  { %3855 = vmatprep.mubr.msk.bf16.mxu1 %vm628_vm0, %v601_v8  ;;  %v583_v15 = vmax.f32 %v3403_v10, 0.0 }
 0x15c   :  { %v3405_v12 = vpop.f32.mrf.mxu0 }
 0x15d   :  { %v3406_v13 = vadd.f32 %v3405_v12, %v3404_v9 }
 0x15e   :  { %v3407_v14 = vpop.f32.mrf.mxu0 }
 0x15f   :  { %v584_v16 = vmax.f32 %v3406_v13, 0.0 }
 0x160   :  { %v3408_v37 = vpop.f32.mrf.mxu0 }
 0x161   :  { %v602_v40 = vpack.c.bf16 %v584_v16, %v583_v15  ;;  %v3409_v51 = vadd.f32 %v3408_v37, %v3407_v14 }
 0x162   :  { %v3410_v50 = vpop.f32.mrf.mxu0 }
 0x163   :  { %3856 = vmatmul.mubr.msk.bf16.gmra.mxu1 %vm628_vm0, %v602_v40  ;;  %v585_v55 = vmax.f32 %v3409_v51, 0.0 }
 0x164   :  { %v3411_v52 = vpop.f32.mrf.mxu0 }
 0x165   :  { %v3412_v53 = vadd.f32 %v3411_v52, %v3410_v50 }
 0x166   :  { %v3413_v54 = vpop.f32.mrf.mxu0 }
 0x167   :  { %v586_v56 = vmax.f32 %v3412_v53, 0.0 }
 0x168   :  { %v3414_v57 = vpop.f32.mrf.mxu0 }
 0x169   :  { %v603_v58 = vpack.c.bf16 %v586_v56, %v585_v55  ;;  %v3415_v60 = vadd.f32 %v3414_v57, %v3413_v54 }
 0x16a   :  { %v3416_v59 = vpop.f32.mrf.mxu0 }
 0x16b   :  { %3859 = vmatprep.mubr.msk.bf16.mxu1 %vm628_vm0, %v603_v58  ;;  %v587_v63 = vmax.f32 %v3415_v60, 0.0 }
 0x16c   :  { %v3417_v61 = vpop.f32.mrf.mxu0 }
 0x16d   :  { %v3418_v62 = vadd.f32 %v3417_v61, %v3416_v59 }
 0x16f   :  { %v588_v0 = vmax.f32 %v3418_v62, 0.0 }
 0x171   :  { %v604_v1 = vpack.c.bf16 %v588_v0, %v587_v63 }
 0x173   :  { %3860 = vmatmul.mubr.msk.bf16.gmra.mxu1 %vm628_vm0, %v604_v1 }
 0x174   :  { %886 = vmatprep.mubr.bf16.mxu1 %v4496_v11 }
 0x1c3   :  { %v3833_v2 = vpop.f32.mrf.mxu1 }
 0x1c4   :  { %v4638_v6 = vadd.f32 %v3833_v2, %v4633_v3 }
 0x1c5   :  { %v4635_v4 = vpop.f32.mrf.mxu1 }
 0x1c7   :  { %v3834_v5 = vpop.f32.mrf.mxu1 }
 0x1c8   :  { %v4641_v7 = vadd.f32 %v3834_v5, %v4633_v3 }
 0x1c9   :  { %v4645_v9 = vpop.f32.mrf.mxu1 }
 0x1d3   :  { %v3837_v11 = vpop.f32.mrf.mxu1 }
 0x1d4   :  { %v4650_v13 = vadd.f32 %v3837_v11, %v4633_v3 }
 0x1d5   :  { %v4647_v10 = vpop.f32.mrf.mxu1 }
 0x1d7   :  { %v3838_v12 = vpop.f32.mrf.mxu1 }
 0x1d8   :  { %v4653_v14 = vadd.f32 %v3838_v12, %v4633_v3 }
 0x1d9   :  { %v4657_v16 = vpop.f32.mrf.mxu1 }
 0x1e3   :  { %v3841_v37 = vpop.f32.mrf.mxu1 }
 0x1e5   :  { %v743_v40 = vpop.f32.mrf.mxu1 }
 0x1e7   :  { %v3842_v50 = vpop.f32.mrf.mxu1 }
 0x1e9   :  { %v746_v51 = vpop.f32.mrf.mxu1 }
 0x1f3   :  { %v3845_v52 = vpop.f32.mrf.mxu1 }
 0x1f4   :  { %v768_v47 = vadd.f32 %v3845_v52, %v4633_v3  ;;  %v755_v52 = vadd.f32 %v3842_v50, %v4633_v3  ;;  %v731_v50 = vadd.f32 %v4633_v3, %v4657_v16 }
 0x1f5   :  { %v759_v53 = vpop.f32.mrf.mxu1 }
 0x1f7   :  { %v3846_v54 = vpop.f32.mrf.mxu1 }
 0x1f8   :  { %v771_v8 = vadd.f32 %v3846_v54, %v4633_v3  ;;  %v760_v54 = vadd.f32 %v4633_v3, %v759_v53 }
 0x1f9   :  { %v762_v55 = vpop.f32.mrf.mxu1 }
 0x1fa   :  { %v845_v42 = vpack.c.bf16 %v771_v8, %v768_v47  ;;  %v763_v41 = vadd.f32 %v4633_v3, %v762_v55  ;;  %v5611_v55 = vpack.c.bf16 %v4653_v14, %v4650_v13  ;;  %v712_v13 = vadd.f32 %v4633_v3, %v4635_v4  ;;  %v4047_v4 = vld [vmem:[%s5543_s0 + $0xb0] sm:$0xff]  }
 0x1fb   :  { %v5612_v14 = vpack.c.bf16 %v4641_v7, %v4638_v6  ;;  %v4048_v6 = vld [vmem:[%s5543_s0 + $0xe8] sm:$0xff]  }
 0x1fc   :  { %v4049_v7 = vld [vmem:[%s5543_s0 + $0xa8] sm:$0xff]  }
 0x203   :  { %v3849_v56 = vpop.f32.mrf.mxu1 }
 0x205   :  { %v4659_v57 = vpop.f32.mrf.mxu1 }
 0x206   :  { %v776_v16 = vadd.f32 %v4633_v3, %v4659_v57  ;;  %v4045_v57 = vld [vmem:[%s5543_s0 + $0xb8] sm:$0xff]  }
 0x207   :  { %v3850_v58 = vpop.f32.mrf.mxu1 }
 0x209   :  { %v778_v59 = vpop.f32.mrf.mxu1 }
 0x213   :  { %v3853_v60 = vpop.f32.mrf.mxu1 }
 0x215   :  { %v791_v61 = vpop.f32.mrf.mxu1 }
 0x217   :  { %v3854_v62 = vpop.f32.mrf.mxu1 }
 0x219   :  { %v794_v63 = vpop.f32.mrf.mxu1 }
 0x21a   :  { %v795_v8 = vadd.f32 %v4633_v3, %v794_v63 }
 0x223   :  { %v3857_v0 = vpop.f32.mrf.mxu1 }
 0x225   :  { %v807_v1 = vpop.f32.mrf.mxu1 }
 0x226   :  { %v808_v47 = vadd.f32 %v4633_v3, %v807_v1  ;;  %v4056_v1 = vld [vmem:[%s5543_s0 + $0xc8] sm:$0xff]  }
 0x227   :  { %v3858_v2 = vpop.f32.mrf.mxu1 }
 0x228   :  { %v819_v39 = vadd.f32 %v3858_v2, %v4633_v3  ;;  %v4057_v2 = vld [vmem:[%s5543_s0 + $0x88] sm:$0xff]  }
 0x229   :  { %v810_v5 = vpop.f32.mrf.mxu1 }
 0x233   :  { %v3861_v11 = vpop.f32.mrf.mxu1 }
 0x234   :  { %v832_v49 = vadd.f32 %v3861_v11, %v4633_v3  ;;  %v844_v11 = vpack.c.bf16 %v763_v41, %v760_v54  ;;  %v800_v41 = vadd.f32 %v3853_v60, %v4633_v3  ;;  %v784_v60 = vadd.f32 %v3849_v56, %v4633_v3  ;;  %v4044_v56 = vld [vmem:[%s5543_s0 + $0xf8] sm:$0xff]  }
 0x235   :  { %v823_v12 = vpop.f32.mrf.mxu1  ;;  %v4063_v54 = vld [vmem:[#allocation2 + $0x114] ss:$8 sps:$4 sm:$0xff]  }
 0x236   :  { %v824_v45 = vadd.f32 %v4633_v3, %v823_v12 }
 0x237   :  { %v3862_v15 = vpop.f32.mrf.mxu1 }
 0x238   :  { %v835_v48 = vadd.f32 %v3862_v15, %v4633_v3  ;;  %v816_v15 = vadd.f32 %v3857_v0, %v4633_v3  ;;  %v4053_v0 = vld [vmem:[%s5543_s0 + $0x98] sm:$0xff]  }
 0x239   :  { %v826_v46 = vpop.f32.mrf.mxu1 }
 0x23a   :  { %v853_v44 = vpack.c.bf16 %v835_v48, %v832_v49  ;;  %v827_v43 = vadd.f32 %v4633_v3, %v826_v46  ;;  %v851_v12 = vpack.c.bf16 %v819_v39, %v816_v15  ;;  %v811_v48 = vadd.f32 %v4633_v3, %v810_v5  ;;  %v4060_v5 = vld [vmem:[#allocation2 + $0x100] ss:$8 sps:$4 sm:$0xff]   ;;  %v4065_v15 = vld [vmem:[#allocation2 + $0x110] ss:$8 sps:$4 sm:$0xff]  }
 0x23b   :  { %v752_v46 = vadd.f32 %v3841_v37, %v4633_v3  ;;  %v792_v37 = vadd.f32 %v4633_v3, %v791_v61  ;;  %v779_v61 = vadd.f32 %v4633_v3, %v778_v59 }
 0x23c   :  { %v852_v38 = vpack.c.bf16 %v827_v43, %v824_v45  ;;  %3437 = vmatprep.subr.bf16.mxu1 %v853_v44  ;;  %v747_v44 = vadd.f32 %v4633_v3, %v746_v51  ;;  %v850_v45 = vpack.c.bf16 %v811_v48, %v808_v47  ;;  %v787_v51 = vadd.f32 %v3850_v58, %v4633_v3  ;;  %v4071_v48 = vld [vmem:[#allocation2 + $0x130] ss:$8 sps:$4 sm:$0xff]   ;;  %v4072_v47 = vld [vmem:[#allocation2 + $0x140] ss:$8 sps:$4 sm:$0xff]  }
 0x23d   :  { %3438 = vmatpush3.bf16.msra.mxu1 %v845_v42  ;;  %v843_v43 = vpack.c.bf16 %v755_v52, %v752_v46  ;;  %v803_v42 = vadd.f32 %v3854_v62, %v4633_v3  ;;  %v848_v53 = vpack.c.bf16 %v795_v8, %v792_v37  ;;  %v715_v58 = vadd.f32 %v4633_v3, %v4645_v9  ;;  %v4052_v9 = vld [vmem:[%s5543_s0 + $0xd8] sm:$0xff]   ;;  %v4066_v52 = vld [vmem:[#allocation2 + $0x124] ss:$8 sps:$4 sm:$0xff]  }
 0x23e   :  { %3439 = vmatprep.subr.bf16.mxu1 %v852_v38  ;;  %v744_v38 = vadd.f32 %v4633_v3, %v743_v40  ;;  %v728_v40 = vadd.f32 %v4633_v3, %v4647_v10  ;;  %v847_v63 = vpack.c.bf16 %v787_v51, %v784_v60  ;;  %v846_v10 = vpack.c.bf16 %v779_v61, %v776_v16  ;;  %v4046_v3 = vld [vmem:[%s5543_s0 + $0xf0] sm:$0xff]   ;;  %v4074_v46 = vld [vmem:[#allocation2 + $0x144] ss:$8 sps:$4 sm:$0xff]  }
 0x23f   :  { %v849_v49 = vpack.c.bf16 %v803_v42, %v800_v41  ;;  %v838_v59 = vpack.c.bf16 %v715_v58, %v712_v13  ;;  %v4080_v42 = vld [vmem:[#allocation2 + $0x164] ss:$8 sps:$4 sm:$0xff]   ;;  %v4081_v41 = vld [vmem:[#allocation2 + $0x170] ss:$8 sps:$4 sm:$0xff]   ;;  %v4089_v8 = vld [vmem:[#allocation2 + $0x194] ss:$8 sps:$4 sm:$0xff]  }
 0x240   :  { %v842_v39 = vpack.c.bf16 %v747_v44, %v744_v38  ;;  %v840_v62 = vpack.c.bf16 %v731_v50, %v728_v40  ;;  %v4075_v44 = vld [vmem:[#allocation2 + $0x150] ss:$8 sps:$4 sm:$0xff]   ;;  %v4083_v38 = vld [vmem:[#allocation2 + $0x174] ss:$8 sps:$4 sm:$0xff]   ;;  %v4094_v40 = vld [vmem:[#allocation2 + $0x1a4] ss:$8 sps:$4 sm:$0xff]  }
 0x241   :  { %3440 = vmatpush3.bf16.msra.mxu1 %v844_v11  ;;  %v4068_v11 = vld [vmem:[#allocation2 + $0x120] ss:$8 sps:$4 sm:$0xff]   ;;  %v4110_v58 = vld [vmem:[%s5544_s1 + $0x18] sm:$0xff]  }
 0x242   :  { %3441 = vmatprep.subr.bf16.mxu1 %v851_v12  ;;  %v4069_v12 = vld [vmem:[#allocation2 + $0x134] ss:$8 sps:$4 sm:$0xff]   ;;  %v4092_v13 = vld [vmem:[#allocation2 + $0x1a0] ss:$8 sps:$4 sm:$0xff]  }
 0x245   :  { %3442 = vmatpush3.bf16.msra.mxu1 %v843_v43  ;;  %v4077_v43 = vld [vmem:[#allocation2 + $0x154] ss:$8 sps:$4 sm:$0xff]  }
 0x246   :  { %3443 = vmatprep.subr.bf16.mxu1 %v850_v45  ;;  %v4078_v45 = vld [vmem:[#allocation2 + $0x160] ss:$8 sps:$4 sm:$0xff]  }
 0x249   :  { %3444 = vmatpush3.bf16.msra.mxu1 %v842_v39  ;;  %v4086_v39 = vld [vmem:[#allocation2 + $0x184] ss:$8 sps:$4 sm:$0xff]  }
 0x24a   :  { %3445 = vmatprep.subr.bf16.mxu1 %v849_v49  ;;  %v4084_v49 = vld [vmem:[#allocation2 + $0x180] ss:$8 sps:$4 sm:$0xff]  }
 0x24d   :  { %3446 = vmatpush3.bf16.msra.mxu1 %v5611_v55 }
 0x24e   :  { %3447 = vmatprep.subr.bf16.mxu1 %v848_v53  ;;  %v4087_v53 = vld [vmem:[#allocation2 + $0x190] ss:$8 sps:$4 sm:$0xff]  }
 0x251   :  { %3448 = vmatpush3.bf16.msra.mxu1 %v840_v62 }
 0x252   :  { %3449 = vmatprep.subr.bf16.mxu1 %v847_v63 }
 0x255   :  { %3450 = vmatpush3.bf16.msra.mxu1 %v5612_v14  ;;  %v4097_v14 = vld [vmem:[#allocation2 + $0x1b4] ss:$8 sps:$4 sm:$0xff]  }
 0x256   :  { %3451 = vmatprep.subr.bf16.mxu1 %v846_v10 }
 0x259   :  { %3452 = vmatpush3.bf16.msra.mxu1 %v838_v59 }
 0x25a   :  { %3567 = vmatprep.subr.bf16.mxu1 %v4044_v56 }
 0x25c   :  { %887 = vmatmul.mubr.bf16.vlgmr.msra.gmra.mxu1 %v4514_v17  ;;  %v4050_v17 = vld [vmem:[%s5543_s0 + $0xe0] sm:$0xff]  }
 0x25d   :  { %894 = vmatprep.mubr.bf16.mxu1 %v4516_v18  ;;  %3568 = vmatpush3.bf16.msra.mxu1 %v4045_v57  ;;  %v4051_v18 = vld [vmem:[%s5543_s0 + $0xa0] sm:$0xff]  }
 0x25e   :  { %3569 = vmatprep.subr.bf16.mxu1 %v4046_v3  ;;  %v4111_v3 = vld [vmem:[%s5544_s1 + $0x10] sm:$0xff]  }
 0x261   :  { %3570 = vmatpush3.bf16.msra.mxu1 %v4047_v4 }
 0x262   :  { %3571 = vmatprep.subr.bf16.mxu1 %v4048_v6 }
 0x264   :  { %895 = vmatmul.mubr.bf16.gmra.mxu1 %v4520_v19  ;;  %v4054_v19 = vld [vmem:[%s5543_s0 + $0xd0] sm:$0xff]  }
 0x265   :  { %902 = vmatprep.mubr.bf16.mxu1 %v4522_v20  ;;  %3572 = vmatpush3.bf16.msra.mxu1 %v4049_v7  ;;  %v4055_v20 = vld [vmem:[%s5543_s0 + $0x90] sm:$0xff]  }
 0x266   :  { %3573 = vmatprep.subr.bf16.mxu1 %v4050_v17 }
 0x269   :  { %3574 = vmatpush3.bf16.msra.mxu1 %v4051_v18  ;;  %v4095_v18 = vld [vmem:[#allocation2 + $0x1b0] ss:$8 sps:$4 sm:$0xff]  }
 0x26a   :  { %3575 = vmatprep.subr.bf16.mxu1 %v4052_v9  ;;  %v4100_v9 = vld [vmem:[#allocation2 + $0x1c4] ss:$8 sps:$4 sm:$0xff]  }
 0x26c   :  { %903 = vmatmul.mubr.bf16.gmra.mxu1 %v4526_v21  ;;  %v4058_v21 = vld [vmem:[%s5543_s0 + $0xc0] sm:$0xff]  }
 0x26d   :  { %910 = vmatprep.mubr.bf16.mxu1 %v4528_v22  ;;  %3576 = vmatpush3.bf16.msra.mxu1 %v4053_v0  ;;  %v4059_v22 = vld [vmem:[%s5543_s0 + $0x80] sm:$0xff]  }
 0x26e   :  { %3577 = vmatprep.subr.bf16.mxu1 %v4054_v19 }
 0x271   :  { %3578 = vmatpush3.bf16.msra.mxu1 %v4055_v20 }
 0x272   :  { %3579 = vmatprep.subr.bf16.mxu1 %v4056_v1 }
 0x274   :  { %911 = vmatmul.mubr.bf16.gmra.mxu1 %v4532_v23  ;;  %v4771_v23 = vld [vmem:[%s5546_s3 + $0x8] sm:$0xff]  }
 0x275   :  { %918 = vmatprep.mubr.bf16.mxu1 %v4534_v24  ;;  %3580 = vmatpush3.bf16.msra.mxu1 %v4057_v2  ;;  %v4778_v24 = vld [vmem:[%s5546_s3] sm:$0xff]  }
 0x276   :  { %3581 = vmatprep.subr.bf16.mxu1 %v4058_v21  ;;  %3863 = vmatprep.subr.bf16.mxu0 %v4771_v23 }
 0x277   :  { %3864 = vmatpush3.bf16.msra.mxu0 %v4771_v23 }
 0x278   :  { %3865 = vmatprep.subr.bf16.mxu0 %v4778_v24 }
 0x279   :  { %3582 = vmatpush3.bf16.msra.mxu1 %v4059_v22 }
 0x27a   :  { %3971 = vmatprep.subr.bf16.mxu1 %v4110_v58 }
 0x27b   :  { %3866 = vmatpush3.bf16.msra.mxu0 %v4778_v24 }
 0x27c   :  { %919 = vmatmul.mubr.bf16.gmra.mxu1 %v4538_v25  ;;  %v5613_v25 = vld [vmem:[#allocation5_spill] sm:$0xff]  ;;  %3899 = vmatprep.subr.bf16.mxu0 %v4110_v58 }
 0x27d   :  { %926 = vmatprep.mubr.bf16.mxu1 %v4540_v26  ;;  %v5614_v26 = vld [vmem:[#allocation6_spill] sm:$0xff] }
 0x284   :  { %927 = vmatmul.mubr.bf16.gmra.mxu1 %v4544_v27  ;;  %v5615_v27 = vld [vmem:[#allocation7_spill] sm:$0xff] }
 0x285   :  { %934 = vmatprep.mubr.bf16.mxu1 %v4546_v28  ;;  %v5616_v28 = vld [vmem:[#allocation8_spill] sm:$0xff] }
 0x28c   :  { %935 = vmatmul.mubr.bf16.gmra.mxu1 %v4550_v29  ;;  %v5617_v29 = vld [vmem:[#allocation9_spill] sm:$0xff] }
 0x28d   :  { %942 = vmatprep.mubr.bf16.mxu1 %v4552_v30  ;;  %v5618_v30 = vld [vmem:[#allocation10_spill] sm:$0xff] }
 0x294   :  { %943 = vmatmul.mubr.bf16.gmra.mxu1 %v4556_v31  ;;  %v5619_v31 = vld [vmem:[#allocation11_spill] sm:$0xff] }
 0x295   :  { %950 = vmatprep.mubr.bf16.mxu1 %v4558_v32  ;;  %v5620_v32 = vld [vmem:[#allocation12_spill] sm:$0xff] }
 0x29c   :  { %951 = vmatmul.mubr.bf16.gmra.mxu1 %v4562_v33  ;;  %v5621_v33 = vld [vmem:[#allocation13_spill] sm:$0xff] }
 0x29d   :  { %958 = vmatprep.mubr.bf16.mxu1 %v4564_v34  ;;  %v5622_v34 = vld [vmem:[#allocation14_spill] sm:$0xff] }
 0x2a4   :  { %959 = vmatmul.mubr.bf16.gmra.mxu1 %v4568_v35  ;;  %v4792_v35 = vld [vmem:[#allocation2 + $0x104] ss:$8 sps:$4 sm:$0xff]  }
 0x2a5   :  { %966 = vmatprep.mubr.bf16.mxu1 %v4570_v36  ;;  %v5623_v36 = vld [vmem:[#allocation15_spill] sm:$0xff] }
 0x2ac   :  { %967 = vmatmul.mubr.bf16.gmra.mxu1 %v5613_v25  ;;  %v4098_v25 = vld [vmem:[#allocation2 + $0x1c0] ss:$8 sps:$4 sm:$0xff]  }
 0x2ad   :  { %974 = vmatprep.mubr.bf16.mxu1 %v5614_v26  ;;  %v4103_v26 = vld [vmem:[#allocation2 + $0x1d4] ss:$8 sps:$4 sm:$0xff]  }
 0x2b4   :  { %975 = vmatmul.mubr.bf16.gmra.mxu1 %v5615_v27 }
 0x2b5   :  { %982 = vmatprep.mubr.bf16.mxu1 %v5616_v28 }
 0x2bc   :  { %983 = vmatmul.mubr.bf16.gmra.mxu1 %v5617_v29 }
 0x2bd   :  { %990 = vmatprep.mubr.bf16.mxu1 %v5618_v30 }
 0x2c4   :  { %991 = vmatmul.mubr.bf16.gmra.mxu1 %v5619_v31 }
 0x2c5   :  { %998 = vmatprep.mubr.bf16.mxu1 %v5620_v32 }
 0x2cc   :  { %999 = vmatmul.mubr.bf16.gmra.mxu1 %v5621_v33 }
 0x2cd   :  { %1006 = vmatprep.mubr.bf16.mxu1 %v5622_v34  ;;  %v4101_v34 = vld [vmem:[#allocation2 + $0x1d0] ss:$8 sps:$4 sm:$0xff]  }
 0x2d4   :  { %1007 = vmatmul.mubr.bf16.gmra.mxu1 %v5623_v36  ;;  %v4106_v36 = vld [vmem:[#allocation2 + $0x1e4] ss:$8 sps:$4 sm:$0xff]  }
 0x2d5   :  { %1739 = vmatprep.mubr.bf16.mxu1 %v4792_v35 }
 0x2dc   :  { %1740 = vmatmul.mubr.bf16.vlgmr.msra.gmra.mxu1 %v4060_v5 }
 0x2dd   :  { %1747 = vmatprep.mubr.bf16.mxu1 %v4063_v54  ;;  %3973 = vmatpush3.bf16.msra.mxu1 %v4110_v58 }
 0x2de   :  { %3972 = vmatprep.subr.bf16.mxu1 %v4111_v3 }
 0x2e1   :  { %3974 = vmatpush3.bf16.msra.mxu1 %v4111_v3 }
 0x2e2   :  { %3935 = vmatprep.subr.bf16.mxu1 %v4771_v23 }
 0x2e4   :  { %1748 = vmatmul.mubr.bf16.gmra.mxu1 %v4065_v15 }
 0x2e5   :  { %1755 = vmatprep.mubr.bf16.mxu1 %v4066_v52 }
 0x2ec   :  { %1756 = vmatmul.mubr.bf16.gmra.mxu1 %v4068_v11 }
 0x2ed   :  { %1763 = vmatprep.mubr.bf16.mxu1 %v4069_v12 }
 0x2f4   :  { %1764 = vmatmul.mubr.bf16.gmra.mxu1 %v4071_v48 }
 0x2f5   :  { %1771 = vmatprep.mubr.bf16.mxu1 %v4074_v46  ;;  %v4104_v46 = vld [vmem:[#allocation2 + $0x1e0] ss:$8 sps:$4 sm:$0xff]  }
 0x2fc   :  { %1772 = vmatmul.mubr.bf16.gmra.mxu1 %v4072_v47  ;;  %v4109_v47 = vld [vmem:[#allocation2 + $0x1f4] ss:$8 sps:$4 sm:$0xff]  }
 0x2fd   :  { %1779 = vmatprep.mubr.bf16.mxu1 %v4077_v43 }
 0x304   :  { %1780 = vmatmul.mubr.bf16.gmra.mxu1 %v4075_v44 }
 0x305   :  { %1787 = vmatprep.mubr.bf16.mxu1 %v4080_v42 }
 0x30c   :  { %1788 = vmatmul.mubr.bf16.gmra.mxu1 %v4078_v45 }
 0x30d   :  { %1795 = vmatprep.mubr.bf16.mxu1 %v4083_v38 }
 0x314   :  { %1796 = vmatmul.mubr.bf16.gmra.mxu1 %v4081_v41 }
 0x315   :  { %1803 = vmatprep.mubr.bf16.mxu1 %v4086_v39 }
 0x31c   :  { %v3453_v37 = vpop.f32.mrf.mxu1  ;;  %1804 = vmatmul.mubr.bf16.gmra.mxu1 %v4084_v49  ;;  %v4107_v49 = vld [vmem:[#allocation2 + $0x1f0] ss:$8 sps:$4 sm:$0xff]  }
 0x31d   :  { %1811 = vmatprep.mubr.bf16.mxu1 %v4089_v8 }
 0x31e   :  { %v3454_v50 = vpop.f32.mrf.mxu1 }
 0x31f   :  { %v4796_v60 = vadd.f32 %v3454_v50, %v3453_v37 }
 0x320   :  { %v3456_v51 = vpop.f32.mrf.mxu1 }
 0x322   :  { %v3457_v55 = vpop.f32.mrf.mxu1 }
 0x323   :  { %v4798_v62 = vadd.f32 %v3457_v55, %v3456_v51 }
 0x324   :  { %v3459_v63 = vpop.f32.mrf.mxu1  ;;  %1812 = vmatmul.mubr.bf16.gmra.mxu1 %v4087_v53 }
 0x325   :  { %v1015_v61 = vpack.c.bf16 %v4798_v62, %v4796_v60  ;;  %1819 = vmatprep.mubr.bf16.mxu1 %v4094_v40 }
 0x326   :  { %v3460_v16 = vpop.f32.mrf.mxu1 }
 0x327   :  { %3867 = vmatprep.mubr.msk.bf16.mxu0 %vm628_vm0, %v1015_v61  ;;  %v4806_v59 = vadd.f32 %v3460_v16, %v3459_v63 }
 0x328   :  { %v3462_v10 = vpop.f32.mrf.mxu1 }
 0x32a   :  { %v3463_v56 = vpop.f32.mrf.mxu1 }
 0x32b   :  { %v4808_v57 = vadd.f32 %v3463_v56, %v3462_v10 }
 0x32c   :  { %v3465_v4 = vpop.f32.mrf.mxu1  ;;  %1820 = vmatmul.mubr.bf16.gmra.mxu1 %v4092_v13 }
 0x32d   :  { %v1016_v6 = vpack.c.bf16 %v4808_v57, %v4806_v59  ;;  %1827 = vmatprep.mubr.bf16.mxu1 %v4097_v14 }
 0x32e   :  { %v3466_v7 = vpop.f32.mrf.mxu1 }
 0x32f   :  { %3868 = vmatmul.mubr.msk.bf16.vlgmr.msra.gmra.mxu0 %vm628_vm0, %v1016_v6  ;;  %v4817_v19 = vadd.f32 %v3466_v7, %v3465_v4 }
 0x330   :  { %v3468_v17 = vpop.f32.mrf.mxu1  ;;  %3900 = vmatpush3.bf16.msra.mxu0 %v4110_v58 }
 0x331   :  { %3901 = vmatprep.subr.bf16.mxu0 %v4111_v3 }
 0x332   :  { %v3469_v0 = vpop.f32.mrf.mxu1 }
 0x333   :  { %v4819_v20 = vadd.f32 %v3469_v0, %v3468_v17 }
 0x334   :  { %v3471_v1 = vpop.f32.mrf.mxu1  ;;  %1828 = vmatmul.mubr.bf16.gmra.mxu1 %v4095_v18  ;;  %3902 = vmatpush3.bf16.msra.mxu0 %v4111_v3 }
 0x335   :  { %v1017_v2 = vpack.c.bf16 %v4819_v20, %v4817_v19  ;;  %1835 = vmatprep.mubr.bf16.mxu1 %v4100_v9 }
 0x336   :  { %v3472_v21 = vpop.f32.mrf.mxu1 }
 0x337   :  { %3871 = vmatprep.mubr.msk.bf16.mxu0 %vm628_vm0, %v1017_v2  ;;  %v4824_v28 = vadd.f32 %v3472_v21, %v3471_v1 }
 0x338   :  { %v3474_v22 = vpop.f32.mrf.mxu1 }
 0x33a   :  { %v3475_v27 = vpop.f32.mrf.mxu1 }
 0x33b   :  { %v4826_v29 = vadd.f32 %v3475_v27, %v3474_v22 }
 0x33c   :  { %v3477_v30 = vpop.f32.mrf.mxu1  ;;  %1836 = vmatmul.mubr.bf16.gmra.mxu1 %v4098_v25 }
 0x33d   :  { %v1018_v31 = vpack.c.bf16 %v4826_v29, %v4824_v28  ;;  %1843 = vmatprep.mubr.bf16.mxu1 %v4103_v26 }
 0x33e   :  { %v3478_v32 = vpop.f32.mrf.mxu1 }
 0x33f   :  { %3872 = vmatmul.mubr.msk.bf16.gmra.mxu0 %vm628_vm0, %v1018_v31  ;;  %v4831_v54 = vadd.f32 %v3478_v32, %v3477_v30 }
 0x340   :  { %v3480_v33 = vpop.f32.mrf.mxu1 }
 0x342   :  { %v3481_v5 = vpop.f32.mrf.mxu1 }
 0x343   :  { %v4833_v15 = vadd.f32 %v3481_v5, %v3480_v33 }
 0x344   :  { %v3483_v52 = vpop.f32.mrf.mxu1  ;;  %1844 = vmatmul.mubr.bf16.gmra.mxu1 %v4101_v34 }
 0x345   :  { %v1019_v11 = vpack.c.bf16 %v4833_v15, %v4831_v54  ;;  %1851 = vmatprep.mubr.bf16.mxu1 %v4106_v36 }
 0x346   :  { %v3484_v12 = vpop.f32.mrf.mxu1 }
 0x347   :  { %3875 = vmatprep.mubr.msk.bf16.mxu0 %vm628_vm0, %v1019_v11  ;;  %v4838_v44 = vadd.f32 %v3484_v12, %v3483_v52 }
 0x348   :  { %v3486_v48 = vpop.f32.mrf.mxu1 }
 0x34a   :  { %v3487_v43 = vpop.f32.mrf.mxu1 }
 0x34b   :  { %v4840_v42 = vadd.f32 %v3487_v43, %v3486_v48 }
 0x34c   :  { %v3489_v45 = vpop.f32.mrf.mxu1  ;;  %1852 = vmatmul.mubr.bf16.gmra.mxu1 %v4104_v46 }
 0x34d   :  { %v1020_v38 = vpack.c.bf16 %v4840_v42, %v4838_v44  ;;  %1859 = vmatprep.mubr.bf16.mxu1 %v4109_v47 }
 0x34e   :  { %v3490_v41 = vpop.f32.mrf.mxu1 }
 0x34f   :  { %3876 = vmatmul.mubr.msk.bf16.gmra.mxu0 %vm628_vm0, %v1020_v38  ;;  %v4845_v37 = vadd.f32 %v3490_v41, %v3489_v45 }
 0x350   :  { %v3492_v39 = vpop.f32.mrf.mxu1 }
 0x351   :  { %5624 = vst [vmem:[#allocation5_spill] sm:$0xff] %v4845_v37 }
 0x352   :  { %v3493_v8 = vpop.f32.mrf.mxu1 }
 0x353   :  { %v4847_v50 = vadd.f32 %v3493_v8, %v3492_v39 }
 0x354   :  { %v3495_v51 = vpop.f32.mrf.mxu1  ;;  %1860 = vmatmul.mubr.bf16.gmra.mxu1 %v4107_v49 }
 0x355   :  { %5625 = vst [vmem:[#allocation6_spill] sm:$0xff] %v4847_v50  ;;  %v1021_v53 = vpack.c.bf16 %v4847_v50, %v4845_v37 }
 0x356   :  { %v3496_v40 = vpop.f32.mrf.mxu1 }
 0x357   :  { %3879 = vmatprep.mubr.msk.bf16.mxu0 %vm628_vm0, %v1021_v53  ;;  %v4852_v61 = vadd.f32 %v3496_v40, %v3495_v51 }
 0x358   :  { %v3498_v55 = vpop.f32.mrf.mxu1 }
 0x35a   :  { %v3499_v63 = vpop.f32.mrf.mxu1 }
 0x35b   :  { %v4854_v16 = vadd.f32 %v3499_v63, %v3498_v55 }
 0x35c   :  { %v3501_v58 = vpop.f32.mrf.mxu1 }
 0x35d   :  { %5626 = vst [vmem:[#allocation7_spill] sm:$0xff] %v4854_v16  ;;  %v1022_v10 = vpack.c.bf16 %v4854_v16, %v4852_v61 }
 0x35e   :  { %v3502_v13 = vpop.f32.mrf.mxu1 }
 0x35f   :  { %3880 = vmatmul.mubr.msk.bf16.gmra.mxu0 %vm628_vm0, %v1022_v10  ;;  %v4859_v3 = vadd.f32 %v3502_v13, %v3501_v58 }
 0x360   :  { %v3504_v14 = vpop.f32.mrf.mxu1 }
 0x361   :  { %5627 = vst [vmem:[#allocation8_spill] sm:$0xff] %v4859_v3 }
 0x362   :  { %v3505_v56 = vpop.f32.mrf.mxu1 }
 0x363   :  { %v4861_v4 = vadd.f32 %v3505_v56, %v3504_v14 }
 0x364   :  { %v3507_v6 = vpop.f32.mrf.mxu1 }
 0x365   :  { %5628 = vst [vmem:[#allocation9_spill] sm:$0xff] %v4861_v4  ;;  %v1023_v7 = vpack.c.bf16 %v4861_v4, %v4859_v3 }
 0x366   :  { %v3508_v17 = vpop.f32.mrf.mxu1 }
 0x367   :  { %3883 = vmatprep.mubr.msk.bf16.mxu0 %vm628_vm0, %v1023_v7  ;;  %v4866_v0 = vadd.f32 %v3508_v17, %v3507_v6 }
 0x368   :  { %v3510_v18 = vpop.f32.mrf.mxu1 }
 0x369   :  { %5629 = vst [vmem:[#allocation10_spill] sm:$0xff] %v4866_v0 }
 0x36a   :  { %v3511_v9 = vpop.f32.mrf.mxu1 }
 0x36b   :  { %v4868_v1 = vadd.f32 %v3511_v9, %v3510_v18 }
 0x36c   :  { %v3513_v2 = vpop.f32.mrf.mxu1 }
 0x36d   :  { %5630 = vst [vmem:[#allocation11_spill] sm:$0xff] %v4868_v1  ;;  %v1024_v21 = vpack.c.bf16 %v4868_v1, %v4866_v0 }
 0x36e   :  { %v3514_v22 = vpop.f32.mrf.mxu1 }
 0x36f   :  { %3884 = vmatmul.mubr.msk.bf16.gmra.mxu0 %vm628_vm0, %v1024_v21  ;;  %v4873_v27 = vadd.f32 %v3514_v22, %v3513_v2 }
 0x370   :  { %v3516_v25 = vpop.f32.mrf.mxu1 }
 0x371   :  { %5631 = vst [vmem:[#allocation12_spill] sm:$0xff] %v4873_v27 }
 0x372   :  { %v3517_v26 = vpop.f32.mrf.mxu1 }
 0x373   :  { %v4875_v30 = vadd.f32 %v3517_v26, %v3516_v25 }
 0x374   :  { %v3519_v31 = vpop.f32.mrf.mxu1 }
 0x375   :  { %5632 = vst [vmem:[#allocation13_spill] sm:$0xff] %v4875_v30  ;;  %v1025_v32 = vpack.c.bf16 %v4875_v30, %v4873_v27 }
 0x376   :  { %v3520_v33 = vpop.f32.mrf.mxu1 }
 0x377   :  { %3887 = vmatprep.mubr.msk.bf16.mxu0 %vm628_vm0, %v1025_v32  ;;  %v4880_v5 = vadd.f32 %v3520_v33, %v3519_v31 }
 0x378   :  { %v3522_v34 = vpop.f32.mrf.mxu1 }
 0x379   :  { %5633 = vst [vmem:[#allocation14_spill] sm:$0xff] %v4880_v5 }
 0x37a   :  { %v3523_v36 = vpop.f32.mrf.mxu1 }
 0x37b   :  { %v4882_v52 = vadd.f32 %v3523_v36, %v3522_v34 }
 0x37c   :  { %v3525_v11 = vpop.f32.mrf.mxu1 }
 0x37d   :  { %5634 = vst [vmem:[#allocation15_spill] sm:$0xff] %v4882_v52  ;;  %v1026_v12 = vpack.c.bf16 %v4882_v52, %v4880_v5 }
 0x37e   :  { %v3526_v48 = vpop.f32.mrf.mxu1 }
 0x37f   :  { %3888 = vmatmul.mubr.msk.bf16.gmra.mxu0 %vm628_vm0, %v1026_v12  ;;  %v4887_v43 = vadd.f32 %v3526_v48, %v3525_v11 }
 0x380   :  { %v3528_v46 = vpop.f32.mrf.mxu1 }
 0x381   :  { %5635 = vst [vmem:[#allocation16_spill] sm:$0xff] %v4887_v43 }
 0x382   :  { %v3529_v47 = vpop.f32.mrf.mxu1 }
 0x383   :  { %v4889_v45 = vadd.f32 %v3529_v47, %v3528_v46 }
 0x384   :  { %v3531_v38 = vpop.f32.mrf.mxu1 }
 0x385   :  { %5636 = vst [vmem:[#allocation17_spill] sm:$0xff] %v4889_v45  ;;  %v1027_v41 = vpack.c.bf16 %v4889_v45, %v4887_v43 }
 0x386   :  { %v3532_v39 = vpop.f32.mrf.mxu1 }
 0x387   :  { %3891 = vmatprep.mubr.msk.bf16.mxu0 %vm628_vm0, %v1027_v41  ;;  %v4894_v51 = vadd.f32 %v3532_v39, %v3531_v38 }
 0x388   :  { %v3534_v49 = vpop.f32.mrf.mxu1 }
 0x389   :  { %5637 = vst [vmem:[#allocation18_spill] sm:$0xff] %v4894_v51 }
 0x38a   :  { %v3535_v8 = vpop.f32.mrf.mxu1 }
 0x38b   :  { %v4896_v53 = vadd.f32 %v3535_v8, %v3534_v49 }
 0x38c   :  { %v3537_v40 = vpop.f32.mrf.mxu1 }
 0x38d   :  { %5638 = vst [vmem:[#allocation19_spill] sm:$0xff] %v4896_v53  ;;  %v1028_v55 = vpack.c.bf16 %v4896_v53, %v4894_v51 }
 0x38e   :  { %v3538_v63 = vpop.f32.mrf.mxu1 }
 0x38f   :  { %3892 = vmatmul.mubr.msk.bf16.gmra.mxu0 %vm628_vm0, %v1028_v55  ;;  %v4901_v13 = vadd.f32 %v3538_v63, %v3537_v40 }
 0x390   :  { %v3540_v58 = vpop.f32.mrf.mxu1 }
 0x391   :  { %5639 = vst [vmem:[#allocation20_spill] sm:$0xff] %v4901_v13 }
 0x392   :  { %v3541_v10 = vpop.f32.mrf.mxu1 }
 0x393   :  { %v4903_v14 = vadd.f32 %v3541_v10, %v3540_v58 }
 0x394   :  { %v3543_v56 = vpop.f32.mrf.mxu1 }
 0x395   :  { %5640 = vst [vmem:[#allocation21_spill] sm:$0xff] %v4903_v14  ;;  %v1029_v6 = vpack.c.bf16 %v4903_v14, %v4901_v13 }
 0x396   :  { %v3544_v7 = vpop.f32.mrf.mxu1 }
 0x397   :  { %3895 = vmatprep.mubr.msk.bf16.mxu0 %vm628_vm0, %v1029_v6  ;;  %v4908_v9 = vadd.f32 %v3544_v7, %v3543_v56 }
 0x398   :  { %v3546_v17 = vpop.f32.mrf.mxu1 }
 0x399   :  { %5641 = vst [vmem:[#allocation22_spill] sm:$0xff] %v4908_v9 }
 0x39a   :  { %v3547_v18 = vpop.f32.mrf.mxu1 }
 0x39b   :  { %v4910_v2 = vadd.f32 %v3547_v18, %v3546_v17 }
 0x39c   :  { %v3583_v21 = vpop.f32.mrf.mxu1 }
 0x39d   :  { %5642 = vst [vmem:[#allocation23_spill] sm:$0xff] %v4910_v2  ;;  %v1030_v22 = vpack.c.bf16 %v4910_v2, %v4908_v9 }
 0x39e   :  { %v3584_v25 = vpop.f32.mrf.mxu1 }
 0x39f   :  { %3896 = vmatmul.mubr.msk.bf16.gmra.mxu0 %vm628_vm0, %v1030_v22  ;;  %v3585_v31 = vadd.f32 %v3584_v25, %v3583_v21 }
 0x3a0   :  { %v3586_v26 = vpop.f32.mrf.mxu1 }
 0x3a1   :  { %v1868_v36 = vmax.f32 %v3585_v31, 0.0 }
 0x3a2   :  { %v3587_v32 = vpop.f32.mrf.mxu1 }
 0x3a3   :  { %v3588_v33 = vadd.f32 %v3587_v32, %v3586_v26 }
 0x3a4   :  { %v3589_v34 = vpop.f32.mrf.mxu1 }
 0x3a5   :  { %v1869_v11 = vmax.f32 %v3588_v33, 0.0 }
 0x3a6   :  { %v3590_v12 = vpop.f32.mrf.mxu1 }
 0x3a7   :  { %v1900_v48 = vpack.c.bf16 %v1869_v11, %v1868_v36  ;;  %v3591_v47 = vadd.f32 %v3590_v12, %v3589_v34 }
 0x3a8   :  { %v3592_v46 = vpop.f32.mrf.mxu1 }
 0x3a9   :  { %3903 = vmatprep.mubr.msk.bf16.mxu0 %vm628_vm0, %v1900_v48  ;;  %v1870_v49 = vmax.f32 %v3591_v47, 0.0 }
 0x3aa   :  { %v3593_v38 = vpop.f32.mrf.mxu1 }
 0x3ab   :  { %v3594_v41 = vadd.f32 %v3593_v38, %v3592_v46 }
 0x3ac   :  { %v3595_v39 = vpop.f32.mrf.mxu1 }
 0x3ad   :  { %v1871_v8 = vmax.f32 %v3594_v41, 0.0 }
 0x3ae   :  { %v3596_v40 = vpop.f32.mrf.mxu1 }
 0x3af   :  { %v1901_v55 = vpack.c.bf16 %v1871_v8, %v1870_v49  ;;  %v3597_v58 = vadd.f32 %v3596_v40, %v3595_v39 }
 0x3b0   :  { %v3598_v63 = vpop.f32.mrf.mxu1 }
 0x3b1   :  { %3904 = vmatmul.mubr.msk.bf16.vlgmr.msra.gmra.mxu0 %vm628_vm0, %v1901_v55  ;;  %v1872_v7 = vmax.f32 %v3597_v58, 0.0 }
 0x3b2   :  { %v3599_v10 = vpop.f32.mrf.mxu1 }
 0x3b3   :  { %v3600_v56 = vadd.f32 %v3599_v10, %v3598_v63 }
 0x3b4   :  { %v3601_v6 = vpop.f32.mrf.mxu1 }
 0x3b5   :  { %v1873_v17 = vmax.f32 %v3600_v56, 0.0 }
 0x3b6   :  { %v3602_v18 = vpop.f32.mrf.mxu1 }
 0x3b7   :  { %v1902_v21 = vpack.c.bf16 %v1873_v17, %v1872_v7  ;;  %v3603_v25 = vadd.f32 %v3602_v18, %v3601_v6 }
 0x3b8   :  { %v3604_v22 = vpop.f32.mrf.mxu1 }
 0x3b9   :  { %3907 = vmatprep.mubr.msk.bf16.mxu0 %vm628_vm0, %v1902_v21  ;;  %v1874_v33 = vmax.f32 %v3603_v25, 0.0 }
 0x3ba   :  { %v3605_v26 = vpop.f32.mrf.mxu1 }
 0x3bb   :  { %v3606_v31 = vadd.f32 %v3605_v26, %v3604_v22 }
 0x3bc   :  { %v3607_v32 = vpop.f32.mrf.mxu1 }
 0x3bd   :  { %v1875_v34 = vmax.f32 %v3606_v31, 0.0 }
 0x3be   :  { %v3608_v36 = vpop.f32.mrf.mxu1 }
 0x3bf   :  { %v1903_v11 = vpack.c.bf16 %v1875_v34, %v1874_v33  ;;  %v3609_v48 = vadd.f32 %v3608_v36, %v3607_v32 }
 0x3c0   :  { %v3610_v12 = vpop.f32.mrf.mxu1 }
 0x3c1   :  { %3908 = vmatmul.mubr.msk.bf16.gmra.mxu0 %vm628_vm0, %v1903_v11  ;;  %v1876_v41 = vmax.f32 %v3609_v48, 0.0 }
 0x3c2   :  { %v3611_v46 = vpop.f32.mrf.mxu1 }
 0x3c3   :  { %v3612_v47 = vadd.f32 %v3611_v46, %v3610_v12 }
 0x3c4   :  { %v3613_v38 = vpop.f32.mrf.mxu1 }
 0x3c5   :  { %v1877_v39 = vmax.f32 %v3612_v47, 0.0 }
 0x3c6   :  { %v3614_v49 = vpop.f32.mrf.mxu1 }
 0x3c7   :  { %v1904_v8 = vpack.c.bf16 %v1877_v39, %v1876_v41  ;;  %v3615_v55 = vadd.f32 %v3614_v49, %v3613_v38 }
 0x3c8   :  { %v3616_v40 = vpop.f32.mrf.mxu1 }
 0x3c9   :  { %3911 = vmatprep.mubr.msk.bf16.mxu0 %vm628_vm0, %v1904_v8  ;;  %v1878_v56 = vmax.f32 %v3615_v55, 0.0 }
 0x3ca   :  { %v3617_v63 = vpop.f32.mrf.mxu1 }
 0x3cb   :  { %v3618_v58 = vadd.f32 %v3617_v63, %v3616_v40 }
 0x3cc   :  { %v3619_v10 = vpop.f32.mrf.mxu1 }
 0x3cd   :  { %v1879_v6 = vmax.f32 %v3618_v58, 0.0 }
 0x3ce   :  { %v3620_v7 = vpop.f32.mrf.mxu1 }
 0x3cf   :  { %v1905_v17 = vpack.c.bf16 %v1879_v6, %v1878_v56  ;;  %v3621_v21 = vadd.f32 %v3620_v7, %v3619_v10 }
 0x3d0   :  { %v3622_v18 = vpop.f32.mrf.mxu1 }
 0x3d1   :  { %3912 = vmatmul.mubr.msk.bf16.gmra.mxu0 %vm628_vm0, %v1905_v17  ;;  %v1880_v31 = vmax.f32 %v3621_v21, 0.0 }
 0x3d2   :  { %v3623_v22 = vpop.f32.mrf.mxu1 }
 0x3d3   :  { %v3624_v25 = vadd.f32 %v3623_v22, %v3622_v18 }
 0x3d4   :  { %v3625_v26 = vpop.f32.mrf.mxu1 }
 0x3d5   :  { %v1881_v32 = vmax.f32 %v3624_v25, 0.0 }
 0x3d6   :  { %v3626_v33 = vpop.f32.mrf.mxu1 }
 0x3d7   :  { %v1906_v34 = vpack.c.bf16 %v1881_v32, %v1880_v31  ;;  %v3627_v11 = vadd.f32 %v3626_v33, %v3625_v26 }
 0x3d8   :  { %v3628_v36 = vpop.f32.mrf.mxu1 }
 0x3d9   :  { %3915 = vmatprep.mubr.msk.bf16.mxu0 %vm628_vm0, %v1906_v34  ;;  %v1882_v47 = vmax.f32 %v3627_v11, 0.0 }
 0x3da   :  { %v3629_v12 = vpop.f32.mrf.mxu1 }
 0x3db   :  { %v3630_v48 = vadd.f32 %v3629_v12, %v3628_v36 }
 0x3dc   :  { %v3631_v46 = vpop.f32.mrf.mxu1 }
 0x3dd   :  { %v1883_v38 = vmax.f32 %v3630_v48, 0.0 }
 0x3de   :  { %v3632_v41 = vpop.f32.mrf.mxu1 }
 0x3df   :  { %v1907_v39 = vpack.c.bf16 %v1883_v38, %v1882_v47  ;;  %v3633_v8 = vadd.f32 %v3632_v41, %v3631_v46 }
 0x3e0   :  { %v3634_v49 = vpop.f32.mrf.mxu1 }
 0x3e1   :  { %3916 = vmatmul.mubr.msk.bf16.gmra.mxu0 %vm628_vm0, %v1907_v39  ;;  %v1884_v58 = vmax.f32 %v3633_v8, 0.0 }
 0x3e2   :  { %v3635_v40 = vpop.f32.mrf.mxu1 }
 0x3e3   :  { %v3636_v55 = vadd.f32 %v3635_v40, %v3634_v49 }
 0x3e4   :  { %v3637_v63 = vpop.f32.mrf.mxu1 }
 0x3e5   :  { %v1885_v10 = vmax.f32 %v3636_v55, 0.0 }
 0x3e6   :  { %v3638_v56 = vpop.f32.mrf.mxu1 }
 0x3e7   :  { %v1908_v6 = vpack.c.bf16 %v1885_v10, %v1884_v58  ;;  %v3639_v17 = vadd.f32 %v3638_v56, %v3637_v63  ;;  %v4929_v10 = vld [vmem:[%s5547_s4] ss:$0 sm:$0xff] }
 0x3e8   :  { %v3640_v7 = vpop.f32.mrf.mxu1 }
 0x3e9   :  { %3919 = vmatprep.mubr.msk.bf16.mxu0 %vm628_vm0, %v1908_v6  ;;  %v1886_v25 = vmax.f32 %v3639_v17, 0.0 }
 0x3ea   :  { %v3641_v18 = vpop.f32.mrf.mxu1 }
 0x3eb   :  { %v3642_v21 = vadd.f32 %v3641_v18, %v3640_v7 }
 0x3ec   :  { %v3643_v22 = vpop.f32.mrf.mxu1 }
 0x3ed   :  { %v1887_v26 = vmax.f32 %v3642_v21, 0.0 }
 0x3ee   :  { %v3644_v31 = vpop.f32.mrf.mxu1 }
 0x3ef   :  { %v1909_v32 = vpack.c.bf16 %v1887_v26, %v1886_v25  ;;  %v3869_v33 = vpop.f32.mrf.mxu0  ;;  %v3645_v36 = vadd.f32 %v3644_v31, %v3643_v22 }
 0x3f0   :  { %4112 = vtanh.f32 %v3869_v33  ;;  %v3646_v34 = vpop.f32.mrf.mxu1 }
 0x3f1   :  { %v1125_v11 = vpop.f32.mrf.mxu0  ;;  %3920 = vmatmul.mubr.msk.bf16.gmra.mxu0 %vm628_vm0, %v1909_v32  ;;  %v1888_v38 = vmax.f32 %v3645_v36, 0.0 }
 0x3f2   :  { %4114 = vtanh.f32 %v1125_v11  ;;  %v3647_v12 = vpop.f32.mrf.mxu1 }
 0x3f3   :  { %v3648_v48 = vadd.f32 %v3647_v12, %v3646_v34  ;;  %v3870_v46 = vpop.f32.mrf.mxu0 }
 0x3f4   :  { %4116 = vtanh.f32 %v3870_v46  ;;  %v3649_v47 = vpop.f32.mrf.mxu1 }
 0x3f5   :  { %v1889_v41 = vmax.f32 %v3648_v48, 0.0  ;;  %v1128_v39 = vpop.f32.mrf.mxu0 }
 0x3f6   :  { %4118 = vtanh.f32 %v1128_v39  ;;  %v3650_v49 = vpop.f32.mrf.mxu1 }
 0x3f7   :  { %v1910_v8 = vpack.c.bf16 %v1889_v41, %v1888_v38  ;;  %v3651_v55 = vadd.f32 %v3650_v49, %v3649_v47 }
 0x3f8   :  { %v3652_v40 = vpop.f32.mrf.mxu1 }
 0x3f9   :  { %3923 = vmatprep.mubr.msk.bf16.mxu0 %vm628_vm0, %v1910_v8  ;;  %v1890_v7 = vmax.f32 %v3651_v55, 0.0 }
 0x3fa   :  { %v3653_v63 = vpop.f32.mrf.mxu1 }
 0x3fb   :  { %v3654_v58 = vadd.f32 %v3653_v63, %v3652_v40 }
 0x3fc   :  { %v3655_v56 = vpop.f32.mrf.mxu1 }
 0x3fd   :  { %v4113_v6 = vpop.eup %4112  ;;  %v1891_v17 = vmax.f32 %v3654_v58, 0.0 }
 0x3fe   :  { %v3656_v18 = vpop.f32.mrf.mxu1  ;;  %v1292_v21 = vmul.f32 %v4113_v6, %v4929_v10 }
 0x3ff   :  { %v4115_v22 = vpop.eup %4114  ;;  %v1911_v25 = vpack.c.bf16 %v1891_v17, %v1890_v7  ;;  %v3873_v26 = vpop.f32.mrf.mxu0  ;;  %v3657_v36 = vadd.f32 %v3656_v18, %v3655_v56 }
 0x400   :  { %4120 = vtanh.f32 %v3873_v26  ;;  %v3658_v31 = vpop.f32.mrf.mxu1  ;;  %v1328_v32 = vsel %vm628_vm0, %v1292_v21, 0.0  ;;  %v1290_v33 = vmul.f32 %v4115_v22, %v4929_v10 }
 0x401   :  { %v4117_v34 = vpop.eup %4116  ;;  %3924 = vmatmul.mubr.msk.bf16.gmra.mxu0 %vm628_vm0, %v1911_v25  ;;  %1329 = vadd.xlane.f32.xlu1 %v1328_v32  ;;  %v1141_v11 = vpop.f32.mrf.mxu0  ;;  %v1892_v40 = vmax.f32 %v3657_v36, 0.0 }
 0x402   :  { %4122 = vtanh.f32 %v1141_v11  ;;  %v3659_v12 = vpop.f32.mrf.mxu1  ;;  %v1322_v48 = vsel %vm628_vm0, %v1290_v33, 0.0  ;;  %v1293_v46 = vmul.f32 %v4117_v34, %v4929_v10 }
 0x403   :  { %v4119_v47 = vpop.eup %4118  ;;  %v3660_v38 = vadd.f32 %v3659_v12, %v3658_v31  ;;  %1323 = vadd.xlane.f32.xlu0 %v1322_v48  ;;  %v3874_v41 = vpop.f32.mrf.mxu0 }
 0x404   :  { %4124 = vtanh.f32 %v3874_v41  ;;  %v3661_v39 = vpop.f32.mrf.mxu1  ;;  %v1331_v49 = vsel %vm628_vm0, %v1293_v46, 0.0  ;;  %v1291_v8 = vmul.f32 %v4119_v47, %v4929_v10 }
 0x405   :  { %v1893_v55 = vmax.f32 %v3660_v38, 0.0  ;;  %1332 = vadd.xlane.f32.xlu1 %v1331_v49  ;;  %v1144_v63 = vpop.f32.mrf.mxu0 }
 0x406   :  { %4126 = vtanh.f32 %v1144_v63  ;;  %v3662_v58 = vpop.f32.mrf.mxu1  ;;  %v1325_v56 = vsel %vm628_vm0, %v1291_v8, 0.0 }
 0x407   :  { %v1912_v6 = vpack.c.bf16 %v1893_v55, %v1892_v40  ;;  %1326 = vadd.xlane.f32.xlu0 %v1325_v56  ;;  %v3663_v17 = vadd.f32 %v3662_v58, %v3661_v39 }
 0x408   :  { %v3664_v7 = vpop.f32.mrf.mxu1 }
 0x409   :  { %3927 = vmatprep.mubr.msk.bf16.mxu0 %vm628_vm0, %v1912_v6  ;;  %v1894_v26 = vmax.f32 %v3663_v17, 0.0 }
 0x40a   :  { %v3665_v18 = vpop.f32.mrf.mxu1 }
 0x40b   :  { %v3666_v21 = vadd.f32 %v3665_v18, %v3664_v7 }
 0x40c   :  { %v3667_v22 = vpop.f32.mrf.mxu1 }
 0x40d   :  { %v4121_v25 = vpop.eup %4120  ;;  %v1895_v31 = vmax.f32 %v3666_v21, 0.0 }
 0x40e   :  { %v3668_v32 = vpop.f32.mrf.mxu1  ;;  %v1296_v33 = vmul.f32 %v4121_v25, %v4929_v10 }
 0x40f   :  { %v4123_v34 = vpop.eup %4122  ;;  %v1913_v36 = vpack.c.bf16 %v1895_v31, %v1894_v26  ;;  %v3877_v11 = vpop.f32.mrf.mxu0  ;;  %v3669_v38 = vadd.f32 %v3668_v32, %v3667_v22 }
 0x410   :  { %4128 = vtanh.f32 %v3877_v11  ;;  %v3670_v12 = vpop.f32.mrf.mxu1  ;;  %v1340_v48 = vsel %vm628_vm0, %v1296_v33, 0.0  ;;  %v1294_v46 = vmul.f32 %v4123_v34, %v4929_v10 }
 0x411   :  { %v4125_v47 = vpop.eup %4124  ;;  %3928 = vmatmul.mubr.msk.bf16.gmra.mxu0 %vm628_vm0, %v1913_v36  ;;  %1341 = vadd.xlane.f32.xlu0 %v1340_v48  ;;  %v1157_v41 = vpop.f32.mrf.mxu0  ;;  %v1896_v7 = vmax.f32 %v3669_v38, 0.0 }
 0x412   :  { %4130 = vtanh.f32 %v1157_v41  ;;  %v3671_v39 = vpop.f32.mrf.mxu1  ;;  %v1297_v49 = vmul.f32 %v4125_v47, %v4929_v10  ;;  %2198 = vmatprep.mubr.bf16.mxu0 %v4792_v35  ;;  %v1334_v58 = vsel %vm628_vm0, %v1294_v46, 0.0 }
 0x413   :  { %v4127_v8 = vpop.eup %4126  ;;  %v3672_v40 = vadd.f32 %v3671_v39, %v3670_v12  ;;  %v3878_v55 = vpop.f32.mrf.mxu0 }
 0x414   :  { %4132 = vtanh.f32 %v3878_v55  ;;  %v3673_v63 = vpop.f32.mrf.mxu1  ;;  %v1343_v56 = vsel %vm628_vm0, %v1297_v49, 0.0  ;;  %v1295_v6 = vmul.f32 %v4127_v8, %v4929_v10 }
 0x415   :  { %v1897_v17 = vmax.f32 %v3672_v40, 0.0  ;;  %1335 = vadd.xlane.f32.xlu0 %v1334_v58  ;;  %1344 = vadd.xlane.f32.xlu1 %v1343_v56  ;;  %v1160_v18 = vpop.f32.mrf.mxu0 }
 0x416   :  { %4134 = vtanh.f32 %v1160_v18  ;;  %v3674_v21 = vpop.f32.mrf.mxu1  ;;  %v1337_v25 = vsel %vm628_vm0, %v1295_v6, 0.0 }
 0x417   :  { %v1914_v22 = vpack.c.bf16 %v1897_v17, %v1896_v7  ;;  %v3675_v26 = vadd.f32 %v3674_v21, %v3673_v63 }
 0x418   :  { %v3676_v35 = vpop.f32.mrf.mxu1 }
 0x419   :  { %1338 = vadd.xlane.f32.xlu1 %v1337_v25  ;;  %3931 = vmatprep.mubr.msk.bf16.mxu1 %vm628_vm0, %v1914_v22  ;;  %v1898_v34 = vmax.f32 %v3675_v26, 0.0 }
 0x41a   :  { %v3677_v31 = vpop.f32.mrf.mxu1 }
 0x41b   :  { %v3678_v32 = vadd.f32 %v3677_v31, %v3676_v35 }
 0x41d   :  { %v4129_v33 = vpop.eup %4128  ;;  %v1899_v36 = vmax.f32 %v3678_v32, 0.0 }
 0x41e   :  { %v1300_v11 = vmul.f32 %v4129_v33, %v4929_v10 }
 0x41f   :  { %v4131_v12 = vpop.eup %4130  ;;  %v1915_v48 = vpack.c.bf16 %v1899_v36, %v1898_v34  ;;  %v3881_v46 = vpop.f32.mrf.mxu0 }
 0x420   :  { %4136 = vtanh.f32 %v3881_v46  ;;  %v1352_v47 = vsel %vm628_vm0, %v1300_v11, 0.0  ;;  %v1298_v38 = vmul.f32 %v4131_v12, %v4929_v10 }
 0x421   :  { %v4133_v41 = vpop.eup %4132  ;;  %3932 = vmatmul.mubr.msk.bf16.vlgmr.msra.gmra.mxu1 %vm628_vm0, %v1915_v48  ;;  %1353 = vadd.xlane.f32.xlu0 %v1352_v47  ;;  %v1173_v39 = vpop.f32.mrf.mxu0 }
 0x422   :  { %4138 = vtanh.f32 %v1173_v39  ;;  %v1301_v49 = vmul.f32 %v4133_v41, %v4929_v10  ;;  %3936 = vmatpush3.bf16.msra.mxu1 %v4771_v23  ;;  %v1346_v55 = vsel %vm628_vm0, %v1298_v38, 0.0 }
 0x423   :  { %v4135_v8 = vpop.eup %4134  ;;  %v3882_v40 = vpop.f32.mrf.mxu0  ;;  %3937 = vmatprep.subr.bf16.mxu1 %v4778_v24 }
 0x424   :  { %4140 = vtanh.f32 %v3882_v40  ;;  %v1355_v63 = vsel %vm628_vm0, %v1301_v49, 0.0  ;;  %v1299_v58 = vmul.f32 %v4135_v8, %v4929_v10 }
 0x425   :  { %1347 = vadd.xlane.f32.xlu0 %v1346_v55  ;;  %1356 = vadd.xlane.f32.xlu1 %v1355_v63  ;;  %v1176_v56 = vpop.f32.mrf.mxu0 }
 0x426   :  { %4142 = vtanh.f32 %v1176_v56  ;;  %3938 = vmatpush3.bf16.msra.mxu1 %v4778_v24  ;;  %v1349_v6 = vsel %vm628_vm0, %v1299_v58, 0.0 }
 0x429   :  { %1350 = vadd.xlane.f32.xlu1 %v1349_v6 }
 0x42d   :  { %v4137_v23 = vpop.eup %4136 }
 0x42e   :  { %v1304_v7 = vmul.f32 %v4137_v23, %v4929_v10 }
 0x42f   :  { %v4139_v17 = vpop.eup %4138  ;;  %v3885_v18 = vpop.f32.mrf.mxu0 }
 0x430   :  { %4144 = vtanh.f32 %v3885_v18  ;;  %v1364_v21 = vsel %vm628_vm0, %v1304_v7, 0.0  ;;  %v1302_v22 = vmul.f32 %v4139_v17, %v4929_v10 }
 0x431   :  { %v4141_v35 = vpop.eup %4140  ;;  %1365 = vadd.xlane.f32.xlu0 %v1364_v21  ;;  %v1189_v25 = vpop.f32.mrf.mxu0 }
 0x432   :  { %4146 = vtanh.f32 %v1189_v25  ;;  %v1305_v26 = vmul.f32 %v4141_v35, %v4929_v10  ;;  %v1358_v32 = vsel %vm628_vm0, %v1302_v22, 0.0 }
 0x433   :  { %v4143_v24 = vpop.eup %4142  ;;  %v3886_v31 = vpop.f32.mrf.mxu0 }
 0x434   :  { %4148 = vtanh.f32 %v3886_v31  ;;  %v1367_v33 = vsel %vm628_vm0, %v1305_v26, 0.0  ;;  %v1303_v34 = vmul.f32 %v4143_v24, %v4929_v10 }
 0x435   :  { %1359 = vadd.xlane.f32.xlu0 %v1358_v32  ;;  %1368 = vadd.xlane.f32.xlu1 %v1367_v33  ;;  %v1192_v36 = vpop.f32.mrf.mxu0 }
 0x436   :  { %4150 = vtanh.f32 %v1192_v36  ;;  %v1361_v11 = vsel %vm628_vm0, %v1303_v34, 0.0 }
 0x439   :  { %1362 = vadd.xlane.f32.xlu1 %v1361_v11 }
 0x43d   :  { %v4145_v12 = vpop.eup %4144 }
 0x43e   :  { %v1308_v48 = vmul.f32 %v4145_v12, %v4929_v10 }
 0x43f   :  { %v4147_v46 = vpop.eup %4146  ;;  %v3889_v47 = vpop.f32.mrf.mxu0 }
 0x440   :  { %4152 = vtanh.f32 %v3889_v47  ;;  %v1376_v38 = vsel %vm628_vm0, %v1308_v48, 0.0  ;;  %v1306_v41 = vmul.f32 %v4147_v46, %v4929_v10 }
 0x441   :  { %v4149_v39 = vpop.eup %4148  ;;  %1377 = vadd.xlane.f32.xlu0 %v1376_v38  ;;  %v1205_v49 = vpop.f32.mrf.mxu0 }
 0x442   :  { %4154 = vtanh.f32 %v1205_v49  ;;  %v1309_v8 = vmul.f32 %v4149_v39, %v4929_v10  ;;  %v1370_v63 = vsel %vm628_vm0, %v1306_v41, 0.0 }
 0x443   :  { %v4151_v40 = vpop.eup %4150  ;;  %v3890_v55 = vpop.f32.mrf.mxu0 }
 0x444   :  { %4156 = vtanh.f32 %v3890_v55  ;;  %v1379_v58 = vsel %vm628_vm0, %v1309_v8, 0.0  ;;  %v1307_v56 = vmul.f32 %v4151_v40, %v4929_v10 }
 0x445   :  { %1371 = vadd.xlane.f32.xlu0 %v1370_v63  ;;  %1380 = vadd.xlane.f32.xlu1 %v1379_v58  ;;  %v1208_v6 = vpop.f32.mrf.mxu0 }
 0x446   :  { %4158 = vtanh.f32 %v1208_v6  ;;  %v1373_v23 = vsel %vm628_vm0, %v1307_v56, 0.0 }
 0x449   :  { %1374 = vadd.xlane.f32.xlu1 %v1373_v23 }
 0x44d   :  { %v4153_v7 = vpop.eup %4152 }
 0x44e   :  { %v1312_v17 = vmul.f32 %v4153_v7, %v4929_v10 }
 0x44f   :  { %v4155_v18 = vpop.eup %4154  ;;  %v3893_v21 = vpop.f32.mrf.mxu0 }
 0x450   :  { %4160 = vtanh.f32 %v3893_v21  ;;  %v1388_v22 = vsel %vm628_vm0, %v1312_v17, 0.0  ;;  %v1310_v35 = vmul.f32 %v4155_v18, %v4929_v10 }
 0x451   :  { %v4157_v25 = vpop.eup %4156  ;;  %1389 = vadd.xlane.f32.xlu0 %v1388_v22  ;;  %v1221_v26 = vpop.f32.mrf.mxu0 }
 0x452   :  { %4162 = vtanh.f32 %v1221_v26  ;;  %v1313_v24 = vmul.f32 %v4157_v25, %v4929_v10  ;;  %v1382_v33 = vsel %vm628_vm0, %v1310_v35, 0.0 }
 0x453   :  { %v4159_v31 = vpop.eup %4158  ;;  %v3894_v32 = vpop.f32.mrf.mxu0 }
 0x454   :  { %4164 = vtanh.f32 %v3894_v32  ;;  %v1391_v34 = vsel %vm628_vm0, %v1313_v24, 0.0  ;;  %v1311_v36 = vmul.f32 %v4159_v31, %v4929_v10  ;;  %v5003_v32 = vld [vmem:[%s5545_s2 + $0x1] ss:$0 sm:$0xff] }
 0x455   :  { %1383 = vadd.xlane.f32.xlu0 %v1382_v33  ;;  %1392 = vadd.xlane.f32.xlu1 %v1391_v34  ;;  %v1224_v11 = vpop.f32.mrf.mxu0 }
 0x456   :  { %4166 = vtanh.f32 %v1224_v11  ;;  %v1385_v12 = vsel %vm628_vm0, %v1311_v36, 0.0 }
 0x459   :  { %1386 = vadd.xlane.f32.xlu1 %v1385_v12 }
 0x45d   :  { %v4161_v48 = vpop.eup %4160 }
 0x45e   :  { %v1316_v46 = vmul.f32 %v4161_v48, %v4929_v10 }
 0x45f   :  { %v4163_v47 = vpop.eup %4162  ;;  %v3897_v38 = vpop.f32.mrf.mxu0 }
 0x460   :  { %4168 = vtanh.f32 %v3897_v38  ;;  %v1400_v41 = vsel %vm628_vm0, %v1316_v46, 0.0  ;;  %v1314_v39 = vmul.f32 %v4163_v47, %v4929_v10 }
 0x461   :  { %v4165_v49 = vpop.eup %4164  ;;  %1401 = vadd.xlane.f32.xlu0 %v1400_v41  ;;  %v1237_v8 = vpop.f32.mrf.mxu0 }
 0x462   :  { %4170 = vtanh.f32 %v1237_v8  ;;  %v1317_v40 = vmul.f32 %v4165_v49, %v4929_v10  ;;  %v1394_v58 = vsel %vm628_vm0, %v1314_v39, 0.0 }
 0x463   :  { %v4167_v55 = vpop.eup %4166  ;;  %v3898_v63 = vpop.f32.mrf.mxu0 }
 0x464   :  { %4172 = vtanh.f32 %v3898_v63  ;;  %v1403_v56 = vsel %vm628_vm0, %v1317_v40, 0.0  ;;  %v1315_v6 = vmul.f32 %v4167_v55, %v4929_v10 }
 0x465   :  { %1395 = vadd.xlane.f32.xlu0 %v1394_v58  ;;  %1404 = vadd.xlane.f32.xlu1 %v1403_v56  ;;  %v1240_v23 = vpop.f32.mrf.mxu0 }
 0x466   :  { %4174 = vtanh.f32 %v1240_v23  ;;  %v1397_v7 = vsel %vm628_vm0, %v1315_v6, 0.0 }
 0x469   :  { %1398 = vadd.xlane.f32.xlu1 %v1397_v7 }
 0x46d   :  { %v4169_v17 = vpop.eup %4168 }
 0x46e   :  { %v1320_v18 = vmul.f32 %v4169_v17, %v4929_v10 }
 0x46f   :  { %v4171_v21 = vpop.eup %4170 }
 0x470   :  { %v1412_v22 = vsel %vm628_vm0, %v1320_v18, 0.0  ;;  %v1318_v35 = vmul.f32 %v4171_v21, %v4929_v10 }
 0x471   :  { %v4173_v25 = vpop.eup %4172  ;;  %1413 = vadd.xlane.f32.xlu0 %v1412_v22  ;;  %v3905_v26 = vpop.f32.mrf.mxu0 }
 0x472   :  { %v1321_v24 = vmul.f32 %v4173_v25, %v4929_v10  ;;  %v1406_v34 = vsel %vm628_vm0, %v1318_v35, 0.0  ;;  %v5009_v48 = vadd.f32 %v3905_v26, %v5003_v32 }
 0x473   :  { %v4175_v31 = vpop.eup %4174  ;;  %v2023_v33 = vpop.f32.mrf.mxu0 }
 0x474   :  { %v1415_v36 = vsel %vm628_vm0, %v1321_v24, 0.0  ;;  %v1319_v11 = vmul.f32 %v4175_v31, %v4929_v10  ;;  %v5015_v38 = vadd.f32 %v5003_v32, %v2023_v33 }
 0x475   :  { %1407 = vadd.xlane.f32.xlu0 %v1406_v34  ;;  %1416 = vadd.xlane.f32.xlu1 %v1415_v36  ;;  %v3906_v12 = vpop.f32.mrf.mxu0 }
 0x476   :  { %v5012_v46 = vadd.f32 %v3906_v12, %v5003_v32  ;;  %v1409_v49 = vsel %vm628_vm0, %v1319_v11, 0.0 }
 0x477   :  { %v2026_v47 = vpop.f32.mrf.mxu0 }
 0x478   :  { %v5020_v39 = vadd.f32 %v5003_v32, %v2026_v47 }
 0x479   :  { %1410 = vadd.xlane.f32.xlu1 %v1409_v49 }
 0x481   :  { %v5025_v40 = vpop.f32.mrf.mxu0 }
 0x483   :  { %v5027_v55 = vpop.f32.mrf.mxu0 }
 0x485   :  { %v3910_v63 = vpop.f32.mrf.mxu0 }
 0x487   :  { %v5029_v58 = vpop.f32.mrf.mxu0 }
 0x491   :  { %v3913_v56 = vpop.f32.mrf.mxu0 }
 0x493   :  { %v2055_v6 = vpop.f32.mrf.mxu0 }
 0x495   :  { %v3914_v23 = vpop.f32.mrf.mxu0 }
 0x497   :  { %v2058_v7 = vpop.f32.mrf.mxu0 }
 0x4a1   :  { %v3917_v17 = vpop.f32.mrf.mxu0 }
 0x4a2   :  { %v2080_v9 = vadd.f32 %v3917_v17, %v5003_v32  ;;  %v2067_v17 = vadd.f32 %v3914_v23, %v5003_v32  ;;  %v2048_v23 = vadd.f32 %v5025_v40, %v5003_v32 }
 0x4a3   :  { %v2071_v18 = vpop.f32.mrf.mxu0 }
 0x4a5   :  { %v3918_v21 = vpop.f32.mrf.mxu0 }
 0x4a6   :  { %v2083_v8 = vadd.f32 %v3918_v21, %v5003_v32 }
 0x4a7   :  { %v2074_v22 = vpop.f32.mrf.mxu0 }
 0x4a8   :  { %v2157_v30 = vpack.c.bf16 %v2083_v8, %v2080_v9  ;;  %v2075_v52 = vadd.f32 %v5003_v32, %v2074_v22  ;;  %v2064_v9 = vadd.f32 %v3913_v56, %v5003_v32 }
 0x4b1   :  { %v3921_v35 = vpop.f32.mrf.mxu0 }
 0x4b3   :  { %v5031_v25 = vpop.f32.mrf.mxu0 }
 0x4b5   :  { %v3922_v26 = vpop.f32.mrf.mxu0 }
 0x4b6   :  { %v2099_v22 = vadd.f32 %v3922_v26, %v5003_v32  ;;  %v5643_v26 = vpack.c.bf16 %v5012_v46, %v5009_v48  ;;  %v4375_v48 = vld [vmem:[#allocation2 + $0x144] ss:$8 sps:$4 sm:$0xff]   ;;  %v4376_v46 = vld [vmem:[#allocation2 + $0x140] ss:$8 sps:$4 sm:$0xff]  }
 0x4b7   :  { %v5033_v24 = vpop.f32.mrf.mxu0 }
 0x4c1   :  { %v3925_v31 = vpop.f32.mrf.mxu0 }
 0x4c3   :  { %v2103_v33 = vpop.f32.mrf.mxu0 }
 0x4c5   :  { %v3926_v34 = vpop.f32.mrf.mxu0 }
 0x4c7   :  { %v2106_v36 = vpop.f32.mrf.mxu0 }
 0x4c8   :  { %v2107_v56 = vadd.f32 %v5003_v32, %v2106_v36 }
 0x4d1   :  { %v3929_v11 = vpop.f32.mrf.mxu0 }
 0x4d3   :  { %v2119_v47 = vpop.f32.mrf.mxu0 }
 0x4d5   :  { %v3930_v13 = vpop.f32.mrf.mxu0 }
 0x4d6   :  { %v2131_v27 = vadd.f32 %v3930_v13, %v5003_v32  ;;  %v2120_v13 = vadd.f32 %v5003_v32, %v2119_v47  ;;  %v4369_v47 = vld [vmem:[#allocation2 + $0x114] ss:$8 sps:$4 sm:$0xff]  }
 0x4d7   :  { %v2122_v5 = vpop.f32.mrf.mxu0 }
 0x4e1   :  { %v3933_v12 = vpop.f32.mrf.mxu1 }
 0x4e2   :  { %v2144_v2 = vadd.f32 %v3933_v12, %v5003_v32  ;;  %v2072_v12 = vadd.f32 %v5003_v32, %v2071_v18 }
 0x4e3   :  { %v2135_v49 = vpop.f32.mrf.mxu1 }
 0x4e4   :  { %v2136_v53 = vadd.f32 %v5003_v32, %v2135_v49  ;;  %v2156_v49 = vpack.c.bf16 %v2075_v52, %v2072_v12  ;;  %v2112_v52 = vadd.f32 %v3925_v31, %v5003_v32  ;;  %v4374_v12 = vld [vmem:[#allocation2 + $0x130] ss:$8 sps:$4 sm:$0xff]  }
 0x4e5   :  { %v3934_v41 = vpop.f32.mrf.mxu1 }
 0x4e6   :  { %v2147_v14 = vadd.f32 %v3934_v41, %v5003_v32  ;;  %v2128_v41 = vadd.f32 %v3929_v11, %v5003_v32  ;;  %v2088_v11 = vadd.f32 %v5003_v32, %v5031_v25  ;;  %v4373_v25 = vld [vmem:[#allocation2 + $0x134] ss:$8 sps:$4 sm:$0xff]  }
 0x4e7   :  { %v2138_v45 = vpop.f32.mrf.mxu1 }
 0x4e8   :  { %v2165_v43 = vpack.c.bf16 %v2147_v14, %v2144_v2  ;;  %v2139_v51 = vadd.f32 %v5003_v32, %v2138_v45  ;;  %v2163_v14 = vpack.c.bf16 %v2131_v27, %v2128_v41  ;;  %v2123_v45 = vadd.f32 %v5003_v32, %v2122_v5  ;;  %v4379_v41 = vld [vmem:[#allocation2 + $0x164] ss:$8 sps:$4 sm:$0xff]  }
 0x4e9   :  { %v2056_v2 = vadd.f32 %v5003_v32, %v2055_v6  ;;  %v2051_v27 = vadd.f32 %v3910_v63, %v5003_v32  ;;  %v2043_v6 = vadd.f32 %v5003_v32, %v5029_v58  ;;  %v2040_v63 = vadd.f32 %v5003_v32, %v5027_v55 }
 0x4ea   :  { %v2164_v21 = vpack.c.bf16 %v2139_v51, %v2136_v53  ;;  %3697 = vmatprep.subr.bf16.mxu0 %v2165_v43  ;;  %v2155_v43 = vpack.c.bf16 %v2067_v17, %v2064_v9  ;;  %v2059_v51 = vadd.f32 %v5003_v32, %v2058_v7  ;;  %v2162_v53 = vpack.c.bf16 %v2123_v45, %v2120_v13  ;;  %v4380_v17 = vld [vmem:[#allocation2 + $0x160] ss:$8 sps:$4 sm:$0xff]   ;;  %v4383_v45 = vld [vmem:[#allocation2 + $0x184] ss:$8 sps:$4 sm:$0xff]   ;;  %v4385_v13 = vld [vmem:[#allocation2 + $0x194] ss:$8 sps:$4 sm:$0xff]  }
 0x4eb   :  { %3698 = vmatpush3.bf16.msra.mxu0 %v2157_v30  ;;  %v2115_v30 = vadd.f32 %v3926_v34, %v5003_v32  ;;  %v2104_v7 = vadd.f32 %v5003_v32, %v2103_v33  ;;  %v2153_v18 = vpack.c.bf16 %v2051_v27, %v2048_v23  ;;  %v2096_v34 = vadd.f32 %v3921_v35, %v5003_v32  ;;  %v4368_v35 = vld [vmem:[#allocation2 + $0x100] ss:$8 sps:$4 sm:$0xff]  }
 0x4ec   :  { %3699 = vmatprep.subr.bf16.mxu0 %v2164_v21  ;;  %v2154_v5 = vpack.c.bf16 %v2059_v51, %v2056_v2  ;;  %v2152_v36 = vpack.c.bf16 %v2043_v6, %v2040_v63  ;;  %v2091_v33 = vadd.f32 %v5003_v32, %v5033_v24  ;;  %v5644_v55 = vpack.c.bf16 %v5020_v39, %v5015_v38  ;;  %v4370_v24 = vld [vmem:[#allocation2 + $0x110] ss:$8 sps:$4 sm:$0xff]   ;;  %v4371_v21 = vld [vmem:[#allocation2 + $0x124] ss:$8 sps:$4 sm:$0xff]   ;;  %v4372_v32 = vld [vmem:[#allocation2 + $0x120] ss:$8 sps:$4 sm:$0xff]  }
 0x4ed   :  { %v2161_v8 = vpack.c.bf16 %v2115_v30, %v2112_v52  ;;  %v2160_v31 = vpack.c.bf16 %v2107_v56, %v2104_v7  ;;  %v2159_v40 = vpack.c.bf16 %v2099_v22, %v2096_v34  ;;  %v4377_v38 = vld [vmem:[#allocation2 + $0x154] ss:$8 sps:$4 sm:$0xff]   ;;  %v4378_v39 = vld [vmem:[#allocation2 + $0x150] ss:$8 sps:$4 sm:$0xff]   ;;  %v4384_v9 = vld [vmem:[#allocation2 + $0x180] ss:$8 sps:$4 sm:$0xff]  }
 0x4ee   :  { %v2158_v58 = vpack.c.bf16 %v2091_v33, %v2088_v11  ;;  %v4387_v51 = vld [vmem:[#allocation2 + $0x1a4] ss:$8 sps:$4 sm:$0xff]   ;;  %v4388_v30 = vld [vmem:[#allocation2 + $0x1a0] ss:$8 sps:$4 sm:$0xff]   ;;  %v4390_v2 = vld [vmem:[#allocation2 + $0x1b0] ss:$8 sps:$4 sm:$0xff]  }
 0x4ef   :  { %3700 = vmatpush3.bf16.msra.mxu0 %v2156_v49  ;;  %v4381_v49 = vld [vmem:[#allocation2 + $0x174] ss:$8 sps:$4 sm:$0xff]   ;;  %v4391_v52 = vld [vmem:[#allocation2 + $0x1c4] ss:$8 sps:$4 sm:$0xff]   ;;  %v4392_v27 = vld [vmem:[#allocation2 + $0x1c0] ss:$8 sps:$4 sm:$0xff]  }
 0x4f0   :  { %3701 = vmatprep.subr.bf16.mxu0 %v2163_v14  ;;  %v4382_v14 = vld [vmem:[#allocation2 + $0x170] ss:$8 sps:$4 sm:$0xff]   ;;  %v4395_v56 = vld [vmem:[#allocation2 + $0x1e4] ss:$8 sps:$4 sm:$0xff]   ;;  %v4396_v23 = vld [vmem:[#allocation2 + $0x1e0] ss:$8 sps:$4 sm:$0xff]  }
 0x4f1   :  { %v4397_v7 = vld [vmem:[#allocation2 + $0x1f4] ss:$8 sps:$4 sm:$0xff]  }
 0x4f3   :  { %3702 = vmatpush3.bf16.msra.mxu0 %v2155_v43  ;;  %v4386_v43 = vld [vmem:[#allocation2 + $0x190] ss:$8 sps:$4 sm:$0xff]  }
 0x4f4   :  { %3703 = vmatprep.subr.bf16.mxu0 %v2162_v53  ;;  %v4389_v53 = vld [vmem:[#allocation2 + $0x1b4] ss:$8 sps:$4 sm:$0xff]  }
 0x4f7   :  { %3704 = vmatpush3.bf16.msra.mxu0 %v2154_v5  ;;  %v4393_v5 = vld [vmem:[#allocation2 + $0x1d4] ss:$8 sps:$4 sm:$0xff]  }
 0x4f8   :  { %3705 = vmatprep.subr.bf16.mxu0 %v2161_v8  ;;  %v4394_v8 = vld [vmem:[#allocation2 + $0x1d0] ss:$8 sps:$4 sm:$0xff]  }
 0x4fb   :  { %3706 = vmatpush3.bf16.msra.mxu0 %v2153_v18  ;;  %v4398_v18 = vld [vmem:[#allocation2 + $0x1f0] ss:$8 sps:$4 sm:$0xff]  }
 0x4fc   :  { %3707 = vmatprep.subr.bf16.mxu0 %v2160_v31 }
 0x4ff   :  { %3708 = vmatpush3.bf16.msra.mxu0 %v2152_v36 }
 0x500   :  { %3709 = vmatprep.subr.bf16.mxu0 %v2159_v40 }
 0x503   :  { %3710 = vmatpush3.bf16.msra.mxu0 %v5643_v26 }
 0x504   :  { %3711 = vmatprep.subr.bf16.mxu0 %v2158_v58 }
 0x507   :  { %3712 = vmatpush3.bf16.msra.mxu0 %v5644_v55 }
 0x50a   :  { %2199 = vmatmul.mubr.bf16.vlgmr.msra.gmra.mxu0 %v4368_v35 }
 0x50b   :  { %2206 = vmatprep.mubr.bf16.mxu0 %v4369_v47 }
 0x512   :  { %2207 = vmatmul.mubr.bf16.gmra.mxu0 %v4370_v24 }
 0x513   :  { %2214 = vmatprep.mubr.bf16.mxu0 %v4371_v21 }
 0x51a   :  { %2215 = vmatmul.mubr.bf16.gmra.mxu0 %v4372_v32 }
 0x51b   :  { %2222 = vmatprep.mubr.bf16.mxu0 %v4373_v25 }
 0x522   :  { %2223 = vmatmul.mubr.bf16.gmra.mxu0 %v4374_v12 }
 0x523   :  { %2230 = vmatprep.mubr.bf16.mxu0 %v4375_v48 }
 0x52a   :  { %2231 = vmatmul.mubr.bf16.gmra.mxu0 %v4376_v46 }
 0x52b   :  { %2238 = vmatprep.mubr.bf16.mxu0 %v4377_v38 }
 0x532   :  { %2239 = vmatmul.mubr.bf16.gmra.mxu0 %v4378_v39 }
 0x533   :  { %2246 = vmatprep.mubr.bf16.mxu0 %v4379_v41 }
 0x53a   :  { %2247 = vmatmul.mubr.bf16.gmra.mxu0 %v4380_v17 }
 0x53b   :  { %2254 = vmatprep.mubr.bf16.mxu0 %v4381_v49 }
 0x542   :  { %2255 = vmatmul.mubr.bf16.gmra.mxu0 %v4382_v14 }
 0x543   :  { %2262 = vmatprep.mubr.bf16.mxu0 %v4383_v45 }
 0x54a   :  { %2263 = vmatmul.mubr.bf16.gmra.mxu0 %v4384_v9 }
 0x54b   :  { %2270 = vmatprep.mubr.bf16.mxu0 %v4385_v13 }
 0x552   :  { %2271 = vmatmul.mubr.bf16.gmra.mxu0 %v4386_v43 }
 0x553   :  { %2278 = vmatprep.mubr.bf16.mxu0 %v4387_v51 }
 0x55a   :  { %2279 = vmatmul.mubr.bf16.gmra.mxu0 %v4388_v30 }
 0x55b   :  { %2286 = vmatprep.mubr.bf16.mxu0 %v4389_v53 }
 0x562   :  { %2287 = vmatmul.mubr.bf16.gmra.mxu0 %v4390_v2 }
 0x563   :  { %2294 = vmatprep.mubr.bf16.mxu0 %v4391_v52 }
 0x56a   :  { %2295 = vmatmul.mubr.bf16.gmra.mxu0 %v4392_v27 }
 0x56b   :  { %2302 = vmatprep.mubr.bf16.mxu0 %v4393_v5 }
 0x572   :  { %2303 = vmatmul.mubr.bf16.gmra.mxu0 %v4394_v8 }
 0x573   :  { %2310 = vmatprep.mubr.bf16.mxu0 %v4395_v56 }
 0x57a   :  { %2311 = vmatmul.mubr.bf16.gmra.mxu0 %v4396_v23 }
 0x57b   :  { %2318 = vmatprep.mubr.bf16.mxu0 %v4397_v7 }
 0x582   :  { %2319 = vmatmul.mubr.bf16.gmra.mxu0 %v4398_v18 }
 0x5ca   :  { %v3713_v6 = vpop.f32.mrf.mxu0 }
 0x5cc   :  { %v3714_v22 = vpop.f32.mrf.mxu0 }
 0x5cd   :  { %v5074_v34 = vadd.f32 %v3714_v22, %v3713_v6 }
 0x5ce   :  { %v3716_v31 = vpop.f32.mrf.mxu0 }
 0x5d0   :  { %v3717_v63 = vpop.f32.mrf.mxu0 }
 0x5d1   :  { %v5076_v36 = vadd.f32 %v3717_v63, %v3716_v31 }
 0x5d2   :  { %v3719_v40 = vpop.f32.mrf.mxu0 }
 0x5d3   :  { %v2327_v33 = vpack.c.bf16 %v5076_v36, %v5074_v34 }
 0x5d4   :  { %v3720_v11 = vpop.f32.mrf.mxu0 }
 0x5d5   :  { %3939 = vmatprep.mubr.msk.bf16.mxu1 %vm628_vm0, %v2327_v33  ;;  %v5081_v55 = vadd.f32 %v3720_v11, %v3719_v40 }
 0x5d6   :  { %v3722_v58 = vpop.f32.mrf.mxu0 }
 0x5d8   :  { %v3723_v26 = vpop.f32.mrf.mxu0 }
 0x5d9   :  { %v5083_v35 = vadd.f32 %v3723_v26, %v3722_v58 }
 0x5da   :  { %v3725_v47 = vpop.f32.mrf.mxu0 }
 0x5db   :  { %v2328_v24 = vpack.c.bf16 %v5083_v35, %v5081_v55 }
 0x5dc   :  { %v3726_v21 = vpop.f32.mrf.mxu0 }
 0x5dd   :  { %3940 = vmatmul.mubr.msk.bf16.vlgmr.msra.gmra.mxu1 %vm628_vm0, %v2328_v24  ;;  %v5088_v12 = vadd.f32 %v3726_v21, %v3725_v47 }
 0x5de   :  { %v3728_v32 = vpop.f32.mrf.mxu0 }
 0x5e0   :  { %v3729_v25 = vpop.f32.mrf.mxu0 }
 0x5e1   :  { %v5090_v48 = vadd.f32 %v3729_v25, %v3728_v32 }
 0x5e2   :  { %v3731_v46 = vpop.f32.mrf.mxu0 }
 0x5e3   :  { %v2329_v38 = vpack.c.bf16 %v5090_v48, %v5088_v12 }
 0x5e4   :  { %v3732_v39 = vpop.f32.mrf.mxu0 }
 0x5e5   :  { %3943 = vmatprep.mubr.msk.bf16.mxu1 %vm628_vm0, %v2329_v38  ;;  %v5095_v49 = vadd.f32 %v3732_v39, %v3731_v46 }
 0x5e6   :  { %v3734_v41 = vpop.f32.mrf.mxu0 }
 0x5e8   :  { %v3735_v17 = vpop.f32.mrf.mxu0 }
 0x5e9   :  { %v5097_v14 = vadd.f32 %v3735_v17, %v3734_v41 }
 0x5ea   :  { %v3737_v45 = vpop.f32.mrf.mxu0 }
 0x5eb   :  { %v2330_v9 = vpack.c.bf16 %v5097_v14, %v5095_v49 }
 0x5ec   :  { %v3738_v13 = vpop.f32.mrf.mxu0 }
 0x5ed   :  { %3944 = vmatmul.mubr.msk.bf16.gmra.mxu1 %vm628_vm0, %v2330_v9  ;;  %v5102_v30 = vadd.f32 %v3738_v13, %v3737_v45 }
 0x5ee   :  { %v3740_v43 = vpop.f32.mrf.mxu0 }
 0x5f0   :  { %v3741_v51 = vpop.f32.mrf.mxu0 }
 0x5f1   :  { %v5104_v53 = vadd.f32 %v3741_v51, %v3740_v43 }
 0x5f2   :  { %v3743_v2 = vpop.f32.mrf.mxu0 }
 0x5f3   :  { %v2331_v52 = vpack.c.bf16 %v5104_v53, %v5102_v30 }
 0x5f4   :  { %v3744_v27 = vpop.f32.mrf.mxu0 }
 0x5f5   :  { %3947 = vmatprep.mubr.msk.bf16.mxu1 %vm628_vm0, %v2331_v52  ;;  %v5109_v56 = vadd.f32 %v3744_v27, %v3743_v2 }
 0x5f6   :  { %v3746_v5 = vpop.f32.mrf.mxu0 }
 0x5f8   :  { %v3747_v8 = vpop.f32.mrf.mxu0 }
 0x5f9   :  { %v5111_v23 = vadd.f32 %v3747_v8, %v3746_v5 }
 0x5fa   :  { %v3749_v7 = vpop.f32.mrf.mxu0 }
 0x5fb   :  { %v2332_v18 = vpack.c.bf16 %v5111_v23, %v5109_v56 }
 0x5fc   :  { %v3750_v6 = vpop.f32.mrf.mxu0 }
 0x5fd   :  { %3948 = vmatmul.mubr.msk.bf16.gmra.mxu1 %vm628_vm0, %v2332_v18  ;;  %v5116_v63 = vadd.f32 %v3750_v6, %v3749_v7 }
 0x5fe   :  { %v3752_v22 = vpop.f32.mrf.mxu0 }
 0x5ff   :  { %5645 = vst [vmem:[#allocation24_spill] sm:$0xff] %v5116_v63 }
 0x600   :  { %v3753_v31 = vpop.f32.mrf.mxu0 }
 0x601   :  { %v5118_v40 = vadd.f32 %v3753_v31, %v3752_v22 }
 0x602   :  { %v3755_v33 = vpop.f32.mrf.mxu0 }
 0x603   :  { %5646 = vst [vmem:[#allocation25_spill] sm:$0xff] %v5118_v40  ;;  %v2333_v11 = vpack.c.bf16 %v5118_v40, %v5116_v63 }
 0x604   :  { %v3756_v58 = vpop.f32.mrf.mxu0 }
 0x605   :  { %3951 = vmatprep.mubr.msk.bf16.mxu1 %vm628_vm0, %v2333_v11  ;;  %v5123_v24 = vadd.f32 %v3756_v58, %v3755_v33 }
 0x606   :  { %v3758_v26 = vpop.f32.mrf.mxu0 }
 0x607   :  { %5647 = vst [vmem:[#allocation26_spill] sm:$0xff] %v5123_v24 }
 0x608   :  { %v3759_v47 = vpop.f32.mrf.mxu0 }
 0x609   :  { %v5125_v21 = vadd.f32 %v3759_v47, %v3758_v26 }
 0x60a   :  { %v3761_v32 = vpop.f32.mrf.mxu0 }
 0x60b   :  { %5648 = vst [vmem:[#allocation27_spill] sm:$0xff] %v5125_v21  ;;  %v2334_v25 = vpack.c.bf16 %v5125_v21, %v5123_v24 }
 0x60c   :  { %v3762_v46 = vpop.f32.mrf.mxu0 }
 0x60d   :  { %3952 = vmatmul.mubr.msk.bf16.gmra.mxu1 %vm628_vm0, %v2334_v25  ;;  %v5130_v41 = vadd.f32 %v3762_v46, %v3761_v32 }
 0x60e   :  { %v3764_v38 = vpop.f32.mrf.mxu0 }
 0x60f   :  { %5649 = vst [vmem:[#allocation28_spill] sm:$0xff] %v5130_v41 }
 0x610   :  { %v3765_v39 = vpop.f32.mrf.mxu0 }
 0x611   :  { %v5132_v17 = vadd.f32 %v3765_v39, %v3764_v38 }
 0x612   :  { %v3767_v45 = vpop.f32.mrf.mxu0 }
 0x613   :  { %5650 = vst [vmem:[#allocation29_spill] sm:$0xff] %v5132_v17  ;;  %v2335_v9 = vpack.c.bf16 %v5132_v17, %v5130_v41 }
 0x614   :  { %v3768_v13 = vpop.f32.mrf.mxu0 }
 0x615   :  { %3955 = vmatprep.mubr.msk.bf16.mxu1 %vm628_vm0, %v2335_v9  ;;  %v5137_v2 = vadd.f32 %v3768_v13, %v3767_v45 }
 0x616   :  { %v3770_v43 = vpop.f32.mrf.mxu0 }
 0x617   :  { %5651 = vst [vmem:[#allocation30_spill] sm:$0xff] %v5137_v2 }
 0x618   :  { %v3771_v51 = vpop.f32.mrf.mxu0 }
 0x619   :  { %v5139_v52 = vadd.f32 %v3771_v51, %v3770_v43 }
 0x61a   :  { %v3773_v27 = vpop.f32.mrf.mxu0 }
 0x61b   :  { %5652 = vst [vmem:[#allocation31_spill] sm:$0xff] %v5139_v52  ;;  %v2336_v5 = vpack.c.bf16 %v5139_v52, %v5137_v2 }
 0x61c   :  { %v3774_v8 = vpop.f32.mrf.mxu0 }
 0x61d   :  { %3956 = vmatmul.mubr.msk.bf16.gmra.mxu1 %vm628_vm0, %v2336_v5  ;;  %v5144_v6 = vadd.f32 %v3774_v8, %v3773_v27 }
 0x61e   :  { %v3776_v7 = vpop.f32.mrf.mxu0 }
 0x61f   :  { %5653 = vst [vmem:[#allocation32_spill] sm:$0xff] %v5144_v6 }
 0x620   :  { %v3777_v18 = vpop.f32.mrf.mxu0 }
 0x621   :  { %v5146_v22 = vadd.f32 %v3777_v18, %v3776_v7 }
 0x622   :  { %v3779_v31 = vpop.f32.mrf.mxu0 }
 0x623   :  { %5654 = vst [vmem:[#allocation33_spill] sm:$0xff] %v5146_v22  ;;  %v2337_v33 = vpack.c.bf16 %v5146_v22, %v5144_v6 }
 0x624   :  { %v3780_v11 = vpop.f32.mrf.mxu0 }
 0x625   :  { %3959 = vmatprep.mubr.msk.bf16.mxu1 %vm628_vm0, %v2337_v33  ;;  %v5151_v47 = vadd.f32 %v3780_v11, %v3779_v31 }
 0x626   :  { %v3782_v58 = vpop.f32.mrf.mxu0 }
 0x627   :  { %5655 = vst [vmem:[#allocation34_spill] sm:$0xff] %v5151_v47 }
 0x628   :  { %v3783_v26 = vpop.f32.mrf.mxu0 }
 0x629   :  { %v5153_v32 = vadd.f32 %v3783_v26, %v3782_v58 }
 0x62a   :  { %v3785_v25 = vpop.f32.mrf.mxu0 }
 0x62b   :  { %5656 = vst [vmem:[#allocation35_spill] sm:$0xff] %v5153_v32  ;;  %v2338_v46 = vpack.c.bf16 %v5153_v32, %v5151_v47 }
 0x62c   :  { %v3786_v38 = vpop.f32.mrf.mxu0 }
 0x62d   :  { %3960 = vmatmul.mubr.msk.bf16.gmra.mxu1 %vm628_vm0, %v2338_v46  ;;  %v5158_v9 = vadd.f32 %v3786_v38, %v3785_v25 }
 0x62e   :  { %v3788_v39 = vpop.f32.mrf.mxu0 }
 0x62f   :  { %5657 = vst [vmem:[#allocation36_spill] sm:$0xff] %v5158_v9 }
 0x630   :  { %v3789_v45 = vpop.f32.mrf.mxu0 }
 0x631   :  { %v5160_v13 = vadd.f32 %v3789_v45, %v3788_v39 }
 0x632   :  { %v3791_v43 = vpop.f32.mrf.mxu0 }
 0x633   :  { %5658 = vst [vmem:[#allocation37_spill] sm:$0xff] %v5160_v13  ;;  %v2339_v51 = vpack.c.bf16 %v5160_v13, %v5158_v9 }
 0x634   :  { %v3792_v27 = vpop.f32.mrf.mxu0 }
 0x635   :  { %3963 = vmatprep.mubr.msk.bf16.mxu1 %vm628_vm0, %v2339_v51  ;;  %v5165_v7 = vadd.f32 %v3792_v27, %v3791_v43 }
 0x636   :  { %v3794_v5 = vpop.f32.mrf.mxu0 }
 0x637   :  { %5659 = vst [vmem:[#allocation38_spill] sm:$0xff] %v5165_v7 }
 0x638   :  { %v3795_v8 = vpop.f32.mrf.mxu0 }
 0x639   :  { %v5167_v18 = vadd.f32 %v3795_v8, %v3794_v5 }
 0x63a   :  { %v3797_v31 = vpop.f32.mrf.mxu0 }
 0x63b   :  { %5660 = vst [vmem:[#allocation39_spill] sm:$0xff] %v5167_v18  ;;  %v2340_v33 = vpack.c.bf16 %v5167_v18, %v5165_v7 }
 0x63c   :  { %v3798_v11 = vpop.f32.mrf.mxu0 }
 0x63d   :  { %3964 = vmatmul.mubr.msk.bf16.gmra.mxu1 %vm628_vm0, %v2340_v33  ;;  %v5172_v25 = vadd.f32 %v3798_v11, %v3797_v31 }
 0x63e   :  { %v3800_v58 = vpop.f32.mrf.mxu0 }
 0x63f   :  { %5661 = vst [vmem:[#allocation40_spill] sm:$0xff] %v5172_v25 }
 0x640   :  { %v3801_v26 = vpop.f32.mrf.mxu0 }
 0x641   :  { %v5174_v46 = vadd.f32 %v3801_v26, %v3800_v58 }
 0x642   :  { %v3803_v38 = vpop.f32.mrf.mxu0 }
 0x643   :  { %5662 = vst [vmem:[#allocation41_spill] sm:$0xff] %v5174_v46  ;;  %v2341_v39 = vpack.c.bf16 %v5174_v46, %v5172_v25 }
 0x644   :  { %v3804_v45 = vpop.f32.mrf.mxu0 }
 0x645   :  { %3967 = vmatprep.mubr.msk.bf16.mxu1 %vm628_vm0, %v2341_v39  ;;  %v5179_v27 = vadd.f32 %v3804_v45, %v3803_v38 }
 0x646   :  { %v3806_v43 = vpop.f32.mrf.mxu0 }
 0x647   :  { %5663 = vst [vmem:[#allocation42_spill] sm:$0xff] %v5179_v27 }
 0x648   :  { %v3807_v51 = vpop.f32.mrf.mxu0 }
 0x649   :  { %v5181_v5 = vadd.f32 %v3807_v51, %v3806_v43 }
 0x64b   :  { %5664 = vst [vmem:[#allocation43_spill] sm:$0xff] %v5181_v5  ;;  %v2342_v8 = vpack.c.bf16 %v5181_v5, %v5179_v27 }
 0x64d   :  { %3968 = vmatmul.mubr.msk.bf16.gmra.mxu1 %vm628_vm0, %v2342_v8 }
 0x69d   :  { %v3941_v31 = vpop.f32.mrf.mxu1 }
 0x69e   :  { %4176 = vtanh.f32 %v3941_v31 }
 0x69f   :  { %v2425_v33 = vpop.f32.mrf.mxu1 }
 0x6a0   :  { %4178 = vtanh.f32 %v2425_v33 }
 0x6a1   :  { %v3942_v11 = vpop.f32.mrf.mxu1 }
 0x6a2   :  { %4180 = vtanh.f32 %v3942_v11 }
 0x6a3   :  { %v2428_v58 = vpop.f32.mrf.mxu1 }
 0x6a4   :  { %4182 = vtanh.f32 %v2428_v58 }
 0x6ab   :  { %v4177_v26 = vpop.eup %4176 }
 0x6ac   :  { %v2586_v39 = vmul.f32 %v4177_v26, %v4929_v10 }
 0x6ad   :  { %v4179_v38 = vpop.eup %4178  ;;  %v3945_v45 = vpop.f32.mrf.mxu1 }
 0x6ae   :  { %4184 = vtanh.f32 %v3945_v45  ;;  %v2622_v43 = vsel %vm628_vm0, %v2586_v39, 0.0  ;;  %v2584_v51 = vmul.f32 %v4179_v38, %v4929_v10  ;;  %v5195_v45 = vld [vmem:[%s5547_s4] ss:$0 sm:$0xff] }
 0x6af   :  { %v4181_v5 = vpop.eup %4180  ;;  %2623 = vadd.xlane.f32.xlu0 %v2622_v43  ;;  %v2441_v8 = vpop.f32.mrf.mxu1 }
 0x6b0   :  { %4186 = vtanh.f32 %v2441_v8  ;;  %v2587_v31 = vmul.f32 %v4181_v5, %v4929_v10  ;;  %v2616_v58 = vsel %vm628_vm0, %v2584_v51, 0.0 }
 0x6b1   :  { %v4183_v33 = vpop.eup %4182  ;;  %v3946_v11 = vpop.f32.mrf.mxu1 }
 0x6b2   :  { %4188 = vtanh.f32 %v3946_v11  ;;  %v2625_v26 = vsel %vm628_vm0, %v2587_v31, 0.0  ;;  %v2585_v39 = vmul.f32 %v5195_v45, %v4183_v33 }
 0x6b3   :  { %2617 = vadd.xlane.f32.xlu0 %v2616_v58  ;;  %2626 = vadd.xlane.f32.xlu1 %v2625_v26  ;;  %v2444_v38 = vpop.f32.mrf.mxu1 }
 0x6b4   :  { %4190 = vtanh.f32 %v2444_v38  ;;  %v2619_v10 = vsel %vm628_vm0, %v2585_v39, 0.0 }
 0x6b7   :  { %2620 = vadd.xlane.f32.xlu1 %v2619_v10 }
 0x6bb   :  { %v4185_v5 = vpop.eup %4184 }
 0x6bc   :  { %v2590_v43 = vmul.f32 %v5195_v45, %v4185_v5 }
 0x6bd   :  { %v4187_v51 = vpop.eup %4186  ;;  %v3949_v8 = vpop.f32.mrf.mxu1 }
 0x6be   :  { %4192 = vtanh.f32 %v3949_v8  ;;  %v2634_v31 = vsel %vm628_vm0, %v2590_v43, 0.0  ;;  %v2588_v11 = vmul.f32 %v5195_v45, %v4187_v51 }
 0x6bf   :  { %v4189_v46 = vpop.eup %4188  ;;  %2635 = vadd.xlane.f32.xlu0 %v2634_v31  ;;  %v2457_v33 = vpop.f32.mrf.mxu1 }
 0x6c0   :  { %4194 = vtanh.f32 %v2457_v33  ;;  %v2591_v58 = vmul.f32 %v5195_v45, %v4189_v46  ;;  %v2628_v39 = vsel %vm628_vm0, %v2588_v11, 0.0 }
 0x6c1   :  { %v4191_v26 = vpop.eup %4190  ;;  %v3950_v38 = vpop.f32.mrf.mxu1 }
 0x6c2   :  { %4196 = vtanh.f32 %v3950_v38  ;;  %v2637_v10 = vsel %vm628_vm0, %v2591_v58, 0.0  ;;  %v2589_v5 = vmul.f32 %v5195_v45, %v4191_v26 }
 0x6c3   :  { %2629 = vadd.xlane.f32.xlu0 %v2628_v39  ;;  %2638 = vadd.xlane.f32.xlu1 %v2637_v10  ;;  %v2460_v43 = vpop.f32.mrf.mxu1 }
 0x6c4   :  { %4198 = vtanh.f32 %v2460_v43  ;;  %v2631_v51 = vsel %vm628_vm0, %v2589_v5, 0.0 }
 0x6c7   :  { %2632 = vadd.xlane.f32.xlu1 %v2631_v51 }
 0x6cb   :  { %v4193_v8 = vpop.eup %4192 }
 0x6cc   :  { %v2594_v31 = vmul.f32 %v5195_v45, %v4193_v8 }
 0x6cd   :  { %v4195_v46 = vpop.eup %4194  ;;  %v3953_v33 = vpop.f32.mrf.mxu1 }
 0x6ce   :  { %4200 = vtanh.f32 %v3953_v33  ;;  %v2646_v38 = vsel %vm628_vm0, %v2594_v31, 0.0  ;;  %v2592_v11 = vmul.f32 %v5195_v45, %v4195_v46 }
 0x6cf   :  { %v4197_v58 = vpop.eup %4196  ;;  %2647 = vadd.xlane.f32.xlu0 %v2646_v38  ;;  %v2473_v26 = vpop.f32.mrf.mxu1 }
 0x6d0   :  { %4202 = vtanh.f32 %v2473_v26  ;;  %v2595_v39 = vmul.f32 %v5195_v45, %v4197_v58  ;;  %v2640_v5 = vsel %vm628_vm0, %v2592_v11, 0.0 }
 0x6d1   :  { %v4199_v10 = vpop.eup %4198  ;;  %v3954_v43 = vpop.f32.mrf.mxu1 }
 0x6d2   :  { %4204 = vtanh.f32 %v3954_v43  ;;  %v2649_v51 = vsel %vm628_vm0, %v2595_v39, 0.0  ;;  %v2593_v8 = vmul.f32 %v5195_v45, %v4199_v10 }
 0x6d3   :  { %2641 = vadd.xlane.f32.xlu0 %v2640_v5  ;;  %2650 = vadd.xlane.f32.xlu1 %v2649_v51  ;;  %v2476_v31 = vpop.f32.mrf.mxu1 }
 0x6d4   :  { %4206 = vtanh.f32 %v2476_v31  ;;  %v2643_v46 = vsel %vm628_vm0, %v2593_v8, 0.0 }
 0x6d7   :  { %2644 = vadd.xlane.f32.xlu1 %v2643_v46 }
 0x6db   :  { %v4201_v33 = vpop.eup %4200 }
 0x6dc   :  { %v2598_v38 = vmul.f32 %v5195_v45, %v4201_v33 }
 0x6dd   :  { %v4203_v58 = vpop.eup %4202  ;;  %v3957_v26 = vpop.f32.mrf.mxu1 }
 0x6de   :  { %4208 = vtanh.f32 %v3957_v26  ;;  %v2658_v43 = vsel %vm628_vm0, %v2598_v38, 0.0  ;;  %v2596_v11 = vmul.f32 %v5195_v45, %v4203_v58  ;;  %v5223_v26 = vpop.xlane.xlu0 %1323 }
 0x6df   :  { %v4205_v39 = vpop.eup %4204  ;;  %2659 = vadd.xlane.f32.xlu0 %v2658_v43  ;;  %v2489_v10 = vpop.f32.mrf.mxu1 }
 0x6e0   :  { %4210 = vtanh.f32 %v2489_v10  ;;  %v2599_v5 = vmul.f32 %v5195_v45, %v4205_v39  ;;  %v2652_v8 = vsel %vm628_vm0, %v2596_v11, 0.0  ;;  %v5225_v39 = vpop.xlane.xlu1 %1329 }
 0x6e1   :  { %v4207_v51 = vpop.eup %4206  ;;  %v3958_v31 = vpop.f32.mrf.mxu1 }
 0x6e2   :  { %4212 = vtanh.f32 %v3958_v31  ;;  %v2661_v46 = vsel %vm628_vm0, %v2599_v5, 0.0  ;;  %v2597_v33 = vmul.f32 %v5195_v45, %v4207_v51  ;;  %v5228_v27 = vpop.xlane.xlu0 %1326 }
 0x6e3   :  { %2653 = vadd.xlane.f32.xlu0 %v2652_v8  ;;  %2662 = vadd.xlane.f32.xlu1 %v2661_v46  ;;  %v2492_v38 = vpop.f32.mrf.mxu1 }
 0x6e4   :  { %4214 = vtanh.f32 %v2492_v38  ;;  %v2655_v58 = vsel %vm628_vm0, %v2597_v33, 0.0  ;;  %v5233_v25 = vpop.xlane.xlu1 %1332 }
 0x6e7   :  { %2656 = vadd.xlane.f32.xlu1 %v2655_v58 }
 0x6eb   :  { %v4209_v43 = vpop.eup %4208 }
 0x6ec   :  { %v2602_v10 = vmul.f32 %v5195_v45, %v4209_v43  ;;  %v5235_v43 = vpop.xlane.xlu0 %1341 }
 0x6ed   :  { %v4211_v31 = vpop.eup %4210  ;;  %v3961_v11 = vpop.f32.mrf.mxu1 }
 0x6ee   :  { %4216 = vtanh.f32 %v3961_v11  ;;  %v2670_v5 = vsel %vm628_vm0, %v2602_v10, 0.0  ;;  %v2600_v51 = vmul.f32 %v5195_v45, %v4211_v31 }
 0x6ef   :  { %v4213_v8 = vpop.eup %4212  ;;  %2671 = vadd.xlane.f32.xlu0 %v2670_v5  ;;  %v2505_v46 = vpop.f32.mrf.mxu1 }
 0x6f0   :  { %4218 = vtanh.f32 %v2505_v46  ;;  %v2603_v33 = vmul.f32 %v5195_v45, %v4213_v8  ;;  %v2664_v13 = vsel %vm628_vm0, %v2600_v51, 0.0  ;;  %v5240_v5 = vpop.xlane.xlu1 %1344  ;;  %v5243_v46 = vpop.xlane.xlu0 %1335 }
 0x6f1   :  { %v4215_v38 = vpop.eup %4214  ;;  %v3962_v58 = vpop.f32.mrf.mxu1 }
 0x6f2   :  { %4220 = vtanh.f32 %v3962_v58  ;;  %v2673_v11 = vsel %vm628_vm0, %v2603_v33, 0.0  ;;  %v2601_v10 = vmul.f32 %v5195_v45, %v4215_v38 }
 0x6f3   :  { %2665 = vadd.xlane.f32.xlu0 %v2664_v13  ;;  %2674 = vadd.xlane.f32.xlu1 %v2673_v11  ;;  %v2508_v31 = vpop.f32.mrf.mxu1 }
 0x6f4   :  { %4222 = vtanh.f32 %v2508_v31  ;;  %v2667_v8 = vsel %vm628_vm0, %v2601_v10, 0.0  ;;  %v5245_v9 = vpop.xlane.xlu1 %1338  ;;  %v5247_v58 = vpop.xlane.xlu0 %1353 }
 0x6f7   :  { %2668 = vadd.xlane.f32.xlu1 %v2667_v8 }
 0x6f8   :  { %v5252_v8 = vpop.xlane.xlu1 %1356  ;;  %v5255_v6 = vpop.xlane.xlu0 %1347 }
 0x6fb   :  { %v4217_v18 = vpop.eup %4216 }
 0x6fc   :  { %v2606_v51 = vmul.f32 %v5195_v45, %v4217_v18 }
 0x6fd   :  { %v4219_v33 = vpop.eup %4218  ;;  %v3965_v38 = vpop.f32.mrf.mxu1 }
 0x6fe   :  { %4224 = vtanh.f32 %v3965_v38  ;;  %v2682_v13 = vsel %vm628_vm0, %v2606_v51, 0.0  ;;  %v2604_v11 = vmul.f32 %v5195_v45, %v4219_v33 }
 0x6ff   :  { %v4221_v31 = vpop.eup %4220  ;;  %2683 = vadd.xlane.f32.xlu0 %v2682_v13  ;;  %v2521_v10 = vpop.f32.mrf.mxu1 }
 0x700   :  { %4226 = vtanh.f32 %v2521_v10  ;;  %v2607_v7 = vmul.f32 %v5195_v45, %v4221_v31  ;;  %v2676_v18 = vsel %vm628_vm0, %v2604_v11, 0.0  ;;  %v5260_v13 = vpop.xlane.xlu1 %1350  ;;  %v5262_v10 = vpop.xlane.xlu0 %1365 }
 0x701   :  { %v4223_v22 = vpop.eup %4222  ;;  %v3966_v32 = vpop.f32.mrf.mxu1 }
 0x702   :  { %4228 = vtanh.f32 %v3966_v32  ;;  %v2685_v38 = vsel %vm628_vm0, %v2607_v7, 0.0  ;;  %v2605_v51 = vmul.f32 %v5195_v45, %v4223_v22 }
 0x703   :  { %2677 = vadd.xlane.f32.xlu0 %v2676_v18  ;;  %2686 = vadd.xlane.f32.xlu1 %v2685_v38  ;;  %v2524_v33 = vpop.f32.mrf.mxu1 }
 0x704   :  { %4230 = vtanh.f32 %v2524_v33  ;;  %v2679_v31 = vsel %vm628_vm0, %v2605_v51, 0.0  ;;  %v5265_v47 = vpop.xlane.xlu1 %1368  ;;  %v5267_v17 = vpop.xlane.xlu0 %1359 }
 0x707   :  { %2680 = vadd.xlane.f32.xlu1 %v2679_v31 }
 0x708   :  { %v5272_v52 = vpop.xlane.xlu1 %1362  ;;  %v5274_v51 = vpop.xlane.xlu0 %1377 }
 0x70b   :  { %v4225_v32 = vpop.eup %4224 }
 0x70c   :  { %v2610_v7 = vmul.f32 %v5195_v45, %v4225_v32 }
 0x70d   :  { %v4227_v11 = vpop.eup %4226  ;;  %v3969_v22 = vpop.f32.mrf.mxu1 }
 0x70e   :  { %v2694_v18 = vsel %vm628_vm0, %v2610_v7, 0.0  ;;  %v2608_v38 = vmul.f32 %v5195_v45, %v4227_v11  ;;  %4232 = vtanh.f32 %v3969_v22  ;;  %v5280_v22 = vpop.xlane.xlu1 %1380 }
 0x70f   :  { %v4229_v33 = vpop.eup %4228  ;;  %2695 = vadd.xlane.f32.xlu0 %v2694_v18  ;;  %v2537_v4 = vpop.f32.mrf.mxu1 }
 0x710   :  { %4234 = vtanh.f32 %v2537_v4  ;;  %v2611_v31 = vmul.f32 %v5195_v45, %v4229_v33  ;;  %v2688_v32 = vsel %vm628_vm0, %v2608_v38, 0.0  ;;  %v5282_v18 = vpop.xlane.xlu0 %1371 }
 0x711   :  { %v4231_v1 = vpop.eup %4230  ;;  %v3970_v41 = vpop.f32.mrf.mxu1 }
 0x712   :  { %v2697_v3 = vsel %vm628_vm0, %v2611_v31, 0.0  ;;  %v2609_v7 = vmul.f32 %v5195_v45, %v4231_v1  ;;  %4236 = vtanh.f32 %v3970_v41  ;;  %v5285_v33 = vpop.xlane.xlu1 %1374 }
 0x713   :  { %2689 = vadd.xlane.f32.xlu0 %v2688_v32  ;;  %v2540_v11 = vpop.f32.mrf.mxu1  ;;  %2698 = vadd.xlane.f32.xlu1 %v2697_v3 }
 0x714   :  { %4238 = vtanh.f32 %v2540_v11  ;;  %v2691_v4 = vsel %vm628_vm0, %v2609_v7, 0.0  ;;  %v5287_v2 = vpop.xlane.xlu0 %1389 }
 0x716   :  { %v5289_v0 = vpop.xlane.xlu1 %1392 }
 0x717   :  { %2692 = vadd.xlane.f32.xlu1 %v2691_v4 }
 0x718   :  { %v5292_v3 = vpop.xlane.xlu0 %1383 }
 0x71a   :  { %v5297_v4 = vpop.xlane.xlu1 %1386 }
 0x71b   :  { %v4233_v38 = vpop.eup %4232 }
 0x71c   :  { %v2614_v11 = vmul.f32 %v5195_v45, %v4233_v38  ;;  %v5299_v50 = vpop.xlane.xlu0 %1401 }
 0x71d   :  { %v4235_v31 = vpop.eup %4234  ;;  %5665 = vst [vmem:[#allocation44_spill] sm:$0xff] %v5299_v50 }
 0x71e   :  { %v2612_v1 = vmul.f32 %v5195_v45, %v4235_v31  ;;  %v2706_v21 = vsel %vm628_vm0, %v2614_v11, 0.0  ;;  %v5304_v63 = vpop.xlane.xlu1 %1404 }
 0x71f   :  { %v4237_v41 = vpop.eup %4236  ;;  %5666 = vst [vmem:[#allocation45_spill] sm:$0xff] %v5304_v63 }
 0x720   :  { %v2700_v32 = vsel %vm628_vm0, %v2612_v1, 0.0  ;;  %v2615_v31 = vmul.f32 %v5195_v45, %v4237_v41  ;;  %v5307_v1 = vpop.xlane.xlu0 %1395 }
 0x721   :  { %v4239_v40 = vpop.eup %4238  ;;  %2701 = vadd.xlane.f32.xlu0 %v2700_v32  ;;  %5667 = vst [vmem:[#allocation46_spill] sm:$0xff] %v5307_v1 }
 0x722   :  { %v2613_v7 = vmul.f32 %v5195_v45, %v4239_v40  ;;  %v2709_v38 = vsel %vm628_vm0, %v2615_v31, 0.0  ;;  %v5309_v40 = vpop.xlane.xlu1 %1398 }
 0x723   :  { %5668 = vst [vmem:[#allocation47_spill] sm:$0xff] %v5309_v40 }
 0x724   :  { %v2703_v16 = vsel %vm628_vm0, %v2613_v7, 0.0  ;;  %v5311_v32 = vpop.xlane.xlu0 %1413 }
 0x725   :  { %2707 = vadd.xlane.f32.xlu0 %v2706_v21  ;;  %2704 = vadd.xlane.f32.xlu1 %v2703_v16  ;;  %5669 = vst [vmem:[#allocation48_spill] sm:$0xff] %v5311_v32 }
 0x726   :  { %v5313_v50 = vpop.xlane.xlu1 %1416 }
 0x727   :  { %5670 = vst [vmem:[#allocation49_spill] sm:$0xff] %v5313_v50 }
 0x728   :  { %v5315_v11 = vpop.xlane.xlu0 %1407 }
 0x729   :  { %2710 = vadd.xlane.f32.xlu1 %v2709_v38  ;;  %5671 = vst [vmem:[#allocation50_spill] sm:$0xff] %v5315_v11 }
 0x72a   :  { %v5317_v7 = vpop.xlane.xlu1 %1410 }
 0x72b   :  { %5672 = vst [vmem:[#allocation51_spill] sm:$0xff] %v5317_v7 }
 0x738   :  { %v2624_v45 = vpop.xlane.xlu0 %2623 }
 0x739   :  { %v2714_v16 = vsub.f32 %v5225_v39, %v2624_v45 }
 0x73b   :  { %v2746_v21 = vsub.f32 0.0, %v2714_v16 }
 0x73c   :  { %v2618_v41 = vpop.xlane.xlu0 %2617  ;;  %v2627_v63 = vpop.xlane.xlu1 %2626 }
 0x73d   :  { %v2780_v31 = vmul.f32 1.442695, %v2746_v21  ;;  %v2712_v38 = vsub.f32 %v5223_v26, %v2618_v41  ;;  %v2715_v1 = vsub.f32 %v5233_v25, %v2627_v63 }
 0x73f   :  { %4240 = vpow2.f32 %v2780_v31  ;;  %v2744_v40 = vsub.f32 0.0, %v2712_v38  ;;  %v2747_v32 = vsub.f32 0.0, %v2715_v1 }
 0x740   :  { %v2621_v37 = vpop.xlane.xlu1 %2620 }
 0x741   :  { %v2776_v50 = vmul.f32 1.442695, %v2744_v40  ;;  %v2782_v24 = vmul.f32 1.442695, %v2747_v32  ;;  %v2713_v11 = vsub.f32 %v5228_v27, %v2621_v37 }
 0x743   :  { %4242 = vpow2.f32 %v2776_v50  ;;  %v2745_v7 = vsub.f32 0.0, %v2713_v11 }
 0x744   :  { %4244 = vpow2.f32 %v2782_v24 }
 0x745   :  { %v2778_v39 = vmul.f32 1.442695, %v2745_v7 }
 0x747   :  { %4246 = vpow2.f32 %v2778_v39 }
 0x748   :  { %v2636_v45 = vpop.xlane.xlu0 %2635 }
 0x749   :  { %v2718_v16 = vsub.f32 %v5235_v43, %v2636_v45 }
 0x74b   :  { %v2750_v21 = vsub.f32 0.0, %v2718_v16 }
 0x74c   :  { %v4241_v26 = vpop.eup %4240  ;;  %v2630_v41 = vpop.xlane.xlu0 %2629 }
 0x74d   :  { %v2639_v63 = vpop.xlane.xlu1 %2638  ;;  %v2842_v25 = vadd.f32 1.0, %v4241_v26  ;;  %v2788_v31 = vmul.f32 1.442695, %v2750_v21  ;;  %v2716_v1 = vsub.f32 %v5243_v46, %v2630_v41 }
 0x74e   :  { %v2719_v40 = vsub.f32 %v5240_v5, %v2639_v63 }
 0x74f   :  { %4248 = vrcp.f32 %v2842_v25  ;;  %v2748_v37 = vsub.f32 0.0, %v2716_v1 }
 0x750   :  { %v2751_v50 = vsub.f32 0.0, %v2719_v40  ;;  %v4243_v27 = vpop.eup %4242  ;;  %4250 = vpow2.f32 %v2788_v31 }
 0x751   :  { %v2633_v24 = vpop.xlane.xlu1 %2632  ;;  %v4245_v32 = vpop.eup %4244  ;;  %v2840_v11 = vadd.f32 1.0, %v4243_v27  ;;  %v2784_v7 = vmul.f32 1.442695, %v2748_v37 }
 0x752   :  { %v2717_v43 = vsub.f32 %v5245_v9, %v2633_v24  ;;  %v2843_v38 = vadd.f32 1.0, %v4245_v32  ;;  %v2790_v39 = vmul.f32 1.442695, %v2751_v50 }
 0x753   :  { %4252 = vrcp.f32 %v2840_v11 }
 0x754   :  { %v2749_v45 = vsub.f32 0.0, %v2717_v43  ;;  %v4247_v16 = vpop.eup %4246  ;;  %4254 = vrcp.f32 %v2843_v38 }
 0x755   :  { %v2841_v46 = vadd.f32 1.0, %v4247_v16  ;;  %4256 = vpow2.f32 %v2784_v7 }
 0x756   :  { %v2786_v5 = vmul.f32 1.442695, %v2749_v45  ;;  %4258 = vpow2.f32 %v2790_v39 }
 0x757   :  { %4260 = vrcp.f32 %v2841_v46 }
 0x758   :  { %4262 = vpow2.f32 %v2786_v5  ;;  %v2648_v21 = vpop.xlane.xlu0 %2647 }
 0x759   :  { %v2722_v26 = vsub.f32 %v5247_v58, %v2648_v21 }
 0x75b   :  { %v2754_v41 = vsub.f32 0.0, %v2722_v26 }
 0x75c   :  { %v4249_v63 = vpop.eup %4248  ;;  %v2642_v25 = vpop.xlane.xlu0 %2641 }
 0x75d   :  { %v2651_v31 = vpop.xlane.xlu1 %2650  ;;  %v4251_v9 = vpop.eup %4250  ;;  %v2906_v1 = vmul.f32 0.5, %v4249_v63  ;;  %v2796_v40 = vmul.f32 1.442695, %v2754_v41  ;;  %v2720_v37 = vsub.f32 %v5255_v6, %v2642_v25 }
 0x75e   :  { %v2723_v50 = vsub.f32 %v5252_v8, %v2651_v31  ;;  %v2846_v27 = vadd.f32 1.0, %v4251_v9 }
 0x75f   :  { %v2970_v24 = vsub.f32 0.5, %v2906_v1  ;;  %4264 = vpow2.f32 %v2796_v40  ;;  %v2752_v32 = vsub.f32 0.0, %v2720_v37  ;;  %v2938_v7 = vmul.f32 %v4806_v59, %v2906_v1 }
 0x760   :  { %v4253_v11 = vpop.eup %4252  ;;  %4266 = vrcp.f32 %v2846_v27  ;;  %v2755_v58 = vsub.f32 0.0, %v2723_v50 }
 0x761   :  { %v2645_v43 = vpop.xlane.xlu1 %2644  ;;  %v4255_v38 = vpop.eup %4254  ;;  %v3002_v39 = vmul.f32 %v5081_v55, %v2970_v24  ;;  %v2904_v45 = vmul.f32 0.5, %v4253_v11  ;;  %v2792_v16 = vmul.f32 1.442695, %v2752_v32 }
 0x762   :  { %v2721_v46 = vsub.f32 %v5260_v13, %v2645_v43  ;;  %v4257_v6 = vpop.eup %4256  ;;  %v2907_v5 = vmul.f32 0.5, %v4255_v38  ;;  %v2798_v63 = vmul.f32 1.442695, %v2755_v58 }
 0x763   :  { %v4259_v8 = vpop.eup %4258  ;;  %v3034_v21 = vadd.f32 %v3002_v39, %v2938_v7  ;;  %v2968_v26 = vsub.f32 0.5, %v2904_v45  ;;  %v2844_v41 = vadd.f32 1.0, %v4257_v6  ;;  %v2936_v59 = vmul.f32 %v4796_v60, %v2904_v45 }
 0x764   :  { %v4261_v25 = vpop.eup %4260  ;;  %v2971_v31 = vsub.f32 0.5, %v2907_v5  ;;  %v2847_v9 = vadd.f32 1.0, %v4259_v8  ;;  %4268 = vpow2.f32 %v2792_v16  ;;  %v2753_v40 = vsub.f32 0.0, %v2721_v46 }
 0x765   :  { %v4263_v1 = vpop.eup %4262  ;;  %3066 = vst.msk [vmem:[%s5549_s6 + $0x10] sm:$0xff] %vm628_vm0, %v3034_v21  ;;  %v3000_v55 = vmul.f32 %v5074_v34, %v2968_v26  ;;  %v2905_v13 = vmul.f32 0.5, %v4261_v25  ;;  %4270 = vrcp.f32 %v2844_v41  ;;  %v2939_v37 = vmul.f32 %v4808_v57, %v2907_v5 }
 0x766   :  { %v3003_v50 = vmul.f32 %v5083_v35, %v2971_v31  ;;  %4272 = vrcp.f32 %v2847_v9  ;;  %v2845_v60 = vadd.f32 1.0, %v4263_v1  ;;  %v2794_v11 = vmul.f32 1.442695, %v2753_v40 }
 0x767   :  { %v3032_v27 = vadd.f32 %v3000_v55, %v2936_v59  ;;  %v2969_v24 = vsub.f32 0.5, %v2905_v13  ;;  %4274 = vpow2.f32 %v2798_v63  ;;  %v2937_v34 = vmul.f32 %v4798_v62, %v2905_v13 }
 0x768   :  { %v3035_v32 = vadd.f32 %v3003_v50, %v2939_v37  ;;  %4276 = vrcp.f32 %v2845_v60  ;;  %v2660_v7 = vpop.xlane.xlu0 %2659 }
 0x769   :  { %3064 = vst.msk [vmem:[%s5549_s6] sm:$0xff] %vm628_vm0, %v3032_v27  ;;  %v3001_v57 = vmul.f32 %v5076_v36, %v2969_v24  ;;  %v2726_v35 = vsub.f32 %v5262_v10, %v2660_v7  ;;  %4278 = vpow2.f32 %v2794_v11 }
 0x76a   :  { %3067 = vst.msk [vmem:[%s5549_s6 + $0x18] sm:$0xff] %vm628_vm0, %v3035_v32 }
 0x76b   :  { %v3033_v58 = vadd.f32 %v3001_v57, %v2937_v34  ;;  %v2758_v43 = vsub.f32 0.0, %v2726_v35 }
 0x76c   :  { %v4265_v38 = vpop.eup %4264  ;;  %v2654_v39 = vpop.xlane.xlu0 %2653 }
 0x76d   :  { %v2663_v45 = vpop.xlane.xlu1 %2662  ;;  %v4267_v16 = vpop.eup %4266  ;;  %3065 = vst.msk [vmem:[%s5549_s6 + $0x8] sm:$0xff] %vm628_vm0, %v3033_v58  ;;  %v2850_v62 = vadd.f32 1.0, %v4265_v38  ;;  %v2804_v36 = vmul.f32 1.442695, %v2758_v43  ;;  %v2724_v10 = vsub.f32 %v5267_v17, %v2654_v39 }
 0x76e   :  { %v2727_v46 = vsub.f32 %v5265_v47, %v2663_v45  ;;  %v2910_v6 = vmul.f32 0.5, %v4267_v16 }
 0x76f   :  { %4280 = vrcp.f32 %v2850_v62  ;;  %v2756_v5 = vsub.f32 0.0, %v2724_v10 }
 0x770   :  { %v2759_v8 = vsub.f32 0.0, %v2727_v46  ;;  %v2974_v21 = vsub.f32 0.5, %v2910_v6  ;;  %4282 = vpow2.f32 %v2804_v36  ;;  %v2942_v9 = vmul.f32 %v4824_v28, %v2910_v6 }
 0x771   :  { %v2657_v26 = vpop.xlane.xlu1 %2656  ;;  %v4269_v41 = vpop.eup %4268  ;;  %v2800_v63 = vmul.f32 1.442695, %v2756_v5 }
 0x772   :  { %v2806_v25 = vmul.f32 1.442695, %v2759_v8  ;;  %v2725_v59 = vsub.f32 %v5272_v52, %v2657_v26  ;;  %v4271_v31 = vpop.eup %4270  ;;  %v3006_v1 = vmul.f32 %v5095_v49, %v2974_v21  ;;  %v2848_v17 = vadd.f32 1.0, %v4269_v41 }
 0x773   :  { %v4273_v55 = vpop.eup %4272  ;;  %v2908_v47 = vmul.f32 0.5, %v4271_v31  ;;  %4284 = vpow2.f32 %v2800_v63 }
 0x774   :  { %v2757_v13 = vsub.f32 0.0, %v2725_v59  ;;  %v4275_v40 = vpop.eup %4274  ;;  %v3038_v37 = vadd.f32 %v3006_v1, %v2942_v9  ;;  %v2911_v50 = vmul.f32 0.5, %v4273_v55  ;;  %4286 = vrcp.f32 %v2848_v17 }
 0x775   :  { %v4277_v60 = vpop.eup %4276  ;;  %v2972_v27 = vsub.f32 0.5, %v2908_v47  ;;  %v2851_v24 = vadd.f32 1.0, %v4275_v40  ;;  %4288 = vpow2.f32 %v2806_v25  ;;  %v2940_v11 = vmul.f32 %v4817_v19, %v2908_v47 }
 0x776   :  { %3070 = vst.msk [vmem:[%s5549_s6 + $0x30] sm:$0xff] %vm628_vm0, %v3038_v37  ;;  %v2975_v28 = vsub.f32 0.5, %v2911_v50  ;;  %v2909_v49 = vmul.f32 0.5, %v4277_v60  ;;  %v2802_v52 = vmul.f32 1.442695, %v2757_v13  ;;  %v4279_v32 = vpop.eup %4278  ;;  %v2943_v34 = vmul.f32 %v4826_v29, %v2911_v50 }
 0x777   :  { %v3004_v7 = vmul.f32 %v5088_v12, %v2972_v27  ;;  %4290 = vrcp.f32 %v2851_v24  ;;  %v2849_v58 = vadd.f32 1.0, %v4279_v32 }
 0x778   :  { %v3007_v57 = vmul.f32 %v5097_v14, %v2975_v28  ;;  %v2973_v35 = vsub.f32 0.5, %v2909_v49  ;;  %v2672_v43 = vpop.xlane.xlu0 %2671  ;;  %4292 = vpow2.f32 %v2802_v52  ;;  %v2941_v16 = vmul.f32 %v4819_v20, %v2909_v49 }
 0x779   :  { %v3036_v38 = vadd.f32 %v3004_v7, %v2940_v11  ;;  %v2730_v39 = vsub.f32 %v5274_v51, %v2672_v43  ;;  %4294 = vrcp.f32 %v2849_v58 }
 0x77a   :  { %v3039_v45 = vadd.f32 %v3007_v57, %v2943_v34  ;;  %v3005_v62 = vmul.f32 %v5090_v48, %v2973_v35 }
 0x77b   :  { %3068 = vst.msk [vmem:[%s5549_s6 + $0x20] sm:$0xff] %vm628_vm0, %v3036_v38  ;;  %v2762_v19 = vsub.f32 0.0, %v2730_v39 }
 0x77c   :  { %v4281_v29 = vpop.eup %4280  ;;  %3071 = vst.msk [vmem:[%s5549_s6 + $0x38] sm:$0xff] %vm628_vm0, %v3039_v45  ;;  %v3037_v12 = vadd.f32 %v3005_v62, %v2941_v16  ;;  %v2666_v14 = vpop.xlane.xlu0 %2665 }
 0x77d   :  { %v2675_v51 = vpop.xlane.xlu1 %2674  ;;  %v4283_v36 = vpop.eup %4282  ;;  %v2914_v20 = vmul.f32 0.5, %v4281_v29  ;;  %v2812_v10 = vmul.f32 1.442695, %v2762_v19  ;;  %v2728_v48 = vsub.f32 %v5282_v18, %v2666_v14 }
 0x77e   :  { %v2731_v46 = vsub.f32 %v5280_v22, %v2675_v51  ;;  %3069 = vst.msk [vmem:[%s5549_s6 + $0x28] sm:$0xff] %vm628_vm0, %v3037_v12  ;;  %v2854_v6 = vadd.f32 1.0, %v4283_v36 }
 0x77f   :  { %v2978_v5 = vsub.f32 0.5, %v2914_v20  ;;  %4296 = vpow2.f32 %v2812_v10  ;;  %v2760_v8 = vsub.f32 0.0, %v2728_v48  ;;  %v2946_v26 = vmul.f32 %v4838_v44, %v2914_v20  ;;  %v5673_v48 = vld [vmem:[#allocation26_spill] sm:$0xff] }
 0x780   :  { %v4285_v21 = vpop.eup %4284  ;;  %4298 = vrcp.f32 %v2854_v6  ;;  %v2763_v41 = vsub.f32 0.0, %v2731_v46 }
 0x781   :  { %v2669_v63 = vpop.xlane.xlu1 %2668  ;;  %v4287_v25 = vpop.eup %4286  ;;  %v3010_v18 = vmul.f32 %v5109_v56, %v2978_v5  ;;  %v2852_v59 = vadd.f32 1.0, %v4285_v21  ;;  %v2808_v22 = vmul.f32 1.442695, %v2760_v8 }
 0x782   :  { %v2729_v31 = vsub.f32 %v5285_v33, %v2669_v63  ;;  %v4289_v9 = vpop.eup %4288  ;;  %v2912_v1 = vmul.f32 0.5, %v4287_v25  ;;  %v2814_v17 = vmul.f32 1.442695, %v2763_v41 }
 0x783   :  { %v3042_v55 = vadd.f32 %v3010_v18, %v2946_v26  ;;  %4300 = vrcp.f32 %v2852_v59  ;;  %v2855_v47 = vadd.f32 1.0, %v4289_v9  ;;  %v5674_v59 = vld [vmem:[#allocation5_spill] sm:$0xff] }
 0x784   :  { %v2761_v13 = vsub.f32 0.0, %v2729_v31  ;;  %v4291_v40 = vpop.eup %4290  ;;  %v2976_v37 = vsub.f32 0.5, %v2912_v1  ;;  %4302 = vpow2.f32 %v2808_v22  ;;  %v2944_v33 = vmul.f32 %v4831_v54, %v2912_v1  ;;  %v5675_v31 = vld [vmem:[#allocation24_spill] sm:$0xff] }
 0x785   :  { %3074 = vst.msk [vmem:[%s5549_s6 + $0x50] sm:$0xff] %vm628_vm0, %v3042_v55  ;;  %v2915_v44 = vmul.f32 0.5, %v4291_v40  ;;  %4304 = vrcp.f32 %v2855_v47  ;;  %v4293_v50 = vpop.eup %4292  ;;  %v5677_v40 = vld [vmem:[#allocation27_spill] sm:$0xff] }
 0x786   :  { %v2810_v56 = vmul.f32 1.442695, %v2761_v13  ;;  %v3008_v60 = vmul.f32 %v5102_v30, %v2976_v37  ;;  %4306 = vpow2.f32 %v2814_v17  ;;  %v4295_v27 = vpop.eup %4294  ;;  %v2853_v28 = vadd.f32 1.0, %v4293_v50  ;;  %v5676_v17 = vld [vmem:[#allocation7_spill] sm:$0xff] }
 0x787   :  { %v2979_v24 = vsub.f32 0.5, %v2915_v44  ;;  %v2913_v52 = vmul.f32 0.5, %v4295_v27  ;;  %v2947_v11 = vmul.f32 %v4840_v42, %v2915_v44 }
 0x788   :  { %4308 = vpow2.f32 %v2810_v56  ;;  %v3040_v49 = vadd.f32 %v3008_v60, %v2944_v33  ;;  %v2684_v32 = vpop.xlane.xlu0 %2683  ;;  %v5678_v60 = vld [vmem:[#allocation44_spill] sm:$0xff] }
 0x789   :  { %v3011_v7 = vmul.f32 %v5111_v23, %v2979_v24  ;;  %4310 = vrcp.f32 %v2853_v28  ;;  %v2734_v34 = vsub.f32 %v5287_v2, %v2684_v32  ;;  %v2977_v54 = vsub.f32 0.5, %v2913_v52  ;;  %v5679_v24 = vld [vmem:[#allocation6_spill] sm:$0xff] }
 0x78a   :  { %3072 = vst.msk [vmem:[%s5549_s6 + $0x40] sm:$0xff] %vm628_vm0, %v3040_v49  ;;  %v2945_v58 = vmul.f32 %v4833_v15, %v2913_v52  ;;  %v5680_v49 = vld [vmem:[#allocation25_spill] sm:$0xff] }
 0x78b   :  { %v3043_v30 = vadd.f32 %v3011_v7, %v2947_v11  ;;  %v2766_v57 = vsub.f32 0.0, %v2734_v34  ;;  %v3009_v43 = vmul.f32 %v5104_v53, %v2977_v54 }
 0x78c   :  { %v4297_v35 = vpop.eup %4296  ;;  %v2678_v38 = vpop.xlane.xlu0 %2677 }
 0x78d   :  { %v2687_v42 = vpop.xlane.xlu1 %2686  ;;  %v4299_v39 = vpop.eup %4298  ;;  %3075 = vst.msk [vmem:[%s5549_s6 + $0x58] sm:$0xff] %vm628_vm0, %v3043_v30  ;;  %v2858_v23 = vadd.f32 1.0, %v4297_v35  ;;  %v2820_v2 = vmul.f32 1.442695, %v2766_v57  ;;  %v2732_v45 = vsub.f32 %v5292_v3, %v2678_v38  ;;  %v3041_v62 = vadd.f32 %v3009_v43, %v2945_v58  ;;  %v5681_v35 = vld [vmem:[#allocation46_spill] sm:$0xff]  ;;  %v5682_v43 = vld [vmem:[#allocation45_spill] sm:$0xff] }
 0x78e   :  { %v2735_v16 = vsub.f32 %v5289_v0, %v2687_v42  ;;  %v2918_v19 = vmul.f32 0.5, %v4299_v39 }
 0x78f   :  { %4312 = vrcp.f32 %v2858_v23  ;;  %v2764_v15 = vsub.f32 0.0, %v2732_v45  ;;  %3073 = vst.msk [vmem:[%s5549_s6 + $0x48] sm:$0xff] %vm628_vm0, %v3041_v62  ;;  %v5683_v62 = vld [vmem:[#allocation10_spill] sm:$0xff] }
 0x790   :  { %v2767_v29 = vsub.f32 0.0, %v2735_v16  ;;  %v4301_v53 = vpop.eup %4300  ;;  %v2982_v12 = vsub.f32 0.5, %v2918_v19  ;;  %4314 = vpow2.f32 %v2820_v2  ;;  %v2950_v10 = vmul.f32 %v4852_v61, %v2918_v19 }
 0x791   :  { %v2681_v14 = vpop.xlane.xlu1 %2680  ;;  %v4303_v51 = vpop.eup %4302  ;;  %v2916_v36 = vmul.f32 0.5, %v4301_v53  ;;  %v2816_v20 = vmul.f32 1.442695, %v2764_v15  ;;  %v5684_v53 = vld [vmem:[#allocation30_spill] sm:$0xff] }
 0x792   :  { %v2733_v3 = vsub.f32 %v5297_v4, %v2681_v14  ;;  %v4305_v0 = vpop.eup %4304  ;;  %v3014_v46 = vmul.f32 %v5673_v48, %v2982_v12  ;;  %v2856_v6 = vadd.f32 1.0, %v4303_v51  ;;  %v2822_v26 = vmul.f32 1.442695, %v2767_v29 }
 0x793   :  { %v4307_v5 = vpop.eup %4306  ;;  %v2980_v8 = vsub.f32 0.5, %v2916_v36  ;;  %v2919_v21 = vmul.f32 0.5, %v4305_v0  ;;  %4316 = vpow2.f32 %v2816_v20  ;;  %v2948_v22 = vmul.f32 %v5674_v59, %v2916_v36 }
 0x794   :  { %v3046_v63 = vadd.f32 %v3014_v46, %v2950_v10  ;;  %4318 = vrcp.f32 %v2856_v6  ;;  %v2859_v25 = vadd.f32 1.0, %v4307_v5  ;;  %v2765_v18 = vsub.f32 0.0, %v2733_v3  ;;  %v5685_v3 = vld [vmem:[#allocation47_spill] sm:$0xff] }
 0x795   :  { %v4309_v41 = vpop.eup %4308  ;;  %v3012_v4 = vmul.f32 %v5675_v31, %v2980_v8  ;;  %v2983_v9 = vsub.f32 0.5, %v2919_v21  ;;  %v2951_v55 = vmul.f32 %v5676_v17, %v2919_v21  ;;  %v5688_v17 = vld [vmem:[#allocation11_spill] sm:$0xff] }
 0x796   :  { %v2857_v1 = vadd.f32 1.0, %v4309_v41  ;;  %v4311_v61 = vpop.eup %4310  ;;  %3078 = vst.msk [vmem:[%s5549_s6 + $0x70] sm:$0xff] %vm628_vm0, %v3046_v63  ;;  %4320 = vrcp.f32 %v2859_v25  ;;  %v2818_v47 = vmul.f32 1.442695, %v2765_v18  ;;  %v5686_v63 = vld [vmem:[#allocation8_spill] sm:$0xff] }
 0x797   :  { %v3044_v13 = vadd.f32 %v3012_v4, %v2948_v22  ;;  %v3015_v37 = vmul.f32 %v5677_v40, %v2983_v9  ;;  %v2917_v44 = vmul.f32 0.5, %v4311_v61  ;;  %v5687_v18 = vld [vmem:[#allocation28_spill] sm:$0xff]  ;;  %v5690_v40 = vld [vmem:[#allocation9_spill] sm:$0xff] }
 0x798   :  { %4322 = vrcp.f32 %v2857_v1  ;;  %v2696_v56 = vpop.xlane.xlu0 %2695 }
 0x799   :  { %4324 = vpow2.f32 %v2822_v26  ;;  %3076 = vst.msk [vmem:[%s5549_s6 + $0x60] sm:$0xff] %vm628_vm0, %v3044_v13  ;;  %v3047_v50 = vadd.f32 %v3015_v37, %v2951_v55  ;;  %v2981_v33 = vsub.f32 0.5, %v2917_v44  ;;  %v2738_v27 = vsub.f32 %v5678_v60, %v2696_v56 }
 0x79a   :  { %4326 = vpow2.f32 %v2818_v47  ;;  %v2949_v28 = vmul.f32 %v5679_v24, %v2917_v44  ;;  %v5689_v47 = vld [vmem:[#allocation31_spill] sm:$0xff]  ;;  %v5691_v44 = vld [vmem:[#allocation29_spill] sm:$0xff] }
 0x79b   :  { %3079 = vst.msk [vmem:[%s5549_s6 + $0x78] sm:$0xff] %vm628_vm0, %v3047_v50  ;;  %v3013_v52 = vmul.f32 %v5680_v49, %v2981_v33  ;;  %v2770_v11 = vsub.f32 0.0, %v2738_v27  ;;  %v5692_v27 = vld [vmem:[#allocation50_spill] sm:$0xff] }
 0x79c   :  { %v4313_v32 = vpop.eup %4312  ;;  %v2690_v7 = vpop.xlane.xlu0 %2689 }
 0x79d   :  { %v2699_v34 = vpop.xlane.xlu1 %2698  ;;  %v4315_v54 = vpop.eup %4314  ;;  %v3045_v30 = vadd.f32 %v3013_v52, %v2949_v28  ;;  %v2922_v57 = vmul.f32 0.5, %v4313_v32  ;;  %v2736_v58 = vsub.f32 %v5681_v35, %v2690_v7  ;;  %v2828_v39 = vmul.f32 1.442695, %v2770_v11  ;;  %v5694_v35 = vld [vmem:[#allocation51_spill] sm:$0xff] }
 0x79e   :  { %v2739_v38 = vsub.f32 %v5682_v43, %v2699_v34  ;;  %v2862_v42 = vadd.f32 1.0, %v4315_v54 }
 0x79f   :  { %3077 = vst.msk [vmem:[%s5549_s6 + $0x68] sm:$0xff] %vm628_vm0, %v3045_v30  ;;  %v2986_v23 = vsub.f32 0.5, %v2922_v57  ;;  %v2768_v2 = vsub.f32 0.0, %v2736_v58  ;;  %v2954_v19 = vmul.f32 %v5683_v62, %v2922_v57  ;;  %v5693_v30 = vld [vmem:[#allocation48_spill] sm:$0xff] }
 0x7a0   :  { %v2771_v45 = vsub.f32 0.0, %v2739_v38  ;;  %v4317_v16 = vpop.eup %4316  ;;  %4328 = vrcp.f32 %v2862_v42 }
 0x7a1   :  { %v2693_v15 = vpop.xlane.xlu1 %2692  ;;  %v4319_v29 = vpop.eup %4318  ;;  %v3018_v12 = vmul.f32 %v5684_v53, %v2986_v23  ;;  %v2860_v14 = vadd.f32 1.0, %v4317_v16  ;;  %4330 = vpow2.f32 %v2828_v39  ;;  %v2824_v51 = vmul.f32 1.442695, %v2768_v2  ;;  %v5695_v16 = vld [vmem:[#allocation14_spill] sm:$0xff] }
 0x7a2   :  { %v2920_v36 = vmul.f32 0.5, %v4319_v29  ;;  %v2830_v20 = vmul.f32 1.442695, %v2771_v45  ;;  %v2737_v0 = vsub.f32 %v5685_v3, %v2693_v15  ;;  %v5697_v3 = vld [vmem:[#allocation49_spill] sm:$0xff] }
 0x7a3   :  { %v4321_v10 = vpop.eup %4320  ;;  %v3050_v48 = vadd.f32 %v3018_v12, %v2954_v19  ;;  %4332 = vrcp.f32 %v2860_v14  ;;  %v5696_v19 = vld [vmem:[#allocation34_spill] sm:$0xff] }
 0x7a4   :  { %v2984_v6 = vsub.f32 0.5, %v2920_v36  ;;  %v2923_v5 = vmul.f32 0.5, %v4321_v10  ;;  %4334 = vpow2.f32 %v2824_v51  ;;  %v2769_v26 = vsub.f32 0.0, %v2737_v0 }
 0x7a5   :  { %v4323_v46 = vpop.eup %4322  ;;  %3082 = vst.msk [vmem:[%s5549_s6 + $0x90] sm:$0xff] %vm628_vm0, %v3050_v48  ;;  %4336 = vpow2.f32 %v2830_v20  ;;  %v2952_v25 = vmul.f32 %v5686_v63, %v2920_v36  ;;  %v5698_v48 = vld [vmem:[#allocation12_spill] sm:$0xff] }
 0x7a6   :  { %v4325_v8 = vpop.eup %4324  ;;  %v2921_v21 = vmul.f32 0.5, %v4323_v46  ;;  %v3016_v59 = vmul.f32 %v5687_v18, %v2984_v6  ;;  %v2987_v22 = vsub.f32 0.5, %v2923_v5  ;;  %v2826_v1 = vmul.f32 1.442695, %v2769_v26  ;;  %v5699_v6 = vld [vmem:[#allocation32_spill] sm:$0xff] }
 0x7a7   :  { %v4327_v41 = vpop.eup %4326  ;;  %v2863_v31 = vadd.f32 1.0, %v4325_v8  ;;  %v2955_v55 = vmul.f32 %v5688_v17, %v2923_v5  ;;  %v5702_v17 = vld [vmem:[#allocation13_spill] sm:$0xff] }
 0x7a8   :  { %v2985_v4 = vsub.f32 0.5, %v2921_v21  ;;  %v2861_v9 = vadd.f32 1.0, %v4327_v41  ;;  %v3048_v61 = vadd.f32 %v3016_v59, %v2952_v25  ;;  %v3019_v13 = vmul.f32 %v5689_v47, %v2987_v22  ;;  %v5703_v47 = vld [vmem:[#allocation33_spill] sm:$0xff] }
 0x7a9   :  { %4338 = vrcp.f32 %v2863_v31  ;;  %v2953_v37 = vmul.f32 %v5690_v40, %v2921_v21 }
 0x7aa   :  { %v3017_v56 = vmul.f32 %v5691_v44, %v2985_v4  ;;  %4340 = vrcp.f32 %v2861_v9  ;;  %3080 = vst.msk [vmem:[%s5549_s6 + $0x80] sm:$0xff] %vm628_vm0, %v3048_v61  ;;  %v3051_v50 = vadd.f32 %v3019_v13, %v2955_v55  ;;  %v2702_v33 = vpop.xlane.xlu0 %2701  ;;  %v5700_v4 = vld [vmem:[#allocation15_spill] sm:$0xff] }
 0x7ab   :  { %4342 = vpow2.f32 %v2826_v1  ;;  %v2740_v24 = vsub.f32 %v5692_v27, %v2702_v33  ;;  %v5701_v1 = vld [vmem:[#allocation35_spill] sm:$0xff] }
 0x7ac   :  { %v3049_v60 = vadd.f32 %v3017_v56, %v2953_v37  ;;  %3083 = vst.msk [vmem:[%s5549_s6 + $0x98] sm:$0xff] %vm628_vm0, %v3051_v50 }
 0x7ad   :  { %v4329_v28 = vpop.eup %4328  ;;  %v2772_v49 = vsub.f32 0.0, %v2740_v24 }
 0x7ae   :  { %3081 = vst.msk [vmem:[%s5549_s6 + $0x88] sm:$0xff] %vm628_vm0, %v3049_v60  ;;  %v4331_v52 = vpop.eup %4330  ;;  %v2926_v32 = vmul.f32 0.5, %v4329_v28  ;;  %v2708_v11 = vpop.xlane.xlu0 %2707 }
 0x7af   :  { %v2705_v7 = vpop.xlane.xlu1 %2704  ;;  %v2866_v34 = vadd.f32 1.0, %v4331_v52  ;;  %v2832_v54 = vmul.f32 1.442695, %v2772_v49  ;;  %v2742_v57 = vsub.f32 %v5693_v30, %v2708_v11  ;;  %v5704_v52 = vld [vmem:[#allocation18_spill] sm:$0xff] }
 0x7b0   :  { %v2741_v58 = vsub.f32 %v5694_v35, %v2705_v7  ;;  %v4333_v43 = vpop.eup %4332  ;;  %v2990_v38 = vsub.f32 0.5, %v2926_v32  ;;  %v2958_v62 = vmul.f32 %v5695_v16, %v2926_v32  ;;  %v5705_v11 = vld [vmem:[#allocation38_spill] sm:$0xff] }
 0x7b1   :  { %v4335_v42 = vpop.eup %4334  ;;  %v2924_v39 = vmul.f32 0.5, %v4333_v43  ;;  %4344 = vrcp.f32 %v2866_v34  ;;  %v2774_v23 = vsub.f32 0.0, %v2742_v57 }
 0x7b2   :  { %v2773_v2 = vsub.f32 0.0, %v2741_v58  ;;  %v4337_v45 = vpop.eup %4336  ;;  %v3022_v15 = vmul.f32 %v5696_v19, %v2990_v38  ;;  %v2864_v29 = vadd.f32 1.0, %v4335_v42  ;;  %4346 = vpow2.f32 %v2832_v54  ;;  %v5706_v38 = vld [vmem:[#allocation16_spill] sm:$0xff] }
 0x7b3   :  { %v2711_v53 = vpop.xlane.xlu1 %2710  ;;  %v2988_v12 = vsub.f32 0.5, %v2924_v39  ;;  %v2867_v14 = vadd.f32 1.0, %v4337_v45  ;;  %v2836_v51 = vmul.f32 1.442695, %v2774_v23  ;;  %v2956_v46 = vmul.f32 %v5698_v48, %v2924_v39  ;;  %v5707_v39 = vld [vmem:[#allocation36_spill] sm:$0xff]  ;;  %v5708_v45 = vld [vmem:[#allocation19_spill] sm:$0xff] }
 0x7b4   :  { %v3054_v36 = vadd.f32 %v3022_v15, %v2958_v62  ;;  %4348 = vrcp.f32 %v2864_v29  ;;  %v2834_v20 = vmul.f32 1.442695, %v2773_v2  ;;  %v2743_v0 = vsub.f32 %v5697_v3, %v2711_v53  ;;  %v5709_v62 = vld [vmem:[#allocation39_spill] sm:$0xff]  ;;  %v5711_v3 = vld [vmem:[#allocation37_spill] sm:$0xff] }
 0x7b5   :  { %v3020_v5 = vmul.f32 %v5699_v6, %v2988_v12  ;;  %4350 = vrcp.f32 %v2867_v14 }
 0x7b6   :  { %v4339_v10 = vpop.eup %4338  ;;  %3086 = vst.msk [vmem:[%s5549_s6 + $0xb0] sm:$0xff] %vm628_vm0, %v3054_v36  ;;  %4352 = vpow2.f32 %v2836_v51  ;;  %v2775_v26 = vsub.f32 0.0, %v2743_v0  ;;  %v5710_v36 = vld [vmem:[#allocation17_spill] sm:$0xff] }
 0x7b7   :  { %v4341_v8 = vpop.eup %4340  ;;  %v2927_v21 = vmul.f32 0.5, %v4339_v10  ;;  %v3052_v63 = vadd.f32 %v3020_v5, %v2956_v46  ;;  %4354 = vpow2.f32 %v2834_v20 }
 0x7b8   :  { %v4343_v41 = vpop.eup %4342  ;;  %v2925_v25 = vmul.f32 0.5, %v4341_v8  ;;  %v2838_v22 = vmul.f32 1.442695, %v2775_v26 }
 0x7b9   :  { %v2991_v18 = vsub.f32 0.5, %v2927_v21  ;;  %v2865_v59 = vadd.f32 1.0, %v4343_v41  ;;  %3084 = vst.msk [vmem:[%s5549_s6 + $0xa0] sm:$0xff] %vm628_vm0, %v3052_v63  ;;  %v2959_v9 = vmul.f32 %v5700_v4, %v2927_v21  ;;  %v5712_v21 = vld [vmem:[#allocation20_spill] sm:$0xff] }
 0x7ba   :  { %v2989_v31 = vsub.f32 0.5, %v2925_v25  ;;  %v2957_v55 = vmul.f32 %v5702_v17, %v2925_v25  ;;  %v5713_v41 = vld [vmem:[#allocation40_spill] sm:$0xff] }
 0x7bb   :  { %v3023_v61 = vmul.f32 %v5701_v1, %v2991_v18  ;;  %4356 = vrcp.f32 %v2865_v59 }
 0x7bc   :  { %v3021_v13 = vmul.f32 %v5703_v47, %v2989_v31  ;;  %4358 = vpow2.f32 %v2838_v22 }
 0x7bd   :  { %v3055_v40 = vadd.f32 %v3023_v61, %v2959_v9  ;;  %v5714_v9 = vld [vmem:[#allocation22_spill] sm:$0xff] }
 0x7be   :  { %v3053_v37 = vadd.f32 %v3021_v13, %v2957_v55  ;;  %v4345_v44 = vpop.eup %4344  ;;  %v5715_v61 = vld [vmem:[#allocation42_spill] sm:$0xff]  ;;  %v5716_v55 = vld [vmem:[#allocation21_spill] sm:$0xff] }
 0x7bf   :  { %3087 = vst.msk [vmem:[%s5549_s6 + $0xb8] sm:$0xff] %vm628_vm0, %v3055_v40  ;;  %v4347_v56 = vpop.eup %4346  ;;  %v2930_v50 = vmul.f32 0.5, %v4345_v44  ;;  %v5717_v13 = vld [vmem:[#allocation41_spill] sm:$0xff] }
 0x7c0   :  { %3085 = vst.msk [vmem:[%s5549_s6 + $0xa8] sm:$0xff] %vm628_vm0, %v3053_v37  ;;  %v2868_v33 = vadd.f32 1.0, %v4347_v56 }
 0x7c1   :  { %v4349_v60 = vpop.eup %4348  ;;  %v2994_v27 = vsub.f32 0.5, %v2930_v50  ;;  %v2962_v32 = vmul.f32 %v5704_v52, %v2930_v50 }
 0x7c2   :  { %v4351_v24 = vpop.eup %4350  ;;  %v2928_v28 = vmul.f32 0.5, %v4349_v60  ;;  %4360 = vrcp.f32 %v2868_v33  ;;  %v5718_v33 = vld [vmem:[#allocation23_spill] sm:$0xff] }
 0x7c3   :  { %v4353_v49 = vpop.eup %4352  ;;  %v3026_v7 = vmul.f32 %v5705_v11, %v2994_v27  ;;  %v2931_v34 = vmul.f32 0.5, %v4351_v24  ;;  %v5719_v27 = vld [vmem:[#allocation43_spill] sm:$0xff] }
 0x7c4   :  { %v4355_v54 = vpop.eup %4354  ;;  %v2992_v30 = vsub.f32 0.5, %v2928_v28  ;;  %v2870_v57 = vadd.f32 1.0, %v4353_v49  ;;  %v2960_v42 = vmul.f32 %v5706_v38, %v2928_v28 }
 0x7c5   :  { %v3058_v35 = vadd.f32 %v3026_v7, %v2962_v32  ;;  %v2995_v58 = vsub.f32 0.5, %v2931_v34  ;;  %v2869_v43 = vadd.f32 1.0, %v4355_v54  ;;  %v2963_v16 = vmul.f32 %v5708_v45, %v2931_v34 }
 0x7c6   :  { %v3024_v23 = vmul.f32 %v5707_v39, %v2992_v30  ;;  %4362 = vrcp.f32 %v2870_v57 }
 0x7c7   :  { %3090 = vst.msk [vmem:[%s5549_s6 + $0xd0] sm:$0xff] %vm628_vm0, %v3058_v35  ;;  %v3027_v19 = vmul.f32 %v5709_v62, %v2995_v58  ;;  %4364 = vrcp.f32 %v2869_v43 }
 0x7c8   :  { %v4357_v2 = vpop.eup %4356  ;;  %v3056_v29 = vadd.f32 %v3024_v23, %v2960_v42 }
 0x7c9   :  { %v4359_v15 = vpop.eup %4358  ;;  %v2929_v53 = vmul.f32 0.5, %v4357_v2  ;;  %v3059_v12 = vadd.f32 %v3027_v19, %v2963_v16 }
 0x7ca   :  { %v2871_v14 = vadd.f32 1.0, %v4359_v15  ;;  %3088 = vst.msk [vmem:[%s5549_s6 + $0xc0] sm:$0xff] %vm628_vm0, %v3056_v29 }
 0x7cb   :  { %v2993_v51 = vsub.f32 0.5, %v2929_v53  ;;  %3091 = vst.msk [vmem:[%s5549_s6 + $0xd8] sm:$0xff] %vm628_vm0, %v3059_v12  ;;  %v2961_v20 = vmul.f32 %v5710_v36, %v2929_v53 }
 0x7cc   :  { %4366 = vrcp.f32 %v2871_v14 }
 0x7cd   :  { %v3025_v0 = vmul.f32 %v5711_v3, %v2993_v51 }
 0x7cf   :  { %v3057_v10 = vadd.f32 %v3025_v0, %v2961_v20  ;;  %v4361_v48 = vpop.eup %4360 }
 0x7d0   :  { %v2932_v46 = vmul.f32 0.5, %v4361_v48 }
 0x7d1   :  { %3089 = vst.msk [vmem:[%s5549_s6 + $0xc8] sm:$0xff] %vm628_vm0, %v3057_v10 }
 0x7d2   :  { %v2996_v6 = vsub.f32 0.5, %v2932_v46  ;;  %v2964_v26 = vmul.f32 %v5712_v21, %v2932_v46 }
 0x7d3   :  { %v4363_v5 = vpop.eup %4362 }
 0x7d4   :  { %v4365_v8 = vpop.eup %4364  ;;  %v3028_v63 = vmul.f32 %v5713_v41, %v2996_v6  ;;  %v2934_v25 = vmul.f32 0.5, %v4363_v5 }
 0x7d5   :  { %v2933_v18 = vmul.f32 0.5, %v4365_v8 }
 0x7d6   :  { %v3060_v59 = vadd.f32 %v3028_v63, %v2964_v26  ;;  %v2998_v22 = vsub.f32 0.5, %v2934_v25  ;;  %v2966_v1 = vmul.f32 %v5714_v9, %v2934_v25 }
 0x7d7   :  { %v2997_v31 = vsub.f32 0.5, %v2933_v18  ;;  %v2965_v47 = vmul.f32 %v5716_v55, %v2933_v18 }
 0x7d8   :  { %3092 = vst.msk [vmem:[%s5549_s6 + $0xe0] sm:$0xff] %vm628_vm0, %v3060_v59  ;;  %v3030_v17 = vmul.f32 %v5715_v61, %v2998_v22 }
 0x7d9   :  { %v4367_v4 = vpop.eup %4366  ;;  %v3029_v40 = vmul.f32 %v5717_v13, %v2997_v31 }
 0x7da   :  { %v2935_v37 = vmul.f32 0.5, %v4367_v4  ;;  %v3062_v44 = vadd.f32 %v3030_v17, %v2966_v1 }
 0x7db   :  { %v3061_v56 = vadd.f32 %v3029_v40, %v2965_v47 }
 0x7dc   :  { %v2999_v50 = vsub.f32 0.5, %v2935_v37  ;;  %3094 = vst.msk [vmem:[%s5549_s6 + $0xf0] sm:$0xff] %vm628_vm0, %v3062_v44  ;;  %v2967_v60 = vmul.f32 %v5718_v33, %v2935_v37 }
 0x7dd   :  { %3093 = vst.msk [vmem:[%s5549_s6 + $0xe8] sm:$0xff] %vm628_vm0, %v3061_v56 }
 0x7de   :  { %v3031_v24 = vmul.f32 %v5719_v27, %v2999_v50 }
 0x7e0   :  { %v3063_v28 = vadd.f32 %v3031_v24, %v2967_v60 }
 0x7e2   :  { %3095 = vst.msk [vmem:[%s5549_s6 + $0xf8] sm:$0xff] %vm628_vm0, %v3063_v28 }
 0x7e3   :  { %3100 = vsyncpa [#allocation3], 1 }

</bundles_post_ra>
